<compile_context>
chip_gen: v5e
topology: v5e:2x2
jax: 0.10.0
libtpu: 0.0.40
codegen_flags: <defaults>
</compile_context>

<pallas_src>
import functools
import math

import jax
import jax.numpy as jnp
from jax.experimental import pallas as pl
from jax.experimental.pallas import tpu as pltpu


# ---------------------------------------------------------------------------
# Kernel
# ---------------------------------------------------------------------------
def _layernorm(x, gamma, beta, eps=1e-5):
    """f32 LayerNorm over the last dim (VPU/EUP work stays in f32)."""
    mu = jnp.mean(x, axis=-1, keepdims=True)
    xc = x - mu
    var = jnp.mean(xc * xc, axis=-1, keepdims=True)
    return xc * jax.lax.rsqrt(var + eps) * gamma + beta


def _decoder_layer_kernel(x_ref,
                          g1_ref, be1_ref,
                          wqkv_ref, bqkv_ref,
                          wo_ref, bo_ref,
                          g2_ref, be2_ref,
                          w1_ref, b1_ref,
                          w2_ref, b2_ref,
                          o_ref,
                          concat_ref,
                          *, heads, seq_len, batch_block):
    f32 = jnp.float32
    cdt = wqkv_ref.dtype                       # MXU operand dtype (bf16 by default)

    x = x_ref[...].astype(f32)                 # (bb*S, D) activation slab
    _, D = x.shape
    d_k = D // heads
    scale = 1.0 / math.sqrt(d_k)

    # ---- sub-layer 1: LayerNorm -> multi-head self-attention ---------------
    xn = _layernorm(x, g1_ref[...], be1_ref[...])

    # Fused QKV projection: ONE MXU pass with N = 3*D (bf16 operands, f32 acc).
    qkv = jnp.dot(xn.astype(cdt), wqkv_ref[...],
                  preferred_element_type=f32) + bqkv_ref[...]
    q = (qkv[:, 0 * D:1 * D] * scale).astype(cdt)   # fold 1/sqrt(d_k) into q once
    k = qkv[:, 1 * D:2 * D].astype(cdt)
    v = qkv[:, 2 * D:3 * D].astype(cdt)

    # Per-(sequence, head) attention.  Head outputs go into a VMEM concat
    # scratch; the output projection is ONE matmul with K = D afterwards.
    # TODO(synk): for d_k < 128 these lane slices are masked sub-vreg accesses; a
    #             head-batched (H, S, d_k) layout would avoid that at the cost of
    #             two XLU transposes per sequence.
    # TODO(synk): for long sequences on v7x (64 MiB VMEM) this should become a
    #             flash-style online-softmax loop over KV tiles.
    for b in range(batch_block):               # static unroll: sublane row slices
        r0 = b * seq_len
        for h in range(heads):
            c0 = h * d_k
            qh = q[r0:r0 + seq_len, c0:c0 + d_k]
            kh = k[r0:r0 + seq_len, c0:c0 + d_k]
            vh = v[r0:r0 + seq_len, c0:c0 + d_k]
            # scores = qh @ kh.T with the transpose folded into the contraction.
            s = jax.lax.dot_general(qh, kh, (((1,), (1,)), ((), ())),
                                    preferred_element_type=f32)
            s = s - jnp.max(s, axis=-1, keepdims=True)       # stable softmax, f32
            p = jnp.exp(s)
            p = p * pl.reciprocal(jnp.sum(p, axis=-1, keepdims=True), approx=True)
            oh = jnp.dot(p.astype(cdt), vh, preferred_element_type=f32)
            concat_ref[r0:r0 + seq_len, c0:c0 + d_k] = oh

    attn = jnp.dot(concat_ref[...].astype(cdt), wo_ref[...],
                   preferred_element_type=f32) + bo_ref[...]

    # `x = dropout(x) + x` with x == attention output, dropout == identity.
    x2 = attn + attn

    # ---- sub-layer 2: LayerNorm -> FeedForward ------------------------------
    yn = _layernorm(x2, g2_ref[...], be2_ref[...])
    h1 = jnp.maximum(jnp.dot(yn.astype(cdt), w1_ref[...],
                             preferred_element_type=f32) + b1_ref[...], 0.0)
    ff = jnp.dot(h1.astype(cdt), w2_ref[...],
                 preferred_element_type=f32) + b2_ref[...]

    # `y = dropout(y) + y` with y == FFN output, dropout == identity.
    o_ref[...] = (ff + ff).astype(o_ref.dtype)


# ---------------------------------------------------------------------------
# Wrapper
# ---------------------------------------------------------------------------
def _pick_batch_block(batch, seq_len):
    """Batch-tile size: aim for ~512 rows per grid step, keep >= 2 grid steps
    when B >= 2 (megacore), require bb | B and sublane-divisible blocks."""
    bb = min(batch, max(1, 512 // max(seq_len, 1)))
    if batch >= 2:
        bb = min(bb, max(1, batch // 2))
    while batch % bb:
        bb -= 1
    if (bb * seq_len) % 8 != 0:
        bb = batch                       # full-array block is always legal
    return bb


def decoder_layer(x, params, *, heads, mxu_dtype=jnp.bfloat16):
    """x: (B, S, D) f32.  params: weights in (in, out) layout, biases as (1, out).

    MXU operands are cast to `mxu_dtype` (bf16 default); accumulation, layernorm,
    softmax and residuals stay f32."""
    B, S, D = x.shape
    assert D % heads == 0, "d_model must be divisible by heads"
    d_ff = params["w1"].shape[1]
    f32 = jnp.float32

    # Pre-fuse Q/K/V into one (D, 3D) weight so the kernel does a single MXU
    # pass.  (In production these concats/casts would be done once, offline.)
    wqkv = jnp.concatenate([params["wq"], params["wk"], params["wv"]], axis=1)
    bqkv = jnp.concatenate([params["bq"], params["bk"], params["bv"]], axis=1)

    args = (
        x.reshape(B * S, D),                               # batch folded into rows
        params["g1"].astype(f32), params["be1"].astype(f32),
        wqkv.astype(mxu_dtype), bqkv.astype(f32),
        params["wo"].astype(mxu_dtype), params["bo"].astype(f32),
        params["g2"].astype(f32), params["be2"].astype(f32),
        params["w1"].astype(mxu_dtype), params["b1"].astype(f32),
        params["w2"].astype(mxu_dtype), params["b2"].astype(f32),
    )

    bb = _pick_batch_block(B, S)
    blk_rows = bb * S
    num_blocks = B // bb

    # Explicit scoped-VMEM budget: resident weights (x2 in case the single-buffer
    # request is rejected) + pipelined activation blocks + in-kernel intermediates.
    weight_bytes = sum(int(a.size) * a.dtype.itemsize for a in args[1:])
    act_bytes = blk_rows * D * 4
    est = (2 * weight_bytes
           + 4 * act_bytes                      # x / out blocks, double-buffered
           + act_bytes                          # concat scratch
           + 2 * 3 * act_bytes                  # qkv intermediate + q/k/v casts
           + 2 * blk_rows * d_ff * 4)           # FFN hidden activation
    vmem_limit = int(min(100 * 1024 * 1024, max(2 * est, 16 * 1024 * 1024)))

    kernel = functools.partial(_decoder_layer_kernel,
                               heads=heads, seq_len=S, batch_block=bb)

    def build(single_buffer_weights):
        def resident(shape):
            # Constant block index -> fetched once, stays in VMEM across steps.
            kw = {}
            if single_buffer_weights:
                kw["pipeline_mode"] = pl.Buffered(1)   # don't double-buffer weights
            return pl.BlockSpec(shape, lambda i, _n=len(shape): (0,) * _n, **kw)

        grid_spec = pltpu.PrefetchScalarGridSpec(
            num_scalar_prefetch=0,
            grid=(num_blocks,),
            in_specs=[
                pl.BlockSpec((blk_rows, D), lambda i: (i, 0)),     # activations
                resident((1, D)), resident((1, D)),                # norm1 gamma/beta
                resident((D, 3 * D)), resident((1, 3 * D)),        # Wqkv, bqkv
                resident((D, D)), resident((1, D)),                # Wo, bo
                resident((1, D)), resident((1, D)),                # norm2 gamma/beta
                resident((D, d_ff)), resident((1, d_ff)),          # W1, b1
                resident((d_ff, D)), resident((1, D)),             # W2, b2
            ],
            out_specs=pl.BlockSpec((blk_rows, D), lambda i: (i, 0)),
            scratch_shapes=[pltpu.VMEM((blk_rows, D), f32)],       # head concat
        )
        return pl.pallas_call(
            kernel,
            out_shape=jax.ShapeDtypeStruct((B * S, D), x.dtype),
            grid_spec=grid_spec,
            compiler_params=pltpu.CompilerParams(
                dimension_semantics=("parallel",),
                vmem_limit_bytes=vmem_limit,
            ),
        )

    try:
        out2d = jax.block_until_ready(build(True)(*args))
    except Exception:
        # pl.Buffered(1) rejected by this JAX build -> default double buffering.
        out2d = build(False)(*args)

    # TODO(synk): for D < 128 the output stores are masked (vst.msk); lane-padding
    #             D to 128 would make them dense but changes the layernorm footprint.
    return out2d.reshape(B, S, D)


# ---------------------------------------------------------------------------
# Pure-JAX reference of the same forward semantics
# ---------------------------------------------------------------------------
def decoder_layer_ref(x, params, *, heads, mxu_dtype=jnp.float32):
    """With mxu_dtype=bf16 this performs the same bf16-operand / f32-accumulate
    matmul math as the kernel; with f32 it is the full-precision reference."""
    f32 = jnp.float32

    def mm(a, w):
        return jnp.dot(a.astype(mxu_dtype), w.astype(mxu_dtype),
                       preferred_element_type=f32)

    def ln(z, g, b):
        mu = z.mean(-1, keepdims=True)
        zc = z - mu
        var = (zc * zc).mean(-1, keepdims=True)
        return zc / jnp.sqrt(var + 1e-5) * g + b

    B, S, D = x.shape
    d_k = D // heads
    xn = ln(x, params["g1"], params["be1"])
    q = mm(xn, params["wq"]) + params["bq"]
    k = mm(xn, params["wk"]) + params["bk"]
    v = mm(xn, params["wv"]) + params["bv"]
    q = q.reshape(B, S, heads, d_k).transpose(0, 2, 1, 3)
    k = k.reshape(B, S, heads, d_k).transpose(0, 2, 1, 3)
    v = v.reshape(B, S, heads, d_k).transpose(0, 2, 1, 3)
    s = jnp.einsum("bhqd,bhkd->bhqk", q.astype(mxu_dtype), k.astype(mxu_dtype),
                   preferred_element_type=f32) / math.sqrt(d_k)
    p = jax.nn.softmax(s, axis=-1)
    o = jnp.einsum("bhqk,bhkd->bhqd", p.astype(mxu_dtype), v.astype(mxu_dtype),
                   preferred_element_type=f32)
    concat = o.transpose(0, 2, 1, 3).reshape(B, S, D)
    attn = mm(concat, params["wo"]) + params["bo"]
    x2 = attn + attn
    yn = ln(x2, params["g2"], params["be2"])
    h1 = jax.nn.relu(mm(yn, params["w1"]) + params["b1"])
    ff = mm(h1, params["w2"]) + params["b2"]
    return ff + ff


# ---------------------------------------------------------------------------
if __name__ == "__main__":
    # Small shapes consistent with the module: batch=2, seq=8, d_model=32,
    # heads=4 (d_k=8), d_ff=2048 (FeedForward default).
    B, S, D, H, DFF = 2, 8, 32, 4, 2048

    key = jax.random.PRNGKey(0)
    keys = jax.random.split(key, 16)

    def w(k, shape, fan_in):
        return jax.random.normal(k, shape, dtype=jnp.float32) / math.sqrt(fan_in)

    params = dict(
        g1=jnp.ones((1, D), jnp.float32), be1=jnp.zeros((1, D), jnp.float32),
        wq=w(keys[0], (D, D), D),   bq=w(keys[1], (1, D), D),
        wk=w(keys[2], (D, D), D),   bk=w(keys[3], (1, D), D),
        wv=w(keys[4], (D, D), D),   bv=w(keys[5], (1, D), D),
        wo=w(keys[6], (D, D), D),   bo=w(keys[7], (1, D), D),
        g2=jnp.ones((1, D), jnp.float32), be2=jnp.zeros((1, D), jnp.float32),
        w1=w(keys[8], (D, DFF), D),  b1=w(keys[9], (1, DFF), D),
        w2=w(keys[10], (DFF, D), DFF), b2=w(keys[11], (1, D), DFF),
    )
    x = jax.random.normal(keys[12], (B, S, D), dtype=jnp.float32)

    out = jax.block_until_ready(decoder_layer(x, params, heads=H))
    assert out.shape == (B, S, D)

    # Primary check: matched-precision reference (same bf16/f32-acc matmul math).
    ref_matched = decoder_layer_ref(x, params, heads=H, mxu_dtype=jnp.bfloat16)
    assert bool(jnp.allclose(out, ref_matched, atol=2e-2, rtol=2e-2)), \
        "mismatch vs matched-precision reference"

    # Sanity bound: full-f32 reference (bf16 numeric envelope, loose tolerance).
    ref_f32 = decoder_layer_ref(x, params, heads=H, mxu_dtype=jnp.float32)
    assert bool(jnp.allclose(out, ref_f32, atol=2e-1, rtol=2e-1)), \
        "bf16 kernel diverged from f32 reference beyond expected envelope"

    print("KERNEL_OK")
</pallas_src>

<mosaic_0001>
module attributes {stable_mosaic.version = 11 : i64} {
  func.func @_decoder_layer_kernel(%arg0: i32, %arg1: memref<8x32xf32, #tpu.memory_space<vmem>>, %arg2: memref<1x32xf32, #tpu.memory_space<vmem>>, %arg3: memref<1x32xf32, #tpu.memory_space<vmem>>, %arg4: memref<32x96xbf16, #tpu.memory_space<vmem>>, %arg5: memref<1x96xf32, #tpu.memory_space<vmem>>, %arg6: memref<32x32xbf16, #tpu.memory_space<vmem>>, %arg7: memref<1x32xf32, #tpu.memory_space<vmem>>, %arg8: memref<1x32xf32, #tpu.memory_space<vmem>>, %arg9: memref<1x32xf32, #tpu.memory_space<vmem>>, %arg10: memref<32x2048xbf16, #tpu.memory_space<vmem>>, %arg11: memref<1x2048xf32, #tpu.memory_space<vmem>>, %arg12: memref<2048x32xbf16, #tpu.memory_space<vmem>>, %arg13: memref<1x32xf32, #tpu.memory_space<vmem>>, %arg14: memref<8x32xf32, #tpu.memory_space<vmem>>, %arg15: memref<8x32xf32, #tpu.memory_space<vmem>>) attributes {dimension_semantics = [#tpu.dimension_semantics<parallel>], iteration_bounds = array<i64: 2>, scalar_prefetch = 0 : i64, scratch_operands = 1 : i64, tpu.core_type = #tpu.core_type<tc>, window_params = [{transform_indices = @transform_0, window_bounds = array<i64: 8, 32>}, {pipeline_mode = #tpu.pipeline_mode<synchronous>, transform_indices = @transform_1, window_bounds = array<i64: 1, 32>}, {pipeline_mode = #tpu.pipeline_mode<synchronous>, transform_indices = @transform_2, window_bounds = array<i64: 1, 32>}, {pipeline_mode = #tpu.pipeline_mode<synchronous>, transform_indices = @transform_3, window_bounds = array<i64: 32, 96>}, {pipeline_mode = #tpu.pipeline_mode<synchronous>, transform_indices = @transform_4, window_bounds = array<i64: 1, 96>}, {pipeline_mode = #tpu.pipeline_mode<synchronous>, transform_indices = @transform_5, window_bounds = array<i64: 32, 32>}, {pipeline_mode = #tpu.pipeline_mode<synchronous>, transform_indices = @transform_6, window_bounds = array<i64: 1, 32>}, {pipeline_mode = #tpu.pipeline_mode<synchronous>, transform_indices = @transform_7, window_bounds = array<i64: 1, 32>}, {pipeline_mode = #tpu.pipeline_mode<synchronous>, transform_indices = @transform_8, window_bounds = array<i64: 1, 32>}, {pipeline_mode = #tpu.pipeline_mode<synchronous>, transform_indices = @transform_9, window_bounds = array<i64: 32, 2048>}, {pipeline_mode = #tpu.pipeline_mode<synchronous>, transform_indices = @transform_10, window_bounds = array<i64: 1, 2048>}, {pipeline_mode = #tpu.pipeline_mode<synchronous>, transform_indices = @transform_11, window_bounds = array<i64: 2048, 32>}, {pipeline_mode = #tpu.pipeline_mode<synchronous>, transform_indices = @transform_12, window_bounds = array<i64: 1, 32>}, {transform_indices = @transform_13, window_bounds = array<i64: 8, 32>}]} {
    %c0 = arith.constant 0 : index
    %c0_0 = arith.constant 0 : index
    %0 = vector.load %arg1[%c0, %c0_0] : memref<8x32xf32, #tpu.memory_space<vmem>>, vector<8x32xf32>
    %c0_1 = arith.constant 0 : index
    %c0_2 = arith.constant 0 : index
    %1 = vector.load %arg2[%c0_1, %c0_2] : memref<1x32xf32, #tpu.memory_space<vmem>>, vector<1x32xf32>
    %c0_3 = arith.constant 0 : index
    %c0_4 = arith.constant 0 : index
    %2 = vector.load %arg3[%c0_3, %c0_4] : memref<1x32xf32, #tpu.memory_space<vmem>>, vector<1x32xf32>
    %cst = arith.constant dense<0.000000e+00> : vector<8xf32>
    %3 = vector.multi_reduction <add>, %0, %cst [1] : vector<8x32xf32> to vector<8xf32>
    %4 = vector.shape_cast %3 : vector<8xf32> to vector<8x1xf32>
    %cst_5 = arith.constant 3.200000e+01 : f32
    %5 = vector.broadcast %cst_5 : f32 to vector<8x1xf32>
    %6 = arith.divf %4, %5 : vector<8x1xf32>
    %7 = vector.broadcast %6 : vector<8x1xf32> to vector<8x32xf32>
    %8 = arith.subf %0, %7 : vector<8x32xf32>
    %9 = arith.mulf %8, %8 : vector<8x32xf32>
    %cst_6 = arith.constant dense<0.000000e+00> : vector<8xf32>
    %10 = vector.multi_reduction <add>, %9, %cst_6 [1] : vector<8x32xf32> to vector<8xf32>
    %11 = vector.shape_cast %10 : vector<8xf32> to vector<8x1xf32>
    %cst_7 = arith.constant 3.200000e+01 : f32
    %12 = vector.broadcast %cst_7 : f32 to vector<8x1xf32>
    %13 = arith.divf %11, %12 : vector<8x1xf32>
    %cst_8 = arith.constant 9.99999974E-6 : f32
    %14 = vector.broadcast %cst_8 : f32 to vector<8x1xf32>
    %15 = arith.addf %13, %14 : vector<8x1xf32>
    %16 = math.rsqrt %15 : vector<8x1xf32>
    %17 = vector.broadcast %16 : vector<8x1xf32> to vector<8x32xf32>
    %18 = arith.mulf %8, %17 : vector<8x32xf32>
    %19 = vector.broadcast %1 : vector<1x32xf32> to vector<8x32xf32>
    %20 = arith.mulf %18, %19 : vector<8x32xf32>
    %21 = vector.broadcast %2 : vector<1x32xf32> to vector<8x32xf32>
    %22 = arith.addf %20, %21 : vector<8x32xf32>
    %23 = arith.truncf %22 : vector<8x32xf32> to vector<8x32xbf16>
    %c0_9 = arith.constant 0 : index
    %c0_10 = arith.constant 0 : index
    %24 = vector.load %arg4[%c0_9, %c0_10] : memref<32x96xbf16, #tpu.memory_space<vmem>>, vector<32x96xbf16>
    %cst_11 = arith.constant dense<0.000000e+00> : vector<8x96xf32>
    %25 = tpu.matmul %23, %24, %cst_11 {dimension_numbers = #tpu.dot_dimension_numbers<[1], [0], [0], [1], [0, 0, 1, 1], [], []>} : vector<8x32xbf16>, vector<32x96xbf16>, vector<8x96xf32> -> vector<8x96xf32>
    %c0_12 = arith.constant 0 : index
    %c0_13 = arith.constant 0 : index
    %26 = vector.load %arg5[%c0_12, %c0_13] : memref<1x96xf32, #tpu.memory_space<vmem>>, vector<1x96xf32>
    %27 = vector.broadcast %26 : vector<1x96xf32> to vector<8x96xf32>
    %28 = arith.addf %25, %27 : vector<8x96xf32>
    %29 = vector.extract_strided_slice %28 {offsets = [0, 0], sizes = [8, 32], strides = [1, 1]} : vector<8x96xf32> to vector<8x32xf32>
    %cst_14 = arith.constant 0.353553385 : f32
    %30 = vector.broadcast %cst_14 : f32 to vector<8x32xf32>
    %31 = arith.mulf %29, %30 : vector<8x32xf32>
    %32 = arith.truncf %31 : vector<8x32xf32> to vector<8x32xbf16>
    %33 = vector.extract_strided_slice %28 {offsets = [0, 32], sizes = [8, 32], strides = [1, 1]} : vector<8x96xf32> to vector<8x32xf32>
    %34 = arith.truncf %33 : vector<8x32xf32> to vector<8x32xbf16>
    %35 = vector.extract_strided_slice %28 {offsets = [0, 64], sizes = [8, 32], strides = [1, 1]} : vector<8x96xf32> to vector<8x32xf32>
    %36 = arith.truncf %35 : vector<8x32xf32> to vector<8x32xbf16>
    %37 = vector.extract_strided_slice %32 {offsets = [0, 0], sizes = [8, 8], strides = [1, 1]} : vector<8x32xbf16> to vector<8x8xbf16>
    %38 = vector.extract_strided_slice %34 {offsets = [0, 0], sizes = [8, 8], strides = [1, 1]} : vector<8x32xbf16> to vector<8x8xbf16>
    %39 = vector.extract_strided_slice %36 {offsets = [0, 0], sizes = [8, 8], strides = [1, 1]} : vector<8x32xbf16> to vector<8x8xbf16>
    %cst_15 = arith.constant dense<0.000000e+00> : vector<8x8xf32>
    %40 = tpu.matmul %37, %38, %cst_15 {dimension_numbers = #tpu.dot_dimension_numbers<[1], [1], [0], [0], [0, 0, 1, 0], [], []>} : vector<8x8xbf16>, vector<8x8xbf16>, vector<8x8xf32> -> vector<8x8xf32>
    %cst_16 = arith.constant dense<0xFF800000> : vector<8xf32>
    %41 = vector.multi_reduction <maximumf>, %40, %cst_16 [1] : vector<8x8xf32> to vector<8xf32>
    %42 = vector.shape_cast %41 : vector<8xf32> to vector<8x1xf32>
    %43 = vector.broadcast %42 : vector<8x1xf32> to vector<8x8xf32>
    %44 = arith.subf %40, %43 : vector<8x8xf32>
    %45 = math.exp %44 : vector<8x8xf32>
    %cst_17 = arith.constant dense<0.000000e+00> : vector<8xf32>
    %46 = vector.multi_reduction <add>, %45, %cst_17 [1] : vector<8x8xf32> to vector<8xf32>
    %47 = vector.shape_cast %46 : vector<8xf32> to vector<8x1xf32>
    %48 = tpu.reciprocal %47 {approx = true} : vector<8x1xf32> -> vector<8x1xf32>
    %49 = vector.broadcast %48 : vector<8x1xf32> to vector<8x8xf32>
    %50 = arith.mulf %45, %49 : vector<8x8xf32>
    %51 = arith.truncf %50 : vector<8x8xf32> to vector<8x8xbf16>
    %cst_18 = arith.constant dense<0.000000e+00> : vector<8x8xf32>
    %52 = tpu.matmul %51, %39, %cst_18 {dimension_numbers = #tpu.dot_dimension_numbers<[1], [0], [0], [1], [0, 0, 1, 1], [], []>} : vector<8x8xbf16>, vector<8x8xbf16>, vector<8x8xf32> -> vector<8x8xf32>
    %c0_19 = arith.constant 0 : index
    %c0_20 = arith.constant 0 : index
    %53 = vector.load %arg15[%c0_19, %c0_20] : memref<8x32xf32, #tpu.memory_space<vmem>>, vector<8x8xf32>
    tpu.vector_store %arg15[%c0_19, %c0_20], %52 {strides = array<i32>} : memref<8x32xf32, #tpu.memory_space<vmem>>, vector<8x8xf32>,
    %54 = vector.extract_strided_slice %32 {offsets = [0, 8], sizes = [8, 8], strides = [1, 1]} : vector<8x32xbf16> to vector<8x8xbf16>
    %55 = vector.extract_strided_slice %34 {offsets = [0, 8], sizes = [8, 8], strides = [1, 1]} : vector<8x32xbf16> to vector<8x8xbf16>
    %56 = vector.extract_strided_slice %36 {offsets = [0, 8], sizes = [8, 8], strides = [1, 1]} : vector<8x32xbf16> to vector<8x8xbf16>
    %cst_21 = arith.constant dense<0.000000e+00> : vector<8x8xf32>
    %57 = tpu.matmul %54, %55, %cst_21 {dimension_numbers = #tpu.dot_dimension_numbers<[1], [1], [0], [0], [0, 0, 1, 0], [], []>} : vector<8x8xbf16>, vector<8x8xbf16>, vector<8x8xf32> -> vector<8x8xf32>
    %cst_22 = arith.constant dense<0xFF800000> : vector<8xf32>
    %58 = vector.multi_reduction <maximumf>, %57, %cst_22 [1] : vector<8x8xf32> to vector<8xf32>
    %59 = vector.shape_cast %58 : vector<8xf32> to vector<8x1xf32>
    %60 = vector.broadcast %59 : vector<8x1xf32> to vector<8x8xf32>
    %61 = arith.subf %57, %60 : vector<8x8xf32>
    %62 = math.exp %61 : vector<8x8xf32>
    %cst_23 = arith.constant dense<0.000000e+00> : vector<8xf32>
    %63 = vector.multi_reduction <add>, %62, %cst_23 [1] : vector<8x8xf32> to vector<8xf32>
    %64 = vector.shape_cast %63 : vector<8xf32> to vector<8x1xf32>
    %65 = tpu.reciprocal %64 {approx = true} : vector<8x1xf32> -> vector<8x1xf32>
    %66 = vector.broadcast %65 : vector<8x1xf32> to vector<8x8xf32>
    %67 = arith.mulf %62, %66 : vector<8x8xf32>
    %68 = arith.truncf %67 : vector<8x8xf32> to vector<8x8xbf16>
    %cst_24 = arith.constant dense<0.000000e+00> : vector<8x8xf32>
    %69 = tpu.matmul %68, %56, %cst_24 {dimension_numbers = #tpu.dot_dimension_numbers<[1], [0], [0], [1], [0, 0, 1, 1], [], []>} : vector<8x8xbf16>, vector<8x8xbf16>, vector<8x8xf32> -> vector<8x8xf32>
    %c0_25 = arith.constant 0 : index
    %c8 = arith.constant 8 : index
    %70 = vector.load %arg15[%c0_25, %c8] : memref<8x32xf32, #tpu.memory_space<vmem>>, vector<8x8xf32>
    tpu.vector_store %arg15[%c0_25, %c8], %69 {strides = array<i32>} : memref<8x32xf32, #tpu.memory_space<vmem>>, vector<8x8xf32>,
    %71 = vector.extract_strided_slice %32 {offsets = [0, 16], sizes = [8, 8], strides = [1, 1]} : vector<8x32xbf16> to vector<8x8xbf16>
    %72 = vector.extract_strided_slice %34 {offsets = [0, 16], sizes = [8, 8], strides = [1, 1]} : vector<8x32xbf16> to vector<8x8xbf16>
    %73 = vector.extract_strided_slice %36 {offsets = [0, 16], sizes = [8, 8], strides = [1, 1]} : vector<8x32xbf16> to vector<8x8xbf16>
    %cst_26 = arith.constant dense<0.000000e+00> : vector<8x8xf32>
    %74 = tpu.matmul %71, %72, %cst_26 {dimension_numbers = #tpu.dot_dimension_numbers<[1], [1], [0], [0], [0, 0, 1, 0], [], []>} : vector<8x8xbf16>, vector<8x8xbf16>, vector<8x8xf32> -> vector<8x8xf32>
    %cst_27 = arith.constant dense<0xFF800000> : vector<8xf32>
    %75 = vector.multi_reduction <maximumf>, %74, %cst_27 [1] : vector<8x8xf32> to vector<8xf32>
    %76 = vector.shape_cast %75 : vector<8xf32> to vector<8x1xf32>
    %77 = vector.broadcast %76 : vector<8x1xf32> to vector<8x8xf32>
    %78 = arith.subf %74, %77 : vector<8x8xf32>
    %79 = math.exp %78 : vector<8x8xf32>
    %cst_28 = arith.constant dense<0.000000e+00> : vector<8xf32>
    %80 = vector.multi_reduction <add>, %79, %cst_28 [1] : vector<8x8xf32> to vector<8xf32>
    %81 = vector.shape_cast %80 : vector<8xf32> to vector<8x1xf32>
    %82 = tpu.reciprocal %81 {approx = true} : vector<8x1xf32> -> vector<8x1xf32>
    %83 = vector.broadcast %82 : vector<8x1xf32> to vector<8x8xf32>
    %84 = arith.mulf %79, %83 : vector<8x8xf32>
    %85 = arith.truncf %84 : vector<8x8xf32> to vector<8x8xbf16>
    %cst_29 = arith.constant dense<0.000000e+00> : vector<8x8xf32>
    %86 = tpu.matmul %85, %73, %cst_29 {dimension_numbers = #tpu.dot_dimension_numbers<[1], [0], [0], [1], [0, 0, 1, 1], [], []>} : vector<8x8xbf16>, vector<8x8xbf16>, vector<8x8xf32> -> vector<8x8xf32>
    %c0_30 = arith.constant 0 : index
    %c16 = arith.constant 16 : index
    %87 = vector.load %arg15[%c0_30, %c16] : memref<8x32xf32, #tpu.memory_space<vmem>>, vector<8x8xf32>
    tpu.vector_store %arg15[%c0_30, %c16], %86 {strides = array<i32>} : memref<8x32xf32, #tpu.memory_space<vmem>>, vector<8x8xf32>,
    %88 = vector.extract_strided_slice %32 {offsets = [0, 24], sizes = [8, 8], strides = [1, 1]} : vector<8x32xbf16> to vector<8x8xbf16>
    %89 = vector.extract_strided_slice %34 {offsets = [0, 24], sizes = [8, 8], strides = [1, 1]} : vector<8x32xbf16> to vector<8x8xbf16>
    %90 = vector.extract_strided_slice %36 {offsets = [0, 24], sizes = [8, 8], strides = [1, 1]} : vector<8x32xbf16> to vector<8x8xbf16>
    %cst_31 = arith.constant dense<0.000000e+00> : vector<8x8xf32>
    %91 = tpu.matmul %88, %89, %cst_31 {dimension_numbers = #tpu.dot_dimension_numbers<[1], [1], [0], [0], [0, 0, 1, 0], [], []>} : vector<8x8xbf16>, vector<8x8xbf16>, vector<8x8xf32> -> vector<8x8xf32>
    %cst_32 = arith.constant dense<0xFF800000> : vector<8xf32>
    %92 = vector.multi_reduction <maximumf>, %91, %cst_32 [1] : vector<8x8xf32> to vector<8xf32>
    %93 = vector.shape_cast %92 : vector<8xf32> to vector<8x1xf32>
    %94 = vector.broadcast %93 : vector<8x1xf32> to vector<8x8xf32>
    %95 = arith.subf %91, %94 : vector<8x8xf32>
    %96 = math.exp %95 : vector<8x8xf32>
    %cst_33 = arith.constant dense<0.000000e+00> : vector<8xf32>
    %97 = vector.multi_reduction <add>, %96, %cst_33 [1] : vector<8x8xf32> to vector<8xf32>
    %98 = vector.shape_cast %97 : vector<8xf32> to vector<8x1xf32>
    %99 = tpu.reciprocal %98 {approx = true} : vector<8x1xf32> -> vector<8x1xf32>
    %100 = vector.broadcast %99 : vector<8x1xf32> to vector<8x8xf32>
    %101 = arith.mulf %96, %100 : vector<8x8xf32>
    %102 = arith.truncf %101 : vector<8x8xf32> to vector<8x8xbf16>
    %cst_34 = arith.constant dense<0.000000e+00> : vector<8x8xf32>
    %103 = tpu.matmul %102, %90, %cst_34 {dimension_numbers = #tpu.dot_dimension_numbers<[1], [0], [0], [1], [0, 0, 1, 1], [], []>} : vector<8x8xbf16>, vector<8x8xbf16>, vector<8x8xf32> -> vector<8x8xf32>
    %c0_35 = arith.constant 0 : index
    %c24 = arith.constant 24 : index
    %104 = vector.load %arg15[%c0_35, %c24] : memref<8x32xf32, #tpu.memory_space<vmem>>, vector<8x8xf32>
    tpu.vector_store %arg15[%c0_35, %c24], %103 {strides = array<i32>} : memref<8x32xf32, #tpu.memory_space<vmem>>, vector<8x8xf32>,
    %c0_36 = arith.constant 0 : index
    %c0_37 = arith.constant 0 : index
    %105 = vector.load %arg15[%c0_36, %c0_37] : memref<8x32xf32, #tpu.memory_space<vmem>>, vector<8x32xf32>
    %106 = arith.truncf %105 : vector<8x32xf32> to vector<8x32xbf16>
    %c0_38 = arith.constant 0 : index
    %c0_39 = arith.constant 0 : index
    %107 = vector.load %arg6[%c0_38, %c0_39] : memref<32x32xbf16, #tpu.memory_space<vmem>>, vector<32x32xbf16>
    %cst_40 = arith.constant dense<0.000000e+00> : vector<8x32xf32>
    %108 = tpu.matmul %106, %107, %cst_40 {dimension_numbers = #tpu.dot_dimension_numbers<[1], [0], [0], [1], [0, 0, 1, 1], [], []>} : vector<8x32xbf16>, vector<32x32xbf16>, vector<8x32xf32> -> vector<8x32xf32>
    %c0_41 = arith.constant 0 : index
    %c0_42 = arith.constant 0 : index
    %109 = vector.load %arg7[%c0_41, %c0_42] : memref<1x32xf32, #tpu.memory_space<vmem>>, vector<1x32xf32>
    %110 = vector.broadcast %109 : vector<1x32xf32> to vector<8x32xf32>
    %111 = arith.addf %108, %110 : vector<8x32xf32>
    %112 = arith.addf %111, %111 : vector<8x32xf32>
    %c0_43 = arith.constant 0 : index
    %c0_44 = arith.constant 0 : index
    %113 = vector.load %arg8[%c0_43, %c0_44] : memref<1x32xf32, #tpu.memory_space<vmem>>, vector<1x32xf32>
    %c0_45 = arith.constant 0 : index
    %c0_46 = arith.constant 0 : index
    %114 = vector.load %arg9[%c0_45, %c0_46] : memref<1x32xf32, #tpu.memory_space<vmem>>, vector<1x32xf32>
    %cst_47 = arith.constant dense<0.000000e+00> : vector<8xf32>
    %115 = vector.multi_reduction <add>, %112, %cst_47 [1] : vector<8x32xf32> to vector<8xf32>
    %116 = vector.shape_cast %115 : vector<8xf32> to vector<8x1xf32>
    %cst_48 = arith.constant 3.200000e+01 : f32
    %117 = vector.broadcast %cst_48 : f32 to vector<8x1xf32>
    %118 = arith.divf %116, %117 : vector<8x1xf32>
    %119 = vector.broadcast %118 : vector<8x1xf32> to vector<8x32xf32>
    %120 = arith.subf %112, %119 : vector<8x32xf32>
    %121 = arith.mulf %120, %120 : vector<8x32xf32>
    %cst_49 = arith.constant dense<0.000000e+00> : vector<8xf32>
    %122 = vector.multi_reduction <add>, %121, %cst_49 [1] : vector<8x32xf32> to vector<8xf32>
    %123 = vector.shape_cast %122 : vector<8xf32> to vector<8x1xf32>
    %cst_50 = arith.constant 3.200000e+01 : f32
    %124 = vector.broadcast %cst_50 : f32 to vector<8x1xf32>
    %125 = arith.divf %123, %124 : vector<8x1xf32>
    %cst_51 = arith.constant 9.99999974E-6 : f32
    %126 = vector.broadcast %cst_51 : f32 to vector<8x1xf32>
    %127 = arith.addf %125, %126 : vector<8x1xf32>
    %128 = math.rsqrt %127 : vector<8x1xf32>
    %129 = vector.broadcast %128 : vector<8x1xf32> to vector<8x32xf32>
    %130 = arith.mulf %120, %129 : vector<8x32xf32>
    %131 = vector.broadcast %113 : vector<1x32xf32> to vector<8x32xf32>
    %132 = arith.mulf %130, %131 : vector<8x32xf32>
    %133 = vector.broadcast %114 : vector<1x32xf32> to vector<8x32xf32>
    %134 = arith.addf %132, %133 : vector<8x32xf32>
    %135 = arith.truncf %134 : vector<8x32xf32> to vector<8x32xbf16>
    %c0_52 = arith.constant 0 : index
    %c0_53 = arith.constant 0 : index
    %136 = vector.load %arg10[%c0_52, %c0_53] : memref<32x2048xbf16, #tpu.memory_space<vmem>>, vector<32x2048xbf16>
    %cst_54 = arith.constant dense<0.000000e+00> : vector<8x2048xf32>
    %137 = tpu.matmul %135, %136, %cst_54 {dimension_numbers = #tpu.dot_dimension_numbers<[1], [0], [0], [1], [0, 0, 1, 1], [], []>} : vector<8x32xbf16>, vector<32x2048xbf16>, vector<8x2048xf32> -> vector<8x2048xf32>
    %c0_55 = arith.constant 0 : index
    %c0_56 = arith.constant 0 : index
    %138 = vector.load %arg11[%c0_55, %c0_56] : memref<1x2048xf32, #tpu.memory_space<vmem>>, vector<1x2048xf32>
    %139 = vector.broadcast %138 : vector<1x2048xf32> to vector<8x2048xf32>
    %140 = arith.addf %137, %139 : vector<8x2048xf32>
    %cst_57 = arith.constant 0.000000e+00 : f32
    %141 = vector.broadcast %cst_57 : f32 to vector<8x2048xf32>
    %142 = arith.maximumf %140, %141 : vector<8x2048xf32>
    %143 = arith.truncf %142 : vector<8x2048xf32> to vector<8x2048xbf16>
    %c0_58 = arith.constant 0 : index
    %c0_59 = arith.constant 0 : index
    %144 = vector.load %arg12[%c0_58, %c0_59] : memref<2048x32xbf16, #tpu.memory_space<vmem>>, vector<2048x32xbf16>
    %cst_60 = arith.constant dense<0.000000e+00> : vector<8x32xf32>
    %145 = tpu.matmul %143, %144, %cst_60 {dimension_numbers = #tpu.dot_dimension_numbers<[1], [0], [0], [1], [0, 0, 1, 1], [], []>} : vector<8x2048xbf16>, vector<2048x32xbf16>, vector<8x32xf32> -> vector<8x32xf32>
    %c0_61 = arith.constant 0 : index
    %c0_62 = arith.constant 0 : index
    %146 = vector.load %arg13[%c0_61, %c0_62] : memref<1x32xf32, #tpu.memory_space<vmem>>, vector<1x32xf32>
    %147 = vector.broadcast %146 : vector<1x32xf32> to vector<8x32xf32>
    %148 = arith.addf %145, %147 : vector<8x32xf32>
    %149 = arith.addf %148, %148 : vector<8x32xf32>
    %c0_63 = arith.constant 0 : index
    %c0_64 = arith.constant 0 : index
    %150 = vector.load %arg14[%c0_63, %c0_64] : memref<8x32xf32, #tpu.memory_space<vmem>>, vector<8x32xf32>
    tpu.vector_store %arg14[%c0_63, %c0_64], %149 {strides = array<i32>} : memref<8x32xf32, #tpu.memory_space<vmem>>, vector<8x32xf32>,
    return
  }
  func.func @transform_0(%arg0: i32) -> (i32, i32) {
    %c0_i32 = arith.constant 0 : i32
    %c0_i32_0 = arith.constant 0 : i32
    return %arg0, %c0_i32 : i32, i32
  }
  func.func @transform_1(%arg0: i32) -> (i32, i32) {
    %c0_i32 = arith.constant 0 : i32
    %c0_i32_0 = arith.constant 0 : i32
    %c0_i32_1 = arith.constant 0 : i32
    return %c0_i32, %c0_i32_0 : i32, i32
  }
  func.func @transform_2(%arg0: i32) -> (i32, i32) {
    %c0_i32 = arith.constant 0 : i32
    %c0_i32_0 = arith.constant 0 : i32
    %c0_i32_1 = arith.constant 0 : i32
    return %c0_i32, %c0_i32_0 : i32, i32
  }
  func.func @transform_3(%arg0: i32) -> (i32, i32) {
    %c0_i32 = arith.constant 0 : i32
    %c0_i32_0 = arith.constant 0 : i32
    %c0_i32_1 = arith.constant 0 : i32
    return %c0_i32, %c0_i32_0 : i32, i32
  }
  func.func @transform_4(%arg0: i32) -> (i32, i32) {
    %c0_i32 = arith.constant 0 : i32
    %c0_i32_0 = arith.constant 0 : i32
    %c0_i32_1 = arith.constant 0 : i32
    return %c0_i32, %c0_i32_0 : i32, i32
  }
  func.func @transform_5(%arg0: i32) -> (i32, i32) {
    %c0_i32 = arith.constant 0 : i32
    %c0_i32_0 = arith.constant 0 : i32
    %c0_i32_1 = arith.constant 0 : i32
    return %c0_i32, %c0_i32_0 : i32, i32
  }
  func.func @transform_6(%arg0: i32) -> (i32, i32) {
    %c0_i32 = arith.constant 0 : i32
    %c0_i32_0 = arith.constant 0 : i32
    %c0_i32_1 = arith.constant 0 : i32
    return %c0_i32, %c0_i32_0 : i32, i32
  }
  func.func @transform_7(%arg0: i32) -> (i32, i32) {
    %c0_i32 = arith.constant 0 : i32
    %c0_i32_0 = arith.constant 0 : i32
    %c0_i32_1 = arith.constant 0 : i32
    return %c0_i32, %c0_i32_0 : i32, i32
  }
  func.func @transform_8(%arg0: i32) -> (i32, i32) {
    %c0_i32 = arith.constant 0 : i32
    %c0_i32_0 = arith.constant 0 : i32
    %c0_i32_1 = arith.constant 0 : i32
    return %c0_i32, %c0_i32_0 : i32, i32
  }
  func.func @transform_9(%arg0: i32) -> (i32, i32) {
    %c0_i32 = arith.constant 0 : i32
    %c0_i32_0 = arith.constant 0 : i32
    %c0_i32_1 = arith.constant 0 : i32
    return %c0_i32, %c0_i32_0 : i32, i32
  }
  func.func @transform_10(%arg0: i32) -> (i32, i32) {
    %c0_i32 = arith.constant 0 : i32
    %c0_i32_0 = arith.constant 0 : i32
    %c0_i32_1 = arith.constant 0 : i32
    return %c0_i32, %c0_i32_0 : i32, i32
  }
  func.func @transform_11(%arg0: i32) -> (i32, i32) {
    %c0_i32 = arith.constant 0 : i32
    %c0_i32_0 = arith.constant 0 : i32
    %c0_i32_1 = arith.constant 0 : i32
    return %c0_i32, %c0_i32_0 : i32, i32
  }
  func.func @transform_12(%arg0: i32) -> (i32, i32) {
    %c0_i32 = arith.constant 0 : i32
    %c0_i32_0 = arith.constant 0 : i32
    %c0_i32_1 = arith.constant 0 : i32
    return %c0_i32, %c0_i32_0 : i32, i32
  }
  func.func @transform_13(%arg0: i32) -> (i32, i32) {
    %c0_i32 = arith.constant 0 : i32
    %c0_i32_0 = arith.constant 0 : i32
    return %arg0, %c0_i32 : i32, i32
  }
}

module attributes {stable_mosaic.version = 11 : i64} {
  func.func @_decoder_layer_kernel(%arg0: i32, %arg1: memref<8x32xf32, #tpu.memory_space<vmem>>, %arg2: memref<1x32xf32, #tpu.memory_space<vmem>>, %arg3: memref<1x32xf32, #tpu.memory_space<vmem>>, %arg4: memref<32x96xbf16, #tpu.memory_space<vmem>>, %arg5: memref<1x96xf32, #tpu.memory_space<vmem>>, %arg6: memref<32x32xbf16, #tpu.memory_space<vmem>>, %arg7: memref<1x32xf32, #tpu.memory_space<vmem>>, %arg8: memref<1x32xf32, #tpu.memory_space<vmem>>, %arg9: memref<1x32xf32, #tpu.memory_space<vmem>>, %arg10: memref<32x2048xbf16, #tpu.memory_space<vmem>>, %arg11: memref<1x2048xf32, #tpu.memory_space<vmem>>, %arg12: memref<2048x32xbf16, #tpu.memory_space<vmem>>, %arg13: memref<1x32xf32, #tpu.memory_space<vmem>>, %arg14: memref<8x32xf32, #tpu.memory_space<vmem>>, %arg15: memref<8x32xf32, #tpu.memory_space<vmem>>) attributes {dimension_semantics = [#tpu.dimension_semantics<parallel>], iteration_bounds = array<i64: 2>, scalar_prefetch = 0 : i64, scratch_operands = 1 : i64, tpu.core_type = #tpu.core_type<tc>, window_params = [{transform_indices = @transform_0, window_bounds = array<i64: 8, 32>}, {pipeline_mode = #tpu.pipeline_mode<synchronous>, transform_indices = @transform_1, window_bounds = array<i64: 1, 32>}, {pipeline_mode = #tpu.pipeline_mode<synchronous>, transform_indices = @transform_2, window_bounds = array<i64: 1, 32>}, {pipeline_mode = #tpu.pipeline_mode<synchronous>, transform_indices = @transform_3, window_bounds = array<i64: 32, 96>}, {pipeline_mode = #tpu.pipeline_mode<synchronous>, transform_indices = @transform_4, window_bounds = array<i64: 1, 96>}, {pipeline_mode = #tpu.pipeline_mode<synchronous>, transform_indices = @transform_5, window_bounds = array<i64: 32, 32>}, {pipeline_mode = #tpu.pipeline_mode<synchronous>, transform_indices = @transform_6, window_bounds = array<i64: 1, 32>}, {pipeline_mode = #tpu.pipeline_mode<synchronous>, transform_indices = @transform_7, window_bounds = array<i64: 1, 32>}, {pipeline_mode = #tpu.pipeline_mode<synchronous>, transform_indices = @transform_8, window_bounds = array<i64: 1, 32>}, {pipeline_mode = #tpu.pipeline_mode<synchronous>, transform_indices = @transform_9, window_bounds = array<i64: 32, 2048>}, {pipeline_mode = #tpu.pipeline_mode<synchronous>, transform_indices = @transform_10, window_bounds = array<i64: 1, 2048>}, {pipeline_mode = #tpu.pipeline_mode<synchronous>, transform_indices = @transform_11, window_bounds = array<i64: 2048, 32>}, {pipeline_mode = #tpu.pipeline_mode<synchronous>, transform_indices = @transform_12, window_bounds = array<i64: 1, 32>}, {transform_indices = @transform_13, window_bounds = array<i64: 8, 32>}]} {
    %c0 = arith.constant 0 : index
    %c0_0 = arith.constant 0 : index
    %0 = vector.load %arg1[%c0, %c0_0] : memref<8x32xf32, #tpu.memory_space<vmem>>, vector<8x32xf32>
    %c0_1 = arith.constant 0 : index
    %c0_2 = arith.constant 0 : index
    %1 = vector.load %arg2[%c0_1, %c0_2] : memref<1x32xf32, #tpu.memory_space<vmem>>, vector<1x32xf32>
    %c0_3 = arith.constant 0 : index
    %c0_4 = arith.constant 0 : index
    %2 = vector.load %arg3[%c0_3, %c0_4] : memref<1x32xf32, #tpu.memory_space<vmem>>, vector<1x32xf32>
    %cst = arith.constant dense<0.000000e+00> : vector<8xf32>
    %3 = vector.multi_reduction <add>, %0, %cst [1] : vector<8x32xf32> to vector<8xf32>
    %4 = vector.shape_cast %3 : vector<8xf32> to vector<8x1xf32>
    %cst_5 = arith.constant 3.200000e+01 : f32
    %5 = vector.broadcast %cst_5 : f32 to vector<8x1xf32>
    %6 = arith.divf %4, %5 : vector<8x1xf32>
    %7 = vector.broadcast %6 : vector<8x1xf32> to vector<8x32xf32>
    %8 = arith.subf %0, %7 : vector<8x32xf32>
    %9 = arith.mulf %8, %8 : vector<8x32xf32>
    %cst_6 = arith.constant dense<0.000000e+00> : vector<8xf32>
    %10 = vector.multi_reduction <add>, %9, %cst_6 [1] : vector<8x32xf32> to vector<8xf32>
    %11 = vector.shape_cast %10 : vector<8xf32> to vector<8x1xf32>
    %cst_7 = arith.constant 3.200000e+01 : f32
    %12 = vector.broadcast %cst_7 : f32 to vector<8x1xf32>
    %13 = arith.divf %11, %12 : vector<8x1xf32>
    %cst_8 = arith.constant 9.99999974E-6 : f32
    %14 = vector.broadcast %cst_8 : f32 to vector<8x1xf32>
    %15 = arith.addf %13, %14 : vector<8x1xf32>
    %16 = math.rsqrt %15 : vector<8x1xf32>
    %17 = vector.broadcast %16 : vector<8x1xf32> to vector<8x32xf32>
    %18 = arith.mulf %8, %17 : vector<8x32xf32>
    %19 = vector.broadcast %1 : vector<1x32xf32> to vector<8x32xf32>
    %20 = arith.mulf %18, %19 : vector<8x32xf32>
    %21 = vector.broadcast %2 : vector<1x32xf32> to vector<8x32xf32>
    %22 = arith.addf %20, %21 : vector<8x32xf32>
    %23 = arith.truncf %22 : vector<8x32xf32> to vector<8x32xbf16>
    %c0_9 = arith.constant 0 : index
    %c0_10 = arith.constant 0 : index
    %24 = vector.load %arg4[%c0_9, %c0_10] : memref<32x96xbf16, #tpu.memory_space<vmem>>, vector<32x96xbf16>
    %cst_11 = arith.constant dense<0.000000e+00> : vector<8x96xf32>
    %25 = tpu.matmul %23, %24, %cst_11 {dimension_numbers = #tpu.dot_dimension_numbers<[1], [0], [0], [1], [0, 0, 1, 1], [], []>} : vector<8x32xbf16>, vector<32x96xbf16>, vector<8x96xf32> -> vector<8x96xf32>
    %c0_12 = arith.constant 0 : index
    %c0_13 = arith.constant 0 : index
    %26 = vector.load %arg5[%c0_12, %c0_13] : memref<1x96xf32, #tpu.memory_space<vmem>>, vector<1x96xf32>
    %27 = vector.broadcast %26 : vector<1x96xf32> to vector<8x96xf32>
    %28 = arith.addf %25, %27 : vector<8x96xf32>
    %29 = vector.extract_strided_slice %28 {offsets = [0, 0], sizes = [8, 32], strides = [1, 1]} : vector<8x96xf32> to vector<8x32xf32>
    %cst_14 = arith.constant 0.353553385 : f32
    %30 = vector.broadcast %cst_14 : f32 to vector<8x32xf32>
    %31 = arith.mulf %29, %30 : vector<8x32xf32>
    %32 = arith.truncf %31 : vector<8x32xf32> to vector<8x32xbf16>
    %33 = vector.extract_strided_slice %28 {offsets = [0, 32], sizes = [8, 32], strides = [1, 1]} : vector<8x96xf32> to vector<8x32xf32>
    %34 = arith.truncf %33 : vector<8x32xf32> to vector<8x32xbf16>
    %35 = vector.extract_strided_slice %28 {offsets = [0, 64], sizes = [8, 32], strides = [1, 1]} : vector<8x96xf32> to vector<8x32xf32>
    %36 = arith.truncf %35 : vector<8x32xf32> to vector<8x32xbf16>
    %37 = vector.extract_strided_slice %32 {offsets = [0, 0], sizes = [8, 8], strides = [1, 1]} : vector<8x32xbf16> to vector<8x8xbf16>
    %38 = vector.extract_strided_slice %34 {offsets = [0, 0], sizes = [8, 8], strides = [1, 1]} : vector<8x32xbf16> to vector<8x8xbf16>
    %39 = vector.extract_strided_slice %36 {offsets = [0, 0], sizes = [8, 8], strides = [1, 1]} : vector<8x32xbf16> to vector<8x8xbf16>
    %cst_15 = arith.constant dense<0.000000e+00> : vector<8x8xf32>
    %40 = tpu.matmul %37, %38, %cst_15 {dimension_numbers = #tpu.dot_dimension_numbers<[1], [1], [0], [0], [0, 0, 1, 0], [], []>} : vector<8x8xbf16>, vector<8x8xbf16>, vector<8x8xf32> -> vector<8x8xf32>
    %cst_16 = arith.constant dense<0xFF800000> : vector<8xf32>
    %41 = vector.multi_reduction <maximumf>, %40, %cst_16 [1] : vector<8x8xf32> to vector<8xf32>
    %42 = vector.shape_cast %41 : vector<8xf32> to vector<8x1xf32>
    %43 = vector.broadcast %42 : vector<8x1xf32> to vector<8x8xf32>
    %44 = arith.subf %40, %43 : vector<8x8xf32>
    %45 = math.exp %44 : vector<8x8xf32>
    %cst_17 = arith.constant dense<0.000000e+00> : vector<8xf32>
    %46 = vector.multi_reduction <add>, %45, %cst_17 [1] : vector<8x8xf32> to vector<8xf32>
    %47 = vector.shape_cast %46 : vector<8xf32> to vector<8x1xf32>
    %48 = tpu.reciprocal %47 {approx = true} : vector<8x1xf32> -> vector<8x1xf32>
    %49 = vector.broadcast %48 : vector<8x1xf32> to vector<8x8xf32>
    %50 = arith.mulf %45, %49 : vector<8x8xf32>
    %51 = arith.truncf %50 : vector<8x8xf32> to vector<8x8xbf16>
    %cst_18 = arith.constant dense<0.000000e+00> : vector<8x8xf32>
    %52 = tpu.matmul %51, %39, %cst_18 {dimension_numbers = #tpu.dot_dimension_numbers<[1], [0], [0], [1], [0, 0, 1, 1], [], []>} : vector<8x8xbf16>, vector<8x8xbf16>, vector<8x8xf32> -> vector<8x8xf32>
    %c0_19 = arith.constant 0 : index
    %c0_20 = arith.constant 0 : index
    %53 = vector.load %arg15[%c0_19, %c0_20] : memref<8x32xf32, #tpu.memory_space<vmem>>, vector<8x8xf32>
    tpu.vector_store %arg15[%c0_19, %c0_20], %52 {strides = array<i32>} : memref<8x32xf32, #tpu.memory_space<vmem>>, vector<8x8xf32>,
    %54 = vector.extract_strided_slice %32 {offsets = [0, 8], sizes = [8, 8], strides = [1, 1]} : vector<8x32xbf16> to vector<8x8xbf16>
    %55 = vector.extract_strided_slice %34 {offsets = [0, 8], sizes = [8, 8], strides = [1, 1]} : vector<8x32xbf16> to vector<8x8xbf16>
    %56 = vector.extract_strided_slice %36 {offsets = [0, 8], sizes = [8, 8], strides = [1, 1]} : vector<8x32xbf16> to vector<8x8xbf16>
    %cst_21 = arith.constant dense<0.000000e+00> : vector<8x8xf32>
    %57 = tpu.matmul %54, %55, %cst_21 {dimension_numbers = #tpu.dot_dimension_numbers<[1], [1], [0], [0], [0, 0, 1, 0], [], []>} : vector<8x8xbf16>, vector<8x8xbf16>, vector<8x8xf32> -> vector<8x8xf32>
    %cst_22 = arith.constant dense<0xFF800000> : vector<8xf32>
    %58 = vector.multi_reduction <maximumf>, %57, %cst_22 [1] : vector<8x8xf32> to vector<8xf32>
    %59 = vector.shape_cast %58 : vector<8xf32> to vector<8x1xf32>
    %60 = vector.broadcast %59 : vector<8x1xf32> to vector<8x8xf32>
    %61 = arith.subf %57, %60 : vector<8x8xf32>
    %62 = math.exp %61 : vector<8x8xf32>
    %cst_23 = arith.constant dense<0.000000e+00> : vector<8xf32>
    %63 = vector.multi_reduction <add>, %62, %cst_23 [1] : vector<8x8xf32> to vector<8xf32>
    %64 = vector.shape_cast %63 : vector<8xf32> to vector<8x1xf32>
    %65 = tpu.reciprocal %64 {approx = true} : vector<8x1xf32> -> vector<8x1xf32>
    %66 = vector.broadcast %65 : vector<8x1xf32> to vector<8x8xf32>
    %67 = arith.mulf %62, %66 : vector<8x8xf32>
    %68 = arith.truncf %67 : vector<8x8xf32> to vector<8x8xbf16>
    %cst_24 = arith.constant dense<0.000000e+00> : vector<8x8xf32>
    %69 = tpu.matmul %68, %56, %cst_24 {dimension_numbers = #tpu.dot_dimension_numbers<[1], [0], [0], [1], [0, 0, 1, 1], [], []>} : vector<8x8xbf16>, vector<8x8xbf16>, vector<8x8xf32> -> vector<8x8xf32>
    %c0_25 = arith.constant 0 : index
    %c8 = arith.constant 8 : index
    %70 = vector.load %arg15[%c0_25, %c8] : memref<8x32xf32, #tpu.memory_space<vmem>>, vector<8x8xf32>
    tpu.vector_store %arg15[%c0_25, %c8], %69 {strides = array<i32>} : memref<8x32xf32, #tpu.memory_space<vmem>>, vector<8x8xf32>,
    %71 = vector.extract_strided_slice %32 {offsets = [0, 16], sizes = [8, 8], strides = [1, 1]} : vector<8x32xbf16> to vector<8x8xbf16>
    %72 = vector.extract_strided_slice %34 {offsets = [0, 16], sizes = [8, 8], strides = [1, 1]} : vector<8x32xbf16> to vector<8x8xbf16>
    %73 = vector.extract_strided_slice %36 {offsets = [0, 16], sizes = [8, 8], strides = [1, 1]} : vector<8x32xbf16> to vector<8x8xbf16>
    %cst_26 = arith.constant dense<0.000000e+00> : vector<8x8xf32>
    %74 = tpu.matmul %71, %72, %cst_26 {dimension_numbers = #tpu.dot_dimension_numbers<[1], [1], [0], [0], [0, 0, 1, 0], [], []>} : vector<8x8xbf16>, vector<8x8xbf16>, vector<8x8xf32> -> vector<8x8xf32>
    %cst_27 = arith.constant dense<0xFF800000> : vector<8xf32>
    %75 = vector.multi_reduction <maximumf>, %74, %cst_27 [1] : vector<8x8xf32> to vector<8xf32>
    %76 = vector.shape_cast %75 : vector<8xf32> to vector<8x1xf32>
    %77 = vector.broadcast %76 : vector<8x1xf32> to vector<8x8xf32>
    %78 = arith.subf %74, %77 : vector<8x8xf32>
    %79 = math.exp %78 : vector<8x8xf32>
    %cst_28 = arith.constant dense<0.000000e+00> : vector<8xf32>
    %80 = vector.multi_reduction <add>, %79, %cst_28 [1] : vector<8x8xf32> to vector<8xf32>
    %81 = vector.shape_cast %80 : vector<8xf32> to vector<8x1xf32>
    %82 = tpu.reciprocal %81 {approx = true} : vector<8x1xf32> -> vector<8x1xf32>
    %83 = vector.broadcast %82 : vector<8x1xf32> to vector<8x8xf32>
    %84 = arith.mulf %79, %83 : vector<8x8xf32>
    %85 = arith.truncf %84 : vector<8x8xf32> to vector<8x8xbf16>
    %cst_29 = arith.constant dense<0.000000e+00> : vector<8x8xf32>
    %86 = tpu.matmul %85, %73, %cst_29 {dimension_numbers = #tpu.dot_dimension_numbers<[1], [0], [0], [1], [0, 0, 1, 1], [], []>} : vector<8x8xbf16>, vector<8x8xbf16>, vector<8x8xf32> -> vector<8x8xf32>
    %c0_30 = arith.constant 0 : index
    %c16 = arith.constant 16 : index
    %87 = vector.load %arg15[%c0_30, %c16] : memref<8x32xf32, #tpu.memory_space<vmem>>, vector<8x8xf32>
    tpu.vector_store %arg15[%c0_30, %c16], %86 {strides = array<i32>} : memref<8x32xf32, #tpu.memory_space<vmem>>, vector<8x8xf32>,
    %88 = vector.extract_strided_slice %32 {offsets = [0, 24], sizes = [8, 8], strides = [1, 1]} : vector<8x32xbf16> to vector<8x8xbf16>
    %89 = vector.extract_strided_slice %34 {offsets = [0, 24], sizes = [8, 8], strides = [1, 1]} : vector<8x32xbf16> to vector<8x8xbf16>
    %90 = vector.extract_strided_slice %36 {offsets = [0, 24], sizes = [8, 8], strides = [1, 1]} : vector<8x32xbf16> to vector<8x8xbf16>
    %cst_31 = arith.constant dense<0.000000e+00> : vector<8x8xf32>
    %91 = tpu.matmul %88, %89, %cst_31 {dimension_numbers = #tpu.dot_dimension_numbers<[1], [1], [0], [0], [0, 0, 1, 0], [], []>} : vector<8x8xbf16>, vector<8x8xbf16>, vector<8x8xf32> -> vector<8x8xf32>
    %cst_32 = arith.constant dense<0xFF800000> : vector<8xf32>
    %92 = vector.multi_reduction <maximumf>, %91, %cst_32 [1] : vector<8x8xf32> to vector<8xf32>
    %93 = vector.shape_cast %92 : vector<8xf32> to vector<8x1xf32>
    %94 = vector.broadcast %93 : vector<8x1xf32> to vector<8x8xf32>
    %95 = arith.subf %91, %94 : vector<8x8xf32>
    %96 = math.exp %95 : vector<8x8xf32>
    %cst_33 = arith.constant dense<0.000000e+00> : vector<8xf32>
    %97 = vector.multi_reduction <add>, %96, %cst_33 [1] : vector<8x8xf32> to vector<8xf32>
    %98 = vector.shape_cast %97 : vector<8xf32> to vector<8x1xf32>
    %99 = tpu.reciprocal %98 {approx = true} : vector<8x1xf32> -> vector<8x1xf32>
    %100 = vector.broadcast %99 : vector<8x1xf32> to vector<8x8xf32>
    %101 = arith.mulf %96, %100 : vector<8x8xf32>
    %102 = arith.truncf %101 : vector<8x8xf32> to vector<8x8xbf16>
    %cst_34 = arith.constant dense<0.000000e+00> : vector<8x8xf32>
    %103 = tpu.matmul %102, %90, %cst_34 {dimension_numbers = #tpu.dot_dimension_numbers<[1], [0], [0], [1], [0, 0, 1, 1], [], []>} : vector<8x8xbf16>, vector<8x8xbf16>, vector<8x8xf32> -> vector<8x8xf32>
    %c0_35 = arith.constant 0 : index
    %c24 = arith.constant 24 : index
    %104 = vector.load %arg15[%c0_35, %c24] : memref<8x32xf32, #tpu.memory_space<vmem>>, vector<8x8xf32>
    tpu.vector_store %arg15[%c0_35, %c24], %103 {strides = array<i32>} : memref<8x32xf32, #tpu.memory_space<vmem>>, vector<8x8xf32>,
    %c0_36 = arith.constant 0 : index
    %c0_37 = arith.constant 0 : index
    %105 = vector.load %arg15[%c0_36, %c0_37] : memref<8x32xf32, #tpu.memory_space<vmem>>, vector<8x32xf32>
    %106 = arith.truncf %105 : vector<8x32xf32> to vector<8x32xbf16>
    %c0_38 = arith.constant 0 : index
    %c0_39 = arith.constant 0 : index
    %107 = vector.load %arg6[%c0_38, %c0_39] : memref<32x32xbf16, #tpu.memory_space<vmem>>, vector<32x32xbf16>
    %cst_40 = arith.constant dense<0.000000e+00> : vector<8x32xf32>
    %108 = tpu.matmul %106, %107, %cst_40 {dimension_numbers = #tpu.dot_dimension_numbers<[1], [0], [0], [1], [0, 0, 1, 1], [], []>} : vector<8x32xbf16>, vector<32x32xbf16>, vector<8x32xf32> -> vector<8x32xf32>
    %c0_41 = arith.constant 0 : index
    %c0_42 = arith.constant 0 : index
    %109 = vector.load %arg7[%c0_41, %c0_42] : memref<1x32xf32, #tpu.memory_space<vmem>>, vector<1x32xf32>
    %110 = vector.broadcast %109 : vector<1x32xf32> to vector<8x32xf32>
    %111 = arith.addf %108, %110 : vector<8x32xf32>
    %112 = arith.addf %111, %111 : vector<8x32xf32>
    %c0_43 = arith.constant 0 : index
    %c0_44 = arith.constant 0 : index
    %113 = vector.load %arg8[%c0_43, %c0_44] : memref<1x32xf32, #tpu.memory_space<vmem>>, vector<1x32xf32>
    %c0_45 = arith.constant 0 : index
    %c0_46 = arith.constant 0 : index
    %114 = vector.load %arg9[%c0_45, %c0_46] : memref<1x32xf32, #tpu.memory_space<vmem>>, vector<1x32xf32>
    %cst_47 = arith.constant dense<0.000000e+00> : vector<8xf32>
    %115 = vector.multi_reduction <add>, %112, %cst_47 [1] : vector<8x32xf32> to vector<8xf32>
    %116 = vector.shape_cast %115 : vector<8xf32> to vector<8x1xf32>
    %cst_48 = arith.constant 3.200000e+01 : f32
    %117 = vector.broadcast %cst_48 : f32 to vector<8x1xf32>
    %118 = arith.divf %116, %117 : vector<8x1xf32>
    %119 = vector.broadcast %118 : vector<8x1xf32> to vector<8x32xf32>
    %120 = arith.subf %112, %119 : vector<8x32xf32>
    %121 = arith.mulf %120, %120 : vector<8x32xf32>
    %cst_49 = arith.constant dense<0.000000e+00> : vector<8xf32>
    %122 = vector.multi_reduction <add>, %121, %cst_49 [1] : vector<8x32xf32> to vector<8xf32>
    %123 = vector.shape_cast %122 : vector<8xf32> to vector<8x1xf32>
    %cst_50 = arith.constant 3.200000e+01 : f32
    %124 = vector.broadcast %cst_50 : f32 to vector<8x1xf32>
    %125 = arith.divf %123, %124 : vector<8x1xf32>
    %cst_51 = arith.constant 9.99999974E-6 : f32
    %126 = vector.broadcast %cst_51 : f32 to vector<8x1xf32>
    %127 = arith.addf %125, %126 : vector<8x1xf32>
    %128 = math.rsqrt %127 : vector<8x1xf32>
    %129 = vector.broadcast %128 : vector<8x1xf32> to vector<8x32xf32>
    %130 = arith.mulf %120, %129 : vector<8x32xf32>
    %131 = vector.broadcast %113 : vector<1x32xf32> to vector<8x32xf32>
    %132 = arith.mulf %130, %131 : vector<8x32xf32>
    %133 = vector.broadcast %114 : vector<1x32xf32> to vector<8x32xf32>
    %134 = arith.addf %132, %133 : vector<8x32xf32>
    %135 = arith.truncf %134 : vector<8x32xf32> to vector<8x32xbf16>
    %c0_52 = arith.constant 0 : index
    %c0_53 = arith.constant 0 : index
    %136 = vector.load %arg10[%c0_52, %c0_53] : memref<32x2048xbf16, #tpu.memory_space<vmem>>, vector<32x2048xbf16>
    %cst_54 = arith.constant dense<0.000000e+00> : vector<8x2048xf32>
    %137 = tpu.matmul %135, %136, %cst_54 {dimension_numbers = #tpu.dot_dimension_numbers<[1], [0], [0], [1], [0, 0, 1, 1], [], []>} : vector<8x32xbf16>, vector<32x2048xbf16>, vector<8x2048xf32> -> vector<8x2048xf32>
    %c0_55 = arith.constant 0 : index
    %c0_56 = arith.constant 0 : index
    %138 = vector.load %arg11[%c0_55, %c0_56] : memref<1x2048xf32, #tpu.memory_space<vmem>>, vector<1x2048xf32>
    %139 = vector.broadcast %138 : vector<1x2048xf32> to vector<8x2048xf32>
    %140 = arith.addf %137, %139 : vector<8x2048xf32>
    %cst_57 = arith.constant 0.000000e+00 : f32
    %141 = vector.broadcast %cst_57 : f32 to vector<8x2048xf32>
    %142 = arith.maximumf %140, %141 : vector<8x2048xf32>
    %143 = arith.truncf %142 : vector<8x2048xf32> to vector<8x2048xbf16>
    %c0_58 = arith.constant 0 : index
    %c0_59 = arith.constant 0 : index
    %144 = vector.load %arg12[%c0_58, %c0_59] : memref<2048x32xbf16, #tpu.memory_space<vmem>>, vector<2048x32xbf16>
    %cst_60 = arith.constant dense<0.000000e+00> : vector<8x32xf32>
    %145 = tpu.matmul %143, %144, %cst_60 {dimension_numbers = #tpu.dot_dimension_numbers<[1], [0], [0], [1], [0, 0, 1, 1], [], []>} : vector<8x2048xbf16>, vector<2048x32xbf16>, vector<8x32xf32> -> vector<8x32xf32>
    %c0_61 = arith.constant 0 : index
    %c0_62 = arith.constant 0 : index
    %146 = vector.load %arg13[%c0_61, %c0_62] : memref<1x32xf32, #tpu.memory_space<vmem>>, vector<1x32xf32>
    %147 = vector.broadcast %146 : vector<1x32xf32> to vector<8x32xf32>
    %148 = arith.addf %145, %147 : vector<8x32xf32>
    %149 = arith.addf %148, %148 : vector<8x32xf32>
    %c0_63 = arith.constant 0 : index
    %c0_64 = arith.constant 0 : index
    %150 = vector.load %arg14[%c0_63, %c0_64] : memref<8x32xf32, #tpu.memory_space<vmem>>, vector<8x32xf32>
    tpu.vector_store %arg14[%c0_63, %c0_64], %149 {strides = array<i32>} : memref<8x32xf32, #tpu.memory_space<vmem>>, vector<8x32xf32>,
    return
  }
  func.func @transform_0(%arg0: i32) -> (i32, i32) {
    %c0_i32 = arith.constant 0 : i32
    %c0_i32_0 = arith.constant 0 : i32
    return %arg0, %c0_i32 : i32, i32
  }
  func.func @transform_1(%arg0: i32) -> (i32, i32) {
    %c0_i32 = arith.constant 0 : i32
    %c0_i32_0 = arith.constant 0 : i32
    %c0_i32_1 = arith.constant 0 : i32
    return %c0_i32, %c0_i32_0 : i32, i32
  }
  func.func @transform_2(%arg0: i32) -> (i32, i32) {
    %c0_i32 = arith.constant 0 : i32
    %c0_i32_0 = arith.constant 0 : i32
    %c0_i32_1 = arith.constant 0 : i32
    return %c0_i32, %c0_i32_0 : i32, i32
  }
  func.func @transform_3(%arg0: i32) -> (i32, i32) {
    %c0_i32 = arith.constant 0 : i32
    %c0_i32_0 = arith.constant 0 : i32
    %c0_i32_1 = arith.constant 0 : i32
    return %c0_i32, %c0_i32_0 : i32, i32
  }
  func.func @transform_4(%arg0: i32) -> (i32, i32) {
    %c0_i32 = arith.constant 0 : i32
    %c0_i32_0 = arith.constant 0 : i32
    %c0_i32_1 = arith.constant 0 : i32
    return %c0_i32, %c0_i32_0 : i32, i32
  }
  func.func @transform_5(%arg0: i32) -> (i32, i32) {
    %c0_i32 = arith.constant 0 : i32
    %c0_i32_0 = arith.constant 0 : i32
    %c0_i32_1 = arith.constant 0 : i32
    return %c0_i32, %c0_i32_0 : i32, i32
  }
  func.func @transform_6(%arg0: i32) -> (i32, i32) {
    %c0_i32 = arith.constant 0 : i32
    %c0_i32_0 = arith.constant 0 : i32
    %c0_i32_1 = arith.constant 0 : i32
    return %c0_i32, %c0_i32_0 : i32, i32
  }
  func.func @transform_7(%arg0: i32) -> (i32, i32) {
    %c0_i32 = arith.constant 0 : i32
    %c0_i32_0 = arith.constant 0 : i32
    %c0_i32_1 = arith.constant 0 : i32
    return %c0_i32, %c0_i32_0 : i32, i32
  }
  func.func @transform_8(%arg0: i32) -> (i32, i32) {
    %c0_i32 = arith.constant 0 : i32
    %c0_i32_0 = arith.constant 0 : i32
    %c0_i32_1 = arith.constant 0 : i32
    return %c0_i32, %c0_i32_0 : i32, i32
  }
  func.func @transform_9(%arg0: i32) -> (i32, i32) {
    %c0_i32 = arith.constant 0 : i32
    %c0_i32_0 = arith.constant 0 : i32
    %c0_i32_1 = arith.constant 0 : i32
    return %c0_i32, %c0_i32_0 : i32, i32
  }
  func.func @transform_10(%arg0: i32) -> (i32, i32) {
    %c0_i32 = arith.constant 0 : i32
    %c0_i32_0 = arith.constant 0 : i32
    %c0_i32_1 = arith.constant 0 : i32
    return %c0_i32, %c0_i32_0 : i32, i32
  }
  func.func @transform_11(%arg0: i32) -> (i32, i32) {
    %c0_i32 = arith.constant 0 : i32
    %c0_i32_0 = arith.constant 0 : i32
    %c0_i32_1 = arith.constant 0 : i32
    return %c0_i32, %c0_i32_0 : i32, i32
  }
  func.func @transform_12(%arg0: i32) -> (i32, i32) {
    %c0_i32 = arith.constant 0 : i32
    %c0_i32_0 = arith.constant 0 : i32
    %c0_i32_1 = arith.constant 0 : i32
    return %c0_i32, %c0_i32_0 : i32, i32
  }
  func.func @transform_13(%arg0: i32) -> (i32, i32) {
    %c0_i32 = arith.constant 0 : i32
    %c0_i32_0 = arith.constant 0 : i32
    return %arg0, %c0_i32 : i32, i32
  }
}

</mosaic_0001>

<bundles_post_ra>
// kernel: tpu_custom_call.1
= control target key start
LH: loop header
LB: loop body
LE: loop exit
PB: predicated region body
PF: predicated region fallthrough
CT: control target
= control target key end

     0   :  { %s4508_s0 = inlined_call_operand.vmem [shape: f32[16,32], index: 0, kind: input, shape index: {}]   ;;  %s4509_s1 = inlined_call_operand.vmem [shape: f32[1,32], index: 1, kind: input, shape index: {}]   ;;  %s4510_s2 = inlined_call_operand.vmem [shape: f32[1,32], index: 2, kind: input, shape index: {}]   ;;  %s4511_s3 = inlined_call_operand.vmem [shape: bf16[32,96], index: 3, kind: input, shape index: {}]   ;;  %s4512_s4 = inlined_call_operand.vmem [shape: f32[1,96], index: 4, kind: input, shape index: {}]   ;;  %s4513_s5 = inlined_call_operand.vmem [shape: bf16[32,32], index: 5, kind: input, shape index: {}]   ;;  %s4514_s6 = inlined_call_operand.vmem [shape: f32[1,32], index: 6, kind: input, shape index: {}]   ;;  %s4515_s7 = inlined_call_operand.vmem [shape: f32[1,32], index: 7, kind: input, shape index: {}]   ;;  %s4516_s8 = inlined_call_operand.vmem [shape: f32[1,32], index: 8, kind: input, shape index: {}]   ;;  %s4517_s9 = inlined_call_operand.vmem [shape: bf16[32,2048], index: 9, kind: input, shape index: {}]   ;;  %s4518_s10 = inlined_call_operand.vmem [shape: f32[1,2048], index: 10, kind: input, shape index: {}]   ;;  %s4519_s11 = inlined_call_operand.vmem [shape: bf16[2048,32], index: 11, kind: input, shape index: {}]   ;;  %s4520_s12 = inlined_call_operand.vmem [shape: f32[1,32], index: 12, kind: input, shape index: {}]   ;;  %s4521_s13 = inlined_call_operand.hbm [shape: f32[16,32], index: 13, kind: output, shape index: {}]  }
   0x1   :  { %4522 = sst [smem:[#allocation6_spill]] %s4508_s0 }
   0x2   :  { %4523 = sst [smem:[#allocation7_spill]] %s4509_s1 }
   0x3   :  { %4524 = sst [smem:[#allocation8_spill]] %s4510_s2 }
   0x4   :  { %4525 = sst [smem:[#allocation9_spill]] %s4511_s3 }
   0x5   :  { %18 = vsyncpa [#allocation4], 0 }
   0x6   :  { %20 = vsyncpa [#allocation4 + $0x1], 0  ;;  %s3711_s25 = smov 0   ;;  %s3713_s26 = smov 0  }
   0x7   :  { %s3715_s27 = smov 0   ;;  %s3717_s28 = smov 0  }
   0x8 LB: > { %s3732_s29 = sadd.s32 4294967295, %s3624_s28   ;;  %s2623_s30 = sadd.s32 4294967294, %s3624_s28   ;;  %s3624_s28 = sphi %s3717_s28, %s4535_s28   ;;  %s3620_s27 = sphi %s3715_s27, %s4534_s27   ;;  %s3616_s26 = sphi %s3713_s26, %s4533_s26   ;;  %s3612_s25 = sphi %s3711_s25, %s4532_s25  }
   0x9   : > { %s3736_s14 = sadd.s32 1, %s3624_s28   ;;  %s311_s15 = sadd.s32 1, %s3620_s27 }
   0xa   : > { %s308_s16 = ssub.s32 %s3624_s28, %s3736_s14  ;;  %p321_p0 = scmp.ne.s32.totalorder %s3620_s27, %s3616_s26 }
   0xb   : > { %p309_p1 = scmp.eq.s32.totalorder %s308_s16, 0  ;;  %p322_p2 = scmp.eq.s32.totalorder %s3732_s29, 1 }
   0xc   : > { %p327_p3 = scmp.ne.s32.totalorder %s3616_s26, %s3612_s25  ;;  %p328_p4 = scmp.eq.s32.totalorder %s2623_s30, 1 }
   0xd   : > { %s3747_s17 = scalar_select %p309_p1, %s3620_s27, %s311_s15  }
   0xe   : > { %p3749_p5 = por %p322_p2, %p321_p0  ;;  %p3753_p6 = por %p328_p4, %p327_p3 }
   0xf   : > { %p2626_p7 = scmp.ge.s32.totalorder %s3624_s28, 1  ;;  %p389_p8 = scmp.lt.s32.totalorder %s3624_s28, 3 }
  0x11   : > { %p390_p9 = pnand %p2626_p7, %p389_p8 }
  0x12   : > { %p432_p10 = scmp.lt.s32.totalorder (!%p390_p9), %s3732_s29, 1  ;;  %s4528_s0 = sld [smem:[#allocation6_spill]] (!%p390_p9) }
  0x13   : > { %393 = sbr.rel (%p390_p9) target bundleno = 1972 (0x7b4), region = 72  ;;  %s4529_s3 = sld [smem:[#allocation9_spill]] (!%p390_p9) }
  0x14   : > { %s4530_s1 = sld [smem:[#allocation7_spill]] (!%p390_p9)  ;;  %s3627_s16 = smov (!%p390_p9), 96  }
  0x15   : > { %s4531_s2 = sld [smem:[#allocation8_spill]] (!%p390_p9)  ;;  %s3630_s22 = smov (!%p390_p9), 88  }
  0x16   : > { %s3631_s23 = smov (!%p390_p9), 72   ;;  %s3633_s30 = smov (!%p390_p9), 112  }
  0x17   : > { %s3634_s15 = smov (!%p390_p9), 64  }
  0x18   : > { %s433_s20 = scalar_select %p432_p10, %s3732_s29, 1  ;;  %vm440_vm0 = vcmask 261120   ;;  %v3626_v2 = vmov 32.0   ;;  %v3535_v32 = vld [vmem:[%s4512_s4] ss:$0 sm:$0xff]  ;;  %vm523_vm5 = vcmask 64512  }
  0x19   : > { %3540 = vrcp.f32 %v3626_v2  ;;  %v3316_v14 = vld [vmem:[%s4529_s3 + $0x8] sm:$0xff]  ;;  %v3315_v15 = vld [vmem:[%s4529_s3] sm:$0xff]  ;;  %vm560_vm6 = vcmask 1043456   ;;  %vm641_vm7 = vcmask 130112   ;;  %vm703_vm8 = vcmask 195712   ;;  %s3312_s3 = sshll.u32 %s3732_s29, 3 }
  0x1a   : > { %s2628_s21 = sshll.u32 %s433_s20, 3  ;;  %508 = vmatpush.bf16.msra.mxu0 %v3316_v14  ;;  %v3533_v25 = vld [vmem:[%s4530_s1] ss:$0 sm:$0xff]  ;;  %s3628_s20 = smov 104   ;;  %vm765_vm9 = vcmask 261312  }
  0x1b   : > { %s435_s24 = scalar_lea.vmem %s4528_s0, %s2628_s21  ;;  %v3534_v28 = vld [vmem:[%s4531_s2] ss:$0 sm:$0xff]  ;;  %s3629_s21 = smov 120  }
  0x1c   : > { %v437_v0 = vld [vmem:[%s435_s24] sm:$0xff]  ;;  %s3632_s24 = smov 80   ;;  %s429_s2 = sand.u32 1, %s3616_s26  }
  0x1d   : > { %v441_v1 = vsel %vm440_vm0, %v437_v0, 0.0  ;;  %s2549_s29 = scalar_lea.sflag [#allocation4], %s429_s2 }
  0x1e   : > { %442 = vadd.xlane.f32.xlu0 %v441_v1  ;;  %509 = vmatpush.bf16.msra.mxu0 %v3315_v15 }
  0x1f   : > { %v3541_v3 = vpop.eup %3540 }
  0x20   : > { %v445_v4 = vmul.f32 32.0, %v3541_v3  ;;  %vm449_vm1 = vweird.f32 %v3541_v3 }
  0x22   : > { %v446_v5 = vsub.f32 1.0, %v445_v4 }
  0x24   : > { %v447_v6 = vmul.f32 %v3541_v3, %v446_v5 }
  0x26   : > { %v448_v7 = vadd.f32 %v3541_v3, %v447_v6 }
  0x28   : > { %v3765_v8 = vsel %vm449_vm1, %v3541_v3, %v448_v7 }
  0x91   : > { %v443_v9 = vpop.xlane.xlu0 %442 }
  0x92   : > { %v451_v10 = vmul.f32 %v3765_v8, %v443_v9 }
  0x94   : > { %v452_v11 = vsub.f32 %v437_v0, %v451_v10 }
  0x96   : > { %v453_v12 = vmul.f32 %v452_v11, %v452_v11 }
  0x98   : > { %v454_v13 = vsel %vm440_vm0, %v453_v12, 0.0 }
  0x99   : > { %455 = vadd.xlane.f32.xlu0 %v454_v13 }
 0x10c   : > { %v456_v16 = vpop.xlane.xlu0 %455 }
 0x10d   : > { %v457_v17 = vmul.f32 %v456_v16, %v3765_v8 }
 0x10f   : > { %v458_v18 = vadd.f32 1e-05, %v457_v17 }
 0x111   : > { %3542 = vrsqrt.f32 %v458_v18  ;;  %vm465_vm3 = vweird.f32 %v458_v18 }
 0x117   : > { %v3543_v19 = vpop.eup %3542 }
 0x118   : > { %v460_v20 = vmul.f32 %v3543_v19, %v458_v18  ;;  %vm466_vm2 = vweird.f32 %v3543_v19 }
 0x119   : > { %vm467_vm4 = vmor %vm465_vm3, %vm466_vm2 }
 0x11a   : > { %v461_v21 = vmul.f32 %v3543_v19, %v460_v20 }
 0x11c   : > { %v462_v22 = vmul.f32 0.5, %v461_v21 }
 0x11e   : > { %v463_v23 = vsub.f32 1.5, %v462_v22 }
 0x120   : > { %v464_v24 = vmul.f32 %v3543_v19, %v463_v23 }
 0x122   : > { %v468_v26 = vsel %vm467_vm4, %v3543_v19, %v464_v24 }
 0x123   : > { %v469_v27 = vmul.f32 %v468_v26, %v452_v11 }
 0x125   : > { %v473_v29 = vmul.f32 %v3533_v25, %v469_v27 }
 0x127   : > { %v477_v30 = vadd.f32 %v3534_v28, %v473_v29 }
 0x129   : > { %v478_v31 = vpack.c.bf16 %v477_v30, %v477_v30 }
 0x12b   : > { %2637 = vmatmul.msk.bf16.vlgmr.msra.gmra.mxu0 %vm440_vm0, %v478_v31 }
 0x1a8   : > { %v511_v33 = vpop.f32.mrf.mxu0 }
 0x1a9   : > { %v512_v34 = vadd.f32 %v3535_v32, %v511_v33 }
 0x1ab   : > { %v515_v35 = vmul.f32 0.35355338, %v512_v34  ;;  %v517_v36 = vpack.c.bf16 %v512_v34, %v512_v34 }
 0x1ad   : > { %v516_v37 = vpack.c.bf16 %v515_v35, %v515_v35  ;;  %v519_v38 = vunpack.c.l.b16 %v517_v36 }
 0x1af   : > { %v520_v39 = vpack.c.b16 %v519_v38, %v519_v38  ;;  %v579_v40 = vunpack.c.l.b16 %v516_v37 }
 0x1b0   : > { %v513_v41 = vpop.f32.mrf.mxu0 }
 0x1b1   : > { %521 = vrot.lane.b32.xlu1 %v520_v39, %s3627_s16  ;;  %v580_v42 = vpack.c.b16 %v579_v40, %v579_v40  ;;  %s3635_s16 = smov 56  }
 0x1b3   : > { %705 = vrot.lane.b32.xlu0 %v580_v42, %s3628_s20  ;;  %581 = vrot.lane.b32.xlu2 %v580_v42, %s3629_s21  ;;  %s3636_s20 = smov 40   ;;  %s3637_s21 = smov 48  }
 0x1b9   : > { %583 = vrot.lane.b32.xlu1 %v520_v39, %s3630_s22  ;;  %s3638_s22 = smov 8  }
 0x1bb   : > { %707 = vrot.lane.b32.xlu2 %v520_v39, %s3631_s23  ;;  %s3639_s23 = smov 24  }
 0x1c1   : > { %645 = vrot.lane.b32.xlu1 %v520_v39, %s3632_s24  ;;  %s3640_s24 = smov 16  }
 0x1c3   : > { %643 = vrot.lane.b32.xlu2 %v580_v42, %s3633_s30 }
 0x20d   : > { %v582_v43 = vpop.permute.xlu2 %581 }
 0x215   : > { %v708_v46 = vpop.permute.xlu2 %707 }
 0x216   : > { %v713_v49 = vsel %vm523_vm5, %v708_v46, 0 }
 0x21d   : > { %v644_v52 = vpop.permute.xlu2 %643 }
 0x223   : > { %v522_v44 = vpop.permute.xlu1 %521 }
 0x224   : > { %v528_v45 = vsel %vm523_vm5, %v522_v44, 0 }
 0x225   : > { %537 = vmatpush.bf16.xpose.msra.mxu1 %v528_v45  ;;  %v706_v53 = vpop.permute.xlu0 %705 }
 0x22b   : > { %v584_v47 = vpop.permute.xlu1 %583 }
 0x22c   : > { %2638 = vmatmul.msk.bf16.vlgmr.msra.gmra.mxu1 %vm523_vm5, %v516_v37  ;;  %v589_v48 = vsel %vm523_vm5, %v584_v47, 0 }
 0x22d   : > { %598 = vmatpush.bf16.xpose.msra.mxu3 %v589_v48 }
 0x233   : > { %v646_v50 = vpop.permute.xlu1 %645 }
 0x234   : > { %2640 = vmatmul.msk.bf16.vlgmr.msra.gmra.mxu3 %vm523_vm5, %v582_v43  ;;  %v651_v51 = vsel %vm523_vm5, %v646_v50, 0 }
 0x235   : > { %722 = vmatpush.bf16.xpose.msrb.mxu3 %v713_v49  ;;  %660 = vmatpush.bf16.xpose.msrb.mxu0 %v651_v51 }
 0x23c   : > { %2642 = vmatmul.msk.bf16.vlgmr.msrb.gmra.mxu0 %vm523_vm5, %v644_v52 }
 0x244   : > { %2644 = vmatmul.msk.bf16.vlgmr.msrb.gmra.mxu3 %vm523_vm5, %v706_v53 }
 0x2a9   : > { %v539_v54 = vpop.f32.mrf.mxu1 }
 0x2aa   : > { %v543_v55 = vsel %vm523_vm5, %v539_v54, -inf }
 0x2ab   : > { %544 = vmax.xlane.f32.xlu1 %v543_v55  ;;  %v3318_v55 = vld [vmem:[%s4513_s5 + $0x8] sm:$0xff] }
 0x2ac   : > { %798 = vmatpush.bf16.msra.mxu0 %v3318_v55 }
 0x2b1   : > { %v541_v56 = vpop.f32.mrf.mxu1 }
 0x2b2   : > { %v3317_v56 = vld [vmem:[%s4513_s5] sm:$0xff] }
 0x2b3   : > { %799 = vmatpush.bf16.msra.mxu0 %v3317_v56 }
 0x2b7   : > { %v600_v57 = vpop.f32.mrf.mxu3 }
 0x2b8   : > { %v604_v58 = vsel %vm523_vm5, %v600_v57, -inf }
 0x2b9   : > { %605 = vmax.xlane.f32.xlu2 %v604_v58  ;;  %v662_v59 = vpop.f32.mrf.mxu0 }
 0x2ba   : > { %v666_v61 = vsel %vm523_vm5, %v662_v59, -inf }
 0x2bf   : > { %v602_v60 = vpop.f32.mrf.mxu3 }
 0x2c1   : > { %667 = vmax.xlane.f32.xlu2 %v666_v61  ;;  %v664_v62 = vpop.f32.mrf.mxu0 }
 0x2c2   : > { %v3536_v62 = vld [vmem:[%s4514_s6] ss:$0 sm:$0xff] }
 0x2c7   : > { %v724_v63 = vpop.f32.mrf.mxu3 }
 0x2c8   : > { %v728_v0 = vsel %vm523_vm5, %v724_v63, -inf }
 0x2c9   : > { %729 = vmax.xlane.f32.xlu0 %v728_v0 }
 0x2cf   : > { %v726_v1 = vpop.f32.mrf.mxu3 }
 0x2d9   : > { %555 = vrot.lane.b32.xlu2 %v520_v39, %s3634_s15 }
 0x2dd   : > { %616 = vrot.lane.b32.xlu0 %v520_v39, %s3635_s16 }
 0x2e1   : > { %740 = vrot.lane.b32.xlu2 %v520_v39, %s3636_s20  ;;  %s2627_s20 = sshll.u32 %s429_s2, 3 }
 0x2e5   : > { %678 = vrot.lane.b32.xlu0 %v520_v39, %s3637_s21 }
 0x31e   : > { %v545_v2 = vpop.xlane.xlu1 %544 }
 0x31f   : > { %v546_v3 = vsub.f32 %v539_v54, %v545_v2 }
 0x321   : > { %v547_v4 = vmul.f32 1.442695, %v546_v3 }
 0x323   : > { %3544 = vpow2.f32 %v547_v4 }
 0x329   : > { %v3545_v5 = vpop.eup %3544 }
 0x32a   : > { %v549_v6 = vsel %vm523_vm5, %v3545_v5, 0.0 }
 0x32b   : > { %550 = vadd.xlane.f32.xlu1 %v549_v6 }
 0x32c   : > { %v606_v7 = vpop.xlane.xlu2 %605 }
 0x32d   : > { %v607_v9 = vsub.f32 %v600_v57, %v606_v7 }
 0x32f   : > { %v608_v10 = vmul.f32 1.442695, %v607_v9 }
 0x331   : > { %3546 = vpow2.f32 %v608_v10  ;;  %v2721_v10 = vld [vmem:[%s4517_s9 + $0x80] sm:$0xf] }
 0x334   : > { %v668_v11 = vpop.xlane.xlu2 %667 }
 0x335   : > { %v669_v18 = vsub.f32 %v662_v59, %v668_v11  ;;  %v3343_v11 = vld [vmem:[%s4517_s9 + $0xbc] sm:$0xf0] }
 0x337   : > { %v3547_v12 = vpop.eup %3546  ;;  %v670_v20 = vmul.f32 1.442695, %v669_v18 }
 0x338   : > { %v610_v13 = vsel %vm523_vm5, %v3547_v12, 0.0 }
 0x339   : > { %611 = vadd.xlane.f32.xlu1 %v610_v13  ;;  %v2722_v13 = vor.u32 %v3343_v11, %v2721_v10  ;;  %v3347_v10 = vld [vmem:[%s4517_s9 + $0xdc] sm:$0xf0]  ;;  %v3339_v11 = vld [vmem:[%s4517_s9 + $0xa4] sm:$0xf] }
 0x33c   : > { %v730_v14 = vpop.xlane.xlu0 %729  ;;  %v556_v15 = vpop.permute.xlu2 %555 }
 0x33d   : > { %v731_v16 = vsub.f32 %v724_v63, %v730_v14  ;;  %v562_v17 = vsel %vm560_vm6, %v556_v15, 0  ;;  %v2723_v14 = vld [vmem:[%s4517_s9 + $0xc0] sm:$0xf0]  ;;  %v2729_v15 = vld [vmem:[%s4517_s9 + $0x88] sm:$0xf] }
 0x33e   : > { %571 = vmatpush.bf16.msra.mxu2 %v562_v17 }
 0x33f   : > { %v732_v19 = vmul.f32 1.442695, %v731_v16  ;;  %v3344_v16 = vld [vmem:[%s4517_s9 + $0xc4] sm:$0xf0] }
 0x340   : > { %v2730_v18 = vor.u32 %v3344_v16, %v2729_v15  ;;  %v3340_v15 = vld [vmem:[%s4517_s9 + $0xac] sm:$0xf] }
 0x341   : > { %3548 = vpow2.f32 %v732_v19  ;;  %v3336_v19 = vld [vmem:[%s4517_s9 + $0x8c] sm:$0xf] }
 0x342   : > { %3550 = vpow2.f32 %v670_v20  ;;  %v2731_v20 = vld [vmem:[%s4517_s9 + $0xc8] sm:$0xf0] }
 0x343   : > { %v2763_v16 = vld [vmem:[%s4517_s9 + $0xe8] sm:$0xf0] }
 0x344   : > { %v741_v32 = vpop.permute.xlu2 %740 }
 0x345   : > { %v746_v34 = vsel %vm560_vm6, %v741_v32, 0  ;;  %v2667_v32 = vld [vmem:[%s4517_s9 + $0x48] sm:$0xf0] }
 0x347   : > { %v3549_v21 = vpop.eup %3548 }
 0x348   : > { %v734_v22 = vsel %vm523_vm5, %v3549_v21, 0.0  ;;  %v3551_v23 = vpop.eup %3550 }
 0x349   : > { %735 = vadd.xlane.f32.xlu1 %v734_v22  ;;  %v672_v26 = vsel %vm523_vm5, %v3551_v23, 0.0  ;;  %v2657_v22 = vld [vmem:[%s4517_s9] sm:$0xf] }
 0x34f   : > { %v617_v24 = vpop.permute.xlu0 %616 }
 0x350   : > { %v622_v25 = vsel %vm560_vm6, %v617_v24, 0  ;;  %v3319_v24 = vld [vmem:[%s4517_s9 + $0x4] sm:$0xf] }
 0x351   : > { %631 = vmatpush.bf16.msrb.mxu2 %v622_v25  ;;  %673 = vadd.xlane.f32.xlu1 %v672_v26  ;;  %v2659_v26 = vld [vmem:[%s4517_s9 + $0x40] sm:$0xf0] }
 0x357   : > { %v679_v27 = vpop.permute.xlu0 %678 }
 0x358   : > { %v684_v28 = vsel %vm560_vm6, %v679_v27, 0  ;;  %v2665_v27 = vld [vmem:[%s4517_s9 + $0x8] sm:$0xf] }
 0x359   : > { %693 = vmatpush.bf16.msrb.mxu1 %v684_v28  ;;  %v3328_v28 = vld [vmem:[%s4517_s9 + $0x44] sm:$0xf0] }
 0x35d   : > { %1076 = vmatpush.bf16.msra.mxu1 %v2722_v13 }
 0x39e   : > { %v551_v29 = vpop.xlane.xlu1 %550 }
 0x39f   : > { %3552 = vrcp.f32 %v551_v29  ;;  %v2662_v29 = vor.u32 %v3319_v24, %v2659_v26  ;;  %v3323_v24 = vld [vmem:[%s4517_s9 + $0x24] sm:$0xf]  ;;  %v2697_v26 = vld [vmem:[%s4517_s9 + $0x28] sm:$0xf] }
 0x3a5   : > { %v3553_v30 = vpop.eup %3552 }
 0x3a6   : > { %v553_v31 = vmul.f32 %v3553_v30, %v3545_v5  ;;  %v2666_v30 = vor.u32 %v3328_v28, %v2665_v27  ;;  %v3332_v27 = vld [vmem:[%s4517_s9 + $0x64] sm:$0xf0]  ;;  %v3324_v28 = vld [vmem:[%s4517_s9 + $0x2c] sm:$0xf] }
 0x3a8   : > { %v554_v33 = vpack.c.bf16 %v553_v31, %v553_v31  ;;  %v3320_v31 = vld [vmem:[%s4517_s9 + $0xc] sm:$0xf] }
 0x3aa   : > { %2639 = vmatmul.msk.bf16.vlgmr.msra.gmra.mxu2 %vm523_vm5, %v554_v33  ;;  %v2670_v33 = vor.u32 %v3320_v31, %v2667_v32  ;;  %v2698_v32 = vor.u32 %v3332_v27, %v2697_v26  ;;  %v3359_v26 = vld [vmem:[%s4519_s11 + $0x40] sm:$0xff] }
 0x3ab   : > { %755 = vmatpush.bf16.msra.mxu2 %v746_v34  ;;  %v3367_v27 = vld [vmem:[%s4519_s11 + $0x80] sm:$0xff] }
 0x3ac   : > { %v612_v35 = vpop.xlane.xlu1 %611 }
 0x3ad   : > { %3554 = vrcp.f32 %v612_v35  ;;  %v2737_v35 = vld [vmem:[%s4517_s9 + $0x90] sm:$0xf] }
 0x3b3   : > { %v3555_v36 = vpop.eup %3554 }
 0x3b4   : > { %v614_v37 = vmul.f32 %v3555_v36, %v3547_v12  ;;  %v3335_v12 = vld [vmem:[%s4517_s9 + $0x84] sm:$0xf]  ;;  %v3345_v36 = vld [vmem:[%s4517_s9 + $0xcc] sm:$0xf0] }
 0x3b5   : > { %v2726_v17 = vor.u32 %v3335_v12, %v2723_v14  ;;  %v2755_v12 = vld [vmem:[%s4517_s9 + $0xe0] sm:$0xf0]  ;;  %v3348_v14 = vld [vmem:[%s4517_s9 + $0xe4] sm:$0xf0] }
 0x3b6   : > { %v615_v38 = vpack.c.bf16 %v614_v37, %v614_v37  ;;  %v3337_v37 = vld [vmem:[%s4517_s9 + $0x94] sm:$0xf] }
 0x3b7   : > { %1089 = vmatpush.bf16.msra.mxu3 %v2726_v17 }
 0x3ba   : > { %2641 = vmatmul.msk.bf16.vlgmr.msrb.gmra.mxu2 %vm523_vm5, %v615_v38 }
 0x3bb   : > { %1102 = vmatpush.bf16.msrb.mxu2 %v2730_v18  ;;  %1090 = vmatpush.bf16.msra.mxu3 %v2662_v29  ;;  %v2699_v29 = vld [vmem:[%s4517_s9 + $0x68] sm:$0xf0] }
 0x3bc   : > { %v736_v39 = vpop.xlane.xlu1 %735 }
 0x3bd   : > { %3556 = vrcp.f32 %v736_v39  ;;  %v2738_v39 = vor.u32 %v3345_v36, %v2737_v35  ;;  %v3349_v35 = vld [vmem:[%s4517_s9 + $0xec] sm:$0xf0]  ;;  %v3341_v36 = vld [vmem:[%s4517_s9 + $0xb4] sm:$0xf] }
 0x3bf   : > { %1103 = vmatpush.bf16.msrb.mxu2 %v2666_v30 }
 0x3c3   : > { %v3557_v40 = vpop.eup %3556 }
 0x3c4   : > { %v738_v41 = vmul.f32 %v3557_v40, %v3549_v21  ;;  %v674_v42 = vpop.xlane.xlu1 %673  ;;  %v2734_v21 = vor.u32 %v3336_v19, %v2731_v20  ;;  %v2739_v40 = vld [vmem:[%s4517_s9 + $0xd0] sm:$0xf0]  ;;  %v2758_v19 = vor.u32 %v3339_v11, %v2755_v12  ;;  %v2689_v20 = vld [vmem:[%s4517_s9 + $0x20] sm:$0xf]  ;;  %v3354_v11 = vld [vmem:[%s4519_s11 + $0x18] sm:$0xff] }
 0x3c5   : > { %3558 = vrcp.f32 %v674_v42  ;;  %v3346_v42 = vld [vmem:[%s4517_s9 + $0xd4] sm:$0xf0] }
 0x3c6   : > { %v739_v43 = vpack.c.bf16 %v738_v41, %v738_v41  ;;  %1115 = vmatpush.bf16.msrb.mxu0 %v2734_v21  ;;  %v2745_v41 = vld [vmem:[%s4517_s9 + $0x98] sm:$0xf]  ;;  %v3331_v21 = vld [vmem:[%s4517_s9 + $0x5c] sm:$0xf0] }
 0x3c7   : > { %v2690_v30 = vor.u32 %v3331_v21, %v2689_v20  ;;  %v3378_v12 = vld [vmem:[%s4519_s11 + $0xd8] sm:$0xff]  ;;  %v3360_v20 = vld [vmem:[%s4519_s11 + $0x48] sm:$0xff] }
 0x3c8   : > { %v3368_v21 = vld [vmem:[%s4519_s11 + $0x88] sm:$0xff] }
 0x3ca   : > { %2645 = vmatmul.msk.bf16.vlgmr.msra.gmra.mxu2 %vm523_vm5, %v739_v43  ;;  %1116 = vmatpush.bf16.msrb.mxu0 %v2670_v33  ;;  %v2742_v43 = vor.u32 %v3337_v37, %v2739_v40  ;;  %v2702_v33 = vor.u32 %v3324_v28, %v2699_v29  ;;  %v2771_v37 = vld [vmem:[%s4517_s9 + $0xf0] sm:$0xf0]  ;;  %v3342_v40 = vld [vmem:[%s4517_s9 + $0xbc] sm:$0xf] }
 0x3cb   : > { %v3559_v44 = vpop.eup %3558  ;;  %v3398_v28 = vld [vmem:[%s4519_s11 + $0x178] sm:$0xff] }
 0x3cc   : > { %v676_v45 = vmul.f32 %v3559_v44, %v3551_v23  ;;  %v3327_v23 = vld [vmem:[%s4517_s9 + $0x3c] sm:$0xf0]  ;;  %v2746_v44 = vor.u32 %v3346_v42, %v2745_v41  ;;  %1141 = vmatpush.bf16.msrb.mxu3 %v2742_v43  ;;  %v2779_v41 = vld [vmem:[%s4517_s9 + $0xf8] sm:$0xf0]  ;;  %v2774_v43 = vor.u32 %v3341_v36, %v2771_v37  ;;  %v3396_v36 = vld [vmem:[%s4519_s11 + $0x168] sm:$0xff] }
 0x3cd   : > { %v2658_v25 = vor.u32 %v3327_v23, %v2657_v22  ;;  %v2766_v23 = vor.u32 %v3340_v15, %v2763_v16  ;;  %v3377_v15 = vld [vmem:[%s4519_s11 + $0xd0] sm:$0xff]  ;;  %v3406_v29 = vld [vmem:[%s4519_s11 + $0x1b8] sm:$0xff]  ;;  %v3404_v37 = vld [vmem:[%s4519_s11 + $0x1a8] sm:$0xff] }
 0x3ce   : > { %v677_v46 = vpack.c.bf16 %v676_v45, %v676_v45  ;;  %v3338_v45 = vld [vmem:[%s4517_s9 + $0x9c] sm:$0xf]  ;;  %1154 = vmatpush.bf16.msra.mxu2 %v2746_v44  ;;  %v2705_v44 = vld [vmem:[%s4517_s9 + $0x30] sm:$0xf] }
 0x3cf   : > { %1077 = vmatpush.bf16.msra.mxu1 %v2658_v25  ;;  %v2691_v25 = vld [vmem:[%s4517_s9 + $0x60] sm:$0xf0]  ;;  %v3361_v16 = vld [vmem:[%s4519_s11 + $0x50] sm:$0xff] }
 0x3d0   : > { %2643 = vmatmul.msk.bf16.vlgmr.msrb.gmra.mxu1 %vm523_vm5, %v677_v46  ;;  %v2673_v46 = vld [vmem:[%s4517_s9 + $0x10] sm:$0xf]  ;;  %v2694_v31 = vor.u32 %v3323_v24, %v2691_v25  ;;  %v3390_v24 = vld [vmem:[%s4519_s11 + $0x138] sm:$0xff] }
 0x3d1   : > { %v3414_v25 = vld [vmem:[%s4519_s11 + $0x1f8] sm:$0xff] }
 0x3d3   : > { %1128 = vmatpush.bf16.msrb.mxu1 %v2738_v39  ;;  %v3350_v39 = vld [vmem:[%s4517_s9 + $0xf4] sm:$0xf0] }
 0x42d   : > { %v573_v47 = vpop.f32.mrf.mxu2 }
 0x42e   : > { %577 = vst.msk [vmem:[#allocation2] sm:$0xff] %vm523_vm5, %v573_v47 }
 0x435   : > { %v575_v48 = vpop.f32.mrf.mxu2 }
 0x43d   : > { %v633_v49 = vpop.f32.mrf.mxu2 }
 0x43e   : > { %638 = vrot.lane.b32.xlu1 %v633_v49, %s3638_s22  ;;  %v3329_v49 = vld [vmem:[%s4517_s9 + $0x4c] sm:$0xf0] }
 0x445   : > { %v635_v50 = vpop.f32.mrf.mxu2 }
 0x446   : > { %v3321_v50 = vld [vmem:[%s4517_s9 + $0x14] sm:$0xf] }
 0x44d   : > { %v695_v51 = vpop.f32.mrf.mxu1  ;;  %v757_v52 = vpop.f32.mrf.mxu2 }
 0x44e   : > { %762 = vrot.lane.b32.xlu0 %v757_v52, %s3639_s23  ;;  %700 = vrot.lane.b32.xlu2 %v695_v51, %s3640_s24  ;;  %v2674_v51 = vor.u32 %v3329_v49, %v2673_v46  ;;  %v2675_v52 = vld [vmem:[%s4517_s9 + $0x50] sm:$0xf0]  ;;  %v2782_v46 = vor.u32 %v3342_v40, %v2779_v41  ;;  %v2713_v49 = vld [vmem:[%s4517_s9 + $0x38] sm:$0xf]  ;;  %s2559_s23 = scalar_lea.hbm %s4521_s13, %s3312_s3  ;;  %s431_s24 = scalar_lea.vmem [#allocation3], %s2627_s20 }
 0x44f   : > { %v2678_v55 = vor.u32 %v3321_v50, %v2675_v52  ;;  %v3334_v50 = vld [vmem:[%s4517_s9 + $0x74] sm:$0xf0]  ;;  %v2715_v52 = vld [vmem:[%s4517_s9 + $0x78] sm:$0xf0]  ;;  %v3395_v40 = vld [vmem:[%s4519_s11 + $0x160] sm:$0xff]  ;;  %s2561_s30 = sshll.u32 %s431_s24, 4  ;;  %s2562_s30 = int_to_ptr.vmem [resolvable:$true] %s2561_s30 }
 0x450   : > { %1129 = vmatpush.bf16.msrb.mxu1 %v2674_v51  ;;  %v3326_v51 = vld [vmem:[%s4517_s9 + $0x3c] sm:$0xf]  ;;  %v3403_v41 = vld [vmem:[%s4519_s11 + $0x1a0] sm:$0xff]  ;;  %s2563_s15 = sshll.u32 %s2559_s23, 4  ;;  %s3582_s3 = scalar_lea.hbm %s4521_s13, 16  ;;  %s2564_s15 = int_to_ptr.hbm [resolvable:$true] %s2563_s15 }
 0x451   : > { %1142 = vmatpush.bf16.msrb.mxu3 %v2678_v55  ;;  %v2714_v55 = vor.u32 %v3334_v50, %v2713_v49  ;;  %v3393_v49 = vld [vmem:[%s4519_s11 + $0x150] sm:$0xff]  ;;  %s3576_s16 = sshra.s32 %s2564_s15, 4  ;;  %s3577_s16 = int_to_ptr.hbm [resolvable:$true] %s3576_s16 }
 0x452   : > { %v3401_v50 = vld [vmem:[%s4519_s11 + $0x190] sm:$0xff]  ;;  %s3578_s0 = scalar_lea.hbm %s3577_s16, 8  ;;  %p3583_p0 = scmp.lt.s32.totalorder %s3577_s16, %s4521_s13 }
 0x453   : > { %p3579_p11 = scmp.ne.s32.totalorder %s3577_s16, %s3578_s0  ;;  %p3584_p1 = scmp.lt.s32.totalorder %s3582_s3, %s3578_s0 }
 0x455   : > { %v697_v53 = vpop.f32.mrf.mxu1  ;;  %v759_v54 = vpop.f32.mrf.mxu2  ;;  %p3580_p12 = pnand %p3579_p11, %p3749_p5  ;;  %p3585_p2 = por %p3584_p1, %p3583_p0 }
 0x456   : > { %v2681_v53 = vld [vmem:[%s4517_s9 + $0x18] sm:$0xf] }
 0x457   : > { %v3330_v54 = vld [vmem:[%s4517_s9 + $0x54] sm:$0xf0]  ;;  %p3581_p13 = pneg %p3580_p12 }
 0x458   : > { %v2682_v56 = vor.u32 %v3330_v54, %v2681_v53 }
 0x459   : > { %p3586_p3 = pnand %p3585_p2, %p3581_p13 }
 0x45a   : > { %1155 = vmatpush.bf16.msra.mxu2 %v2682_v56  ;;  %v2718_v56 = vor.u32 %v3326_v51, %v2715_v52  ;;  %v3383_v51 = vld [vmem:[%s4519_s11 + $0x100] sm:$0xff] }
 0x45b   : > { %v3407_v52 = vld [vmem:[%s4519_s11 + $0x1c0] sm:$0xff] }
 0x4a8   : > { %v701_v58 = vpop.permute.xlu2 %700 }
 0x4b0   : > { %v639_v57 = vpop.permute.xlu1 %638 }
 0x4b1   : > { %642 = vst.msk [vmem:[#allocation2] sm:$0xff] %vm641_vm7, %v639_v57  ;;  %v3322_v57 = vld [vmem:[%s4517_s9 + $0x1c] sm:$0xf] }
 0x4b2   : > { %704 = vst.msk [vmem:[#allocation2] sm:$0xff] %vm703_vm8, %v701_v58  ;;  %v2683_v58 = vld [vmem:[%s4517_s9 + $0x58] sm:$0xf0] }
 0x4c0   : > { %v763_v59 = vpop.permute.xlu0 %762 }
 0x4c1   : > { %766 = vst.msk [vmem:[#allocation2] sm:$0xff] %vm765_vm9, %v763_v59  ;;  %v2686_v59 = vor.u32 %v3322_v57, %v2683_v58  ;;  %v3358_v57 = vld [vmem:[%s4519_s11 + $0x38] sm:$0xff] }
 0x4c2   : > { %v3382_v58 = vld [vmem:[%s4519_s11 + $0xf8] sm:$0xff] }
 0x4c8   : > { %v767_v60 = vld [vmem:[#allocation2] sm:$0xff] }
 0x4c9   : > { %v768_v61 = vpack.c.bf16 %v767_v60, %v767_v60 }
 0x4cb   : > { %2654 = vmatmul.msk.bf16.vlgmr.msra.gmra.mxu0 %vm440_vm0, %v768_v61 }
 0x548   : > { %v801_v63 = vpop.f32.mrf.mxu0 }
 0x549   : > { %v802_v0 = vadd.f32 %v3536_v62, %v801_v63 }
 0x54b   : > { %v805_v1 = vadd.f32 %v802_v0, %v802_v0 }
 0x54d   : > { %v808_v2 = vsel %vm440_vm0, %v805_v1, 0.0 }
 0x54e   : > { %809 = vadd.xlane.f32.xlu2 %v808_v2  ;;  %v3537_v2 = vld [vmem:[%s4515_s7] ss:$0 sm:$0xff] }
 0x550   : > { %v803_v3 = vpop.f32.mrf.mxu0 }
 0x5c1   : > { %v810_v4 = vpop.xlane.xlu2 %809 }
 0x5c2   : > { %v811_v5 = vmul.f32 %v810_v4, %v3765_v8  ;;  %v3538_v4 = vld [vmem:[%s4516_s8] ss:$0 sm:$0xff] }
 0x5c4   : > { %v3823_v6 = vsub.f32 %v805_v1, %v811_v5 }
 0x5c6   : > { %v813_v7 = vmul.f32 %v3823_v6, %v3823_v6 }
 0x5c8   : > { %v814_v9 = vsel %vm440_vm0, %v813_v7, 0.0 }
 0x5c9   : > { %815 = vadd.xlane.f32.xlu0 %v814_v9  ;;  %v2753_v9 = vld [vmem:[%s4517_s9 + $0xa0] sm:$0xf] }
 0x5ca   : > { %v2754_v18 = vor.u32 %v3347_v10, %v2753_v9  ;;  %v3363_v9 = vld [vmem:[%s4519_s11 + $0x60] sm:$0xff] }
 0x5cb   : > { %v3371_v10 = vld [vmem:[%s4519_s11 + $0xa0] sm:$0xff] }
 0x63c   : > { %v816_v34 = vpop.xlane.xlu0 %815 }
 0x63d   : > { %v817_v38 = vmul.f32 %v816_v34, %v3765_v8  ;;  %v2747_v8 = vld [vmem:[%s4517_s9 + $0xd8] sm:$0xf0]  ;;  %v2769_v34 = vld [vmem:[%s4517_s9 + $0xb0] sm:$0xf] }
 0x63e   : > { %v2750_v48 = vor.u32 %v3338_v45, %v2747_v8  ;;  %v2770_v42 = vor.u32 %v3349_v35, %v2769_v34  ;;  %v3333_v45 = vld [vmem:[%s4517_s9 + $0x6c] sm:$0xf0]  ;;  %v3388_v34 = vld [vmem:[%s4519_s11 + $0x128] sm:$0xff] }
 0x63f   : > { %v818_v47 = vadd.f32 1e-05, %v817_v38  ;;  %v2777_v38 = vld [vmem:[%s4517_s9 + $0xb8] sm:$0xf]  ;;  %v2706_v53 = vor.u32 %v3333_v45, %v2705_v44  ;;  %v3412_v35 = vld [vmem:[%s4519_s11 + $0x1e8] sm:$0xff]  ;;  %v3385_v44 = vld [vmem:[%s4519_s11 + $0x110] sm:$0xff] }
 0x640   : > { %1167 = vmatpush.bf16.msra.mxu0 %v2750_v48  ;;  %v2778_v8 = vor.u32 %v3350_v39, %v2777_v38  ;;  %v2707_v48 = vld [vmem:[%s4517_s9 + $0x70] sm:$0xf0]  ;;  %v3387_v38 = vld [vmem:[%s4519_s11 + $0x120] sm:$0xff] }
 0x641   : > { %3560 = vrsqrt.f32 %v818_v47  ;;  %vm825_vm11 = vweird.f32 %v818_v47  ;;  %v3411_v39 = vld [vmem:[%s4519_s11 + $0x1e0] sm:$0xff]  ;;  %v3409_v45 = vld [vmem:[%s4519_s11 + $0x1d0] sm:$0xff] }
 0x644   : > { %1168 = vmatpush.bf16.msra.mxu0 %v2686_v59  ;;  %v3366_v59 = vld [vmem:[%s4519_s11 + $0x78] sm:$0xff] }
 0x647   : > { %v3561_v60 = vpop.eup %3560 }
 0x648   : > { %v820_v61 = vmul.f32 %v3561_v60, %v818_v47  ;;  %vm826_vm10 = vweird.f32 %v3561_v60  ;;  %v3325_v47 = vld [vmem:[%s4517_s9 + $0x34] sm:$0xf] }
 0x649   : > { %vm827_vm12 = vmor %vm825_vm11, %vm826_vm10  ;;  %v2710_v54 = vor.u32 %v3325_v47, %v2707_v48  ;;  %v3384_v47 = vld [vmem:[%s4519_s11 + $0x108] sm:$0xff] }
 0x64a   : > { %v821_v62 = vmul.f32 %v3561_v60, %v820_v61  ;;  %v3357_v61 = vld [vmem:[%s4519_s11 + $0x30] sm:$0xff]  ;;  %v3408_v48 = vld [vmem:[%s4519_s11 + $0x1c8] sm:$0xff] }
 0x64c   : > { %v822_v63 = vmul.f32 0.5, %v821_v62  ;;  %v3381_v62 = vld [vmem:[%s4519_s11 + $0xf0] sm:$0xff] }
 0x64e   : > { %v823_v0 = vsub.f32 1.5, %v822_v63  ;;  %v3365_v63 = vld [vmem:[%s4519_s11 + $0x70] sm:$0xff] }
 0x650   : > { %v824_v1 = vmul.f32 %v3561_v60, %v823_v0  ;;  %v3373_v0 = vld [vmem:[%s4519_s11 + $0xb0] sm:$0xff] }
 0x652   : > { %v828_v3 = vsel %vm827_vm12, %v3561_v60, %v824_v1  ;;  %v3374_v60 = vld [vmem:[%s4519_s11 + $0xb8] sm:$0xff]  ;;  %v3356_v1 = vld [vmem:[%s4519_s11 + $0x28] sm:$0xff] }
 0x653   : > { %v829_v5 = vmul.f32 %v828_v3, %v3823_v6  ;;  %v2761_v6 = vld [vmem:[%s4517_s9 + $0xa8] sm:$0xf] }
 0x654   : > { %v2762_v22 = vor.u32 %v3348_v14, %v2761_v6  ;;  %v3364_v3 = vld [vmem:[%s4519_s11 + $0x68] sm:$0xff]  ;;  %v3362_v6 = vld [vmem:[%s4519_s11 + $0x58] sm:$0xff]  ;;  %v3353_v14 = vld [vmem:[%s4519_s11 + $0x10] sm:$0xff] }
 0x655   : > { %v833_v7 = vmul.f32 %v3537_v2, %v829_v5  ;;  %v3380_v2 = vld [vmem:[%s4519_s11 + $0xe8] sm:$0xff]  ;;  %v3355_v5 = vld [vmem:[%s4519_s11 + $0x20] sm:$0xff] }
 0x657   : > { %v837_v13 = vadd.f32 %v3538_v4, %v833_v7  ;;  %v3372_v4 = vld [vmem:[%s4519_s11 + $0xa8] sm:$0xff]  ;;  %v3379_v7 = vld [vmem:[%s4519_s11 + $0xe0] sm:$0xff] }
 0x659   : > { %v3956_v17 = vpack.c.bf16 %v837_v13, %v837_v13  ;;  %v3370_v13 = vld [vmem:[%s4519_s11 + $0x98] sm:$0xff] }
 0x65b   : > { %2783 = vmatmul.msk.bf16.vlgmr.msra.gmra.mxu1 %vm440_vm0, %v3956_v17  ;;  %2784 = vmatmul.msk.bf16.vlgmr.msra.gmra.mxu3 %vm440_vm0, %v3956_v17 }
 0x65c   : > { %2785 = vmatmul.msk.bf16.vlgmr.msrb.gmra.mxu2 %vm440_vm0, %v3956_v17  ;;  %2786 = vmatmul.msk.bf16.vlgmr.msrb.gmra.mxu0 %vm440_vm0, %v3956_v17 }
 0x65d   : > { %1180 = vmatpush.bf16.msra.mxu1 %v2754_v18  ;;  %1193 = vmatpush.bf16.msra.mxu3 %v2758_v19  ;;  %v3352_v18 = vld [vmem:[%s4519_s11 + $0x8] sm:$0xff] }
 0x65e   : > { %1206 = vmatpush.bf16.msrb.mxu2 %v2762_v22  ;;  %1219 = vmatpush.bf16.msrb.mxu0 %v2766_v23  ;;  %v3376_v19 = vld [vmem:[%s4519_s11 + $0xc8] sm:$0xff]  ;;  %v3351_v22 = vld [vmem:[%s4519_s11] sm:$0xff] }
 0x65f   : > { %v3375_v23 = vld [vmem:[%s4519_s11 + $0xc0] sm:$0xff] }
 0x661   : > { %1181 = vmatpush.bf16.msra.mxu1 %v2690_v30  ;;  %1194 = vmatpush.bf16.msra.mxu3 %v2694_v31  ;;  %v3389_v30 = vld [vmem:[%s4519_s11 + $0x130] sm:$0xff] }
 0x662   : > { %1207 = vmatpush.bf16.msrb.mxu2 %v2698_v32  ;;  %1220 = vmatpush.bf16.msrb.mxu0 %v2702_v33  ;;  %v3413_v31 = vld [vmem:[%s4519_s11 + $0x1f0] sm:$0xff] }
 0x663   : > { %v3397_v32 = vld [vmem:[%s4519_s11 + $0x170] sm:$0xff] }
 0x664   : > { %v3405_v33 = vld [vmem:[%s4519_s11 + $0x1b0] sm:$0xff] }
 0x66b   : > { %2787 = vmatmul.msk.bf16.vlgmr.msrb.gmra.mxu1 %vm440_vm0, %v3956_v17  ;;  %2788 = vmatmul.msk.bf16.vlgmr.msrb.gmra.mxu3 %vm440_vm0, %v3956_v17 }
 0x66c   : > { %2789 = vmatmul.msk.bf16.vlgmr.msra.gmra.mxu2 %vm440_vm0, %v3956_v17  ;;  %2790 = vmatmul.msk.bf16.vlgmr.msra.gmra.mxu0 %vm440_vm0, %v3956_v17 }
 0x66d   : > { %1232 = vmatpush.bf16.msrb.mxu1 %v2770_v42  ;;  %1245 = vmatpush.bf16.msrb.mxu3 %v2774_v43  ;;  %v3386_v42 = vld [vmem:[%s4519_s11 + $0x118] sm:$0xff] }
 0x66e   : > { %1258 = vmatpush.bf16.msra.mxu2 %v2778_v8  ;;  %1271 = vmatpush.bf16.msra.mxu0 %v2782_v46  ;;  %v3410_v43 = vld [vmem:[%s4519_s11 + $0x1d8] sm:$0xff] }
 0x66f   : > { %v3394_v8 = vld [vmem:[%s4519_s11 + $0x158] sm:$0xff] }
 0x670   : > { %v3402_v46 = vld [vmem:[%s4519_s11 + $0x198] sm:$0xff] }
 0x671   : > { %1233 = vmatpush.bf16.msrb.mxu1 %v2706_v53  ;;  %1246 = vmatpush.bf16.msrb.mxu3 %v2710_v54  ;;  %v3392_v53 = vld [vmem:[%s4519_s11 + $0x148] sm:$0xff] }
 0x672   : > { %1259 = vmatpush.bf16.msra.mxu2 %v2714_v55  ;;  %1272 = vmatpush.bf16.msra.mxu0 %v2718_v56  ;;  %v3400_v54 = vld [vmem:[%s4519_s11 + $0x188] sm:$0xff]  ;;  %v3391_v55 = vld [vmem:[%s4519_s11 + $0x140] sm:$0xff] }
 0x673   : > { %v3399_v56 = vld [vmem:[%s4519_s11 + $0x180] sm:$0xff] }
 0x67b   : > { %2791 = vmatmul.msk.bf16.vlgmr.msra.gmra.mxu1 %vm440_vm0, %v3956_v17  ;;  %2792 = vmatmul.msk.bf16.vlgmr.msra.gmra.mxu3 %vm440_vm0, %v3956_v17 }
 0x67c   : > { %2793 = vmatmul.msk.bf16.vlgmr.msrb.gmra.mxu2 %vm440_vm0, %v3956_v17  ;;  %2794 = vmatmul.msk.bf16.vlgmr.msrb.gmra.mxu0 %vm440_vm0, %v3956_v17 }
 0x67d   : > { %2338 = vmatpush.bf16.msra.mxu1 %v3358_v57  ;;  %2377 = vmatpush.bf16.msrb.mxu0 %v3382_v58  ;;  %v4257_v57 = vld [vmem:[%s4518_s10] sm:$0xff] }
 0x67e   : > { %2351 = vmatpush.bf16.msra.mxu3 %v3366_v59  ;;  %2364 = vmatpush.bf16.msrb.mxu2 %v3374_v60  ;;  %v875_v58 = vperm.slane %v4257_v57, 0  ;;  %v878_v59 = vperm.slane %v4257_v57, 3 }
 0x681   : > { %2339 = vmatpush.bf16.msra.mxu1 %v3357_v61  ;;  %2378 = vmatpush.bf16.msrb.mxu0 %v3381_v62 }
 0x682   : > { %2352 = vmatpush.bf16.msra.mxu3 %v3365_v63  ;;  %2365 = vmatpush.bf16.msrb.mxu2 %v3373_v0 }
 0x685   : > { %2340 = vmatpush.bf16.msra.mxu1 %v3356_v1  ;;  %2379 = vmatpush.bf16.msrb.mxu0 %v3380_v2  ;;  %v876_v1 = vperm.slane %v4257_v57, 1 }
 0x686   : > { %2353 = vmatpush.bf16.msra.mxu3 %v3364_v3  ;;  %2366 = vmatpush.bf16.msrb.mxu2 %v3372_v4  ;;  %v877_v3 = vperm.slane %v4257_v57, 2  ;;  %v3422_v4 = vld [vmem:[%s4519_s11 + $0x238] sm:$0xff] }
 0x689   : > { %2341 = vmatpush.bf16.msra.mxu1 %v3355_v5  ;;  %2380 = vmatpush.bf16.msrb.mxu0 %v3379_v7  ;;  %v3446_v7 = vld [vmem:[%s4519_s11 + $0x2f8] sm:$0xff] }
 0x68a   : > { %2354 = vmatpush.bf16.msra.mxu3 %v3363_v9  ;;  %2367 = vmatpush.bf16.msrb.mxu2 %v3371_v10 }
 0x68b   : > { %2795 = vmatmul.msk.bf16.vlgmr.msrb.gmra.mxu1 %vm440_vm0, %v3956_v17  ;;  %2796 = vmatmul.msk.bf16.vlgmr.msrb.gmra.mxu3 %vm440_vm0, %v3956_v17 }
 0x68c   : > { %2797 = vmatmul.msk.bf16.vlgmr.msra.gmra.mxu2 %vm440_vm0, %v3956_v17  ;;  %2798 = vmatmul.msk.bf16.vlgmr.msra.gmra.mxu0 %vm440_vm0, %v3956_v17  ;;  %v3369_v17 = vld [vmem:[%s4519_s11 + $0x90] sm:$0xff] }
 0x68d   : > { %2342 = vmatpush.bf16.msra.mxu1 %v3354_v11  ;;  %2381 = vmatpush.bf16.msrb.mxu0 %v3378_v12 }
 0x68e   : > { %2355 = vmatpush.bf16.msra.mxu3 %v3362_v6  ;;  %2368 = vmatpush.bf16.msrb.mxu2 %v3370_v13 }
 0x691   : > { %2343 = vmatpush.bf16.msra.mxu1 %v3353_v14  ;;  %2382 = vmatpush.bf16.msrb.mxu0 %v3377_v15  ;;  %v3421_v14 = vld [vmem:[%s4519_s11 + $0x230] sm:$0xff] }
 0x692   : > { %2356 = vmatpush.bf16.msra.mxu3 %v3361_v16  ;;  %2369 = vmatpush.bf16.msrb.mxu2 %v3369_v17  ;;  %v3445_v17 = vld [vmem:[%s4519_s11 + $0x2f0] sm:$0xff] }
 0x695   : > { %2344 = vmatpush.bf16.msra.mxu1 %v3352_v18  ;;  %2383 = vmatpush.bf16.msrb.mxu0 %v3376_v19  ;;  %v3430_v19 = vld [vmem:[%s4519_s11 + $0x278] sm:$0xff] }
 0x696   : > { %2357 = vmatpush.bf16.msra.mxu3 %v3360_v20  ;;  %2370 = vmatpush.bf16.msrb.mxu2 %v3368_v21  ;;  %v3438_v21 = vld [vmem:[%s4519_s11 + $0x2b8] sm:$0xff] }
 0x699   : > { %2345 = vmatpush.bf16.msra.mxu1 %v3351_v22  ;;  %2384 = vmatpush.bf16.msrb.mxu0 %v3375_v23  ;;  %v3420_v23 = vld [vmem:[%s4519_s11 + $0x228] sm:$0xff] }
 0x69a   : > { %2358 = vmatpush.bf16.msra.mxu3 %v3359_v26  ;;  %2371 = vmatpush.bf16.msrb.mxu2 %v3367_v27  ;;  %v882_v27 = vperm.slane %v4257_v57, 7 }
 0x69d   : > { %2390 = vmatpush.bf16.msrb.mxu1 %v3390_v24  ;;  %2429 = vmatpush.bf16.msra.mxu0 %v3414_v25  ;;  %v3444_v24 = vld [vmem:[%s4519_s11 + $0x2e8] sm:$0xff]  ;;  %v879_v25 = vperm.slane %v4257_v57, 4 }
 0x69e   : > { %2403 = vmatpush.bf16.msrb.mxu3 %v3398_v28  ;;  %2416 = vmatpush.bf16.msra.mxu2 %v3406_v29  ;;  %v3429_v28 = vld [vmem:[%s4519_s11 + $0x270] sm:$0xff] }
 0x6a1   : > { %2391 = vmatpush.bf16.msrb.mxu1 %v3389_v30  ;;  %2430 = vmatpush.bf16.msra.mxu0 %v3413_v31  ;;  %v3437_v30 = vld [vmem:[%s4519_s11 + $0x2b0] sm:$0xff] }
 0x6a2   : > { %2404 = vmatpush.bf16.msrb.mxu3 %v3397_v32  ;;  %2417 = vmatpush.bf16.msra.mxu2 %v3405_v33  ;;  %v3419_v32 = vld [vmem:[%s4519_s11 + $0x220] sm:$0xff] }
 0x6a5   : > { %2392 = vmatpush.bf16.msrb.mxu1 %v3388_v34  ;;  %2431 = vmatpush.bf16.msra.mxu0 %v3412_v35  ;;  %v3443_v35 = vld [vmem:[%s4519_s11 + $0x2e0] sm:$0xff] }
 0x6a6   : > { %2405 = vmatpush.bf16.msrb.mxu3 %v3396_v36  ;;  %2418 = vmatpush.bf16.msra.mxu2 %v3404_v37  ;;  %v3428_v37 = vld [vmem:[%s4519_s11 + $0x268] sm:$0xff] }
 0x6a9   : > { %2393 = vmatpush.bf16.msrb.mxu1 %v3387_v38  ;;  %2432 = vmatpush.bf16.msra.mxu0 %v3411_v39  ;;  %v3436_v39 = vld [vmem:[%s4519_s11 + $0x2a8] sm:$0xff] }
 0x6aa   : > { %2406 = vmatpush.bf16.msrb.mxu3 %v3395_v40  ;;  %2419 = vmatpush.bf16.msra.mxu2 %v3403_v41  ;;  %v880_v40 = vperm.slane %v4257_v57, 5 }
 0x6ad   : > { %2394 = vmatpush.bf16.msrb.mxu1 %v3386_v42  ;;  %2433 = vmatpush.bf16.msra.mxu0 %v3410_v43  ;;  %v881_v42 = vperm.slane %v4257_v57, 6  ;;  %v3418_v43 = vld [vmem:[%s4519_s11 + $0x218] sm:$0xff] }
 0x6ae   : > { %2407 = vmatpush.bf16.msrb.mxu3 %v3394_v8  ;;  %2420 = vmatpush.bf16.msra.mxu2 %v3402_v46 }
 0x6b1   : > { %2395 = vmatpush.bf16.msrb.mxu1 %v3385_v44  ;;  %2434 = vmatpush.bf16.msra.mxu0 %v3409_v45  ;;  %v3442_v45 = vld [vmem:[%s4519_s11 + $0x2d8] sm:$0xff] }
 0x6b2   : > { %2408 = vmatpush.bf16.msrb.mxu3 %v3393_v49  ;;  %2421 = vmatpush.bf16.msra.mxu2 %v3401_v50  ;;  %v3435_v50 = vld [vmem:[%s4519_s11 + $0x2a0] sm:$0xff] }
 0x6b5   : > { %2396 = vmatpush.bf16.msrb.mxu1 %v3384_v47  ;;  %2435 = vmatpush.bf16.msra.mxu0 %v3408_v48  ;;  %v3427_v47 = vld [vmem:[%s4519_s11 + $0x260] sm:$0xff] }
 0x6b6   : > { %2409 = vmatpush.bf16.msrb.mxu3 %v3392_v53  ;;  %2422 = vmatpush.bf16.msra.mxu2 %v3400_v54  ;;  %v3417_v53 = vld [vmem:[%s4519_s11 + $0x210] sm:$0xff] }
 0x6b9   : > { %2397 = vmatpush.bf16.msrb.mxu1 %v3383_v51  ;;  %2436 = vmatpush.bf16.msra.mxu0 %v3407_v52 }
 0x6ba   : > { %2410 = vmatpush.bf16.msrb.mxu3 %v3391_v55  ;;  %2423 = vmatpush.bf16.msra.mxu2 %v3399_v56  ;;  %v3441_v56 = vld [vmem:[%s4519_s11 + $0x2d0] sm:$0xff] }
 0x6d8   : > { %v1079_v60 = vpop.f32.mrf.mxu1 }
 0x6d9   : > { %v1080_v61 = vadd.f32 %v1079_v60, %v875_v58  ;;  %v1118_v62 = vpop.f32.mrf.mxu0  ;;  %v3426_v58 = vld [vmem:[%s4519_s11 + $0x258] sm:$0xff] }
 0x6da   : > { %v1119_v63 = vadd.f32 %v1118_v62, %v878_v59  ;;  %v4333_v59 = vld [vmem:[%s4518_s10 + $0x8] sm:$0xff] }
 0x6db   : > { %v1278_v0 = vmax.f32 %v1080_v61, 0.0  ;;  %v3434_v61 = vld [vmem:[%s4519_s11 + $0x298] sm:$0xff] }
 0x6dc   : > { %v1281_v2 = vmax.f32 %v1119_v63, 0.0  ;;  %v3416_v63 = vld [vmem:[%s4519_s11 + $0x208] sm:$0xff] }
 0x6dd   : > { %v1294_v5 = vpack.c.bf16 %v1278_v0, %v1278_v0  ;;  %v3440_v0 = vld [vmem:[%s4519_s11 + $0x2c8] sm:$0xff] }
 0x6de   : > { %v1297_v9 = vpack.c.bf16 %v1281_v2, %v1281_v2  ;;  %v1092_v10 = vpop.f32.mrf.mxu3 }
 0x6df   : > { %v1093_v11 = vadd.f32 %v1092_v10, %v876_v1  ;;  %v1105_v12 = vpop.f32.mrf.mxu2  ;;  %2346 = vmatmul.bf16.vlgmr.msra.gmra.mxu1 %v1294_v5  ;;  %v883_v1 = vperm.slane %v4333_v59, 0  ;;  %v3415_v10 = vld [vmem:[%s4519_s11 + $0x200] sm:$0xff] }
 0x6e0   : > { %v1106_v6 = vadd.f32 %v1105_v12, %v877_v3  ;;  %2385 = vmatmul.bf16.vlgmr.msrb.gmra.mxu0 %v1297_v9  ;;  %2442 = vmatpush.bf16.msra.mxu1 %v3422_v4  ;;  %v1081_v13 = vpop.f32.mrf.mxu1  ;;  %v886_v3 = vperm.slane %v4333_v59, 3  ;;  %v3425_v4 = vld [vmem:[%s4519_s11 + $0x250] sm:$0xff] }
 0x6e1   : > { %v1279_v15 = vmax.f32 %v1093_v11, 0.0  ;;  %2481 = vmatpush.bf16.msrb.mxu0 %v3446_v7  ;;  %v1120_v16 = vpop.f32.mrf.mxu0  ;;  %v3433_v7 = vld [vmem:[%s4519_s11 + $0x290] sm:$0xff]  ;;  %v3454_v13 = vld [vmem:[%s4519_s11 + $0x338] sm:$0xff] }
 0x6e2   : > { %v1280_v18 = vmax.f32 %v1106_v6, 0.0  ;;  %v3439_v6 = vld [vmem:[%s4519_s11 + $0x2c0] sm:$0xff]  ;;  %v3424_v16 = vld [vmem:[%s4519_s11 + $0x248] sm:$0xff] }
 0x6e3   : > { %v1295_v20 = vpack.c.bf16 %v1279_v15, %v1279_v15  ;;  %v3478_v15 = vld [vmem:[%s4519_s11 + $0x3f8] sm:$0xff] }
 0x6e4   : > { %v1296_v22 = vpack.c.bf16 %v1280_v18, %v1280_v18  ;;  %2443 = vmatpush.bf16.msra.mxu1 %v3421_v14  ;;  %v3432_v18 = vld [vmem:[%s4519_s11 + $0x288] sm:$0xff] }
 0x6e5   : > { %2482 = vmatpush.bf16.msrb.mxu0 %v3445_v17  ;;  %2359 = vmatmul.bf16.vlgmr.msra.gmra.mxu3 %v1295_v20 }
 0x6e6   : > { %2372 = vmatmul.bf16.vlgmr.msrb.gmra.mxu2 %v1296_v22  ;;  %2455 = vmatpush.bf16.msra.mxu3 %v3430_v19  ;;  %v1094_v26 = vpop.f32.mrf.mxu3  ;;  %v884_v19 = vperm.slane %v4333_v59, 1 }
 0x6e7   : > { %2468 = vmatpush.bf16.msrb.mxu2 %v3438_v21  ;;  %v1107_v29 = vpop.f32.mrf.mxu2  ;;  %v885_v21 = vperm.slane %v4333_v59, 2  ;;  %v3477_v26 = vld [vmem:[%s4519_s11 + $0x3f0] sm:$0xff] }
 0x6e8   : > { %2444 = vmatpush.bf16.msra.mxu1 %v3420_v23  ;;  %v1131_v31 = vpop.f32.mrf.mxu1  ;;  %v3453_v23 = vld [vmem:[%s4519_s11 + $0x330] sm:$0xff] }
 0x6e9   : > { %2483 = vmatpush.bf16.msrb.mxu0 %v3444_v24  ;;  %v1132_v33 = vadd.f32 %v1131_v31, %v879_v25  ;;  %v1170_v34 = vpop.f32.mrf.mxu0  ;;  %v3462_v31 = vld [vmem:[%s4519_s11 + $0x378] sm:$0xff] }
 0x6ea   : > { %v1171_v36 = vadd.f32 %v1170_v34, %v882_v27  ;;  %2456 = vmatpush.bf16.msra.mxu3 %v3429_v28  ;;  %v3423_v27 = vld [vmem:[%s4519_s11 + $0x240] sm:$0xff]  ;;  %v3470_v34 = vld [vmem:[%s4519_s11 + $0x3b8] sm:$0xff] }
 0x6eb   : > { %v1282_v38 = vmax.f32 %v1132_v33, 0.0  ;;  %2469 = vmatpush.bf16.msrb.mxu2 %v3437_v30  ;;  %v3431_v30 = vld [vmem:[%s4519_s11 + $0x280] sm:$0xff] }
 0x6ec   : > { %v1285_v41 = vmax.f32 %v1171_v36, 0.0  ;;  %2445 = vmatpush.bf16.msra.mxu1 %v3419_v32 }
 0x6ed   : > { %v1298_v44 = vpack.c.bf16 %v1282_v38, %v1282_v38  ;;  %2484 = vmatpush.bf16.msrb.mxu0 %v3443_v35 }
 0x6ee   : > { %v1301_v8 = vpack.c.bf16 %v1285_v41, %v1285_v41  ;;  %2457 = vmatpush.bf16.msra.mxu3 %v3428_v37  ;;  %v1144_v46 = vpop.f32.mrf.mxu3  ;;  %v3452_v37 = vld [vmem:[%s4519_s11 + $0x328] sm:$0xff]  ;;  %v3461_v41 = vld [vmem:[%s4519_s11 + $0x370] sm:$0xff] }
 0x6ef   : > { %2470 = vmatpush.bf16.msrb.mxu2 %v3436_v39  ;;  %v1145_v48 = vadd.f32 %v1144_v46, %v880_v40  ;;  %v1157_v49 = vpop.f32.mrf.mxu2  ;;  %2398 = vmatmul.bf16.vlgmr.msrb.gmra.mxu1 %v1298_v44  ;;  %v3476_v39 = vld [vmem:[%s4519_s11 + $0x3e8] sm:$0xff]  ;;  %v3451_v44 = vld [vmem:[%s4519_s11 + $0x320] sm:$0xff] }
 0x6f0   : > { %v1158_v51 = vadd.f32 %v1157_v49, %v881_v42  ;;  %2437 = vmatmul.bf16.vlgmr.msra.gmra.mxu0 %v1301_v8  ;;  %2446 = vmatpush.bf16.msra.mxu1 %v3418_v43  ;;  %v1133_v52 = vpop.f32.mrf.mxu1  ;;  %v3469_v43 = vld [vmem:[%s4519_s11 + $0x3b0] sm:$0xff]  ;;  %v3475_v8 = vld [vmem:[%s4519_s11 + $0x3e0] sm:$0xff]  ;;  %v3468_v49 = vld [vmem:[%s4519_s11 + $0x3a8] sm:$0xff] }
 0x6f1   : > { %v1283_v54 = vmax.f32 %v1145_v48, 0.0  ;;  %2485 = vmatpush.bf16.msrb.mxu0 %v3442_v45  ;;  %v1172_v55 = vpop.f32.mrf.mxu0  ;;  %v3474_v52 = vld [vmem:[%s4519_s11 + $0x3d8] sm:$0xff] }
 0x6f2   : > { %v1284_v57 = vmax.f32 %v1158_v51, 0.0  ;;  %2458 = vmatpush.bf16.msra.mxu3 %v3427_v47  ;;  %v3460_v47 = vld [vmem:[%s4519_s11 + $0x368] sm:$0xff]  ;;  %v3450_v51 = vld [vmem:[%s4519_s11 + $0x318] sm:$0xff]  ;;  %v3449_v55 = vld [vmem:[%s4519_s11 + $0x310] sm:$0xff] }
 0x6f3   : > { %v1299_v60 = vpack.c.bf16 %v1283_v54, %v1283_v54  ;;  %2471 = vmatpush.bf16.msrb.mxu2 %v3435_v50  ;;  %v3467_v54 = vld [vmem:[%s4519_s11 + $0x3a0] sm:$0xff] }
 0x6f4   : > { %v1300_v62 = vpack.c.bf16 %v1284_v57, %v1284_v57  ;;  %2447 = vmatpush.bf16.msra.mxu1 %v3417_v53  ;;  %v3459_v53 = vld [vmem:[%s4519_s11 + $0x360] sm:$0xff] }
 0x6f5   : > { %2486 = vmatpush.bf16.msrb.mxu0 %v3441_v56  ;;  %2411 = vmatmul.bf16.vlgmr.msrb.gmra.mxu3 %v1299_v60  ;;  %v887_v56 = vperm.slane %v4333_v59, 4  ;;  %v890_v60 = vperm.slane %v4333_v59, 7 }
 0x6f6   : > { %2424 = vmatmul.bf16.vlgmr.msra.gmra.mxu2 %v1300_v62  ;;  %2459 = vmatpush.bf16.msra.mxu3 %v3426_v58  ;;  %v1146_v2 = vpop.f32.mrf.mxu3  ;;  %v3473_v58 = vld [vmem:[%s4519_s11 + $0x3d0] sm:$0xff]  ;;  %v3458_v62 = vld [vmem:[%s4519_s11 + $0x358] sm:$0xff] }
 0x6f7   : > { %2472 = vmatpush.bf16.msrb.mxu2 %v3434_v61  ;;  %v1159_v5 = vpop.f32.mrf.mxu2  ;;  %v3448_v2 = vld [vmem:[%s4519_s11 + $0x308] sm:$0xff] }
 0x6f8   : > { %2448 = vmatpush.bf16.msra.mxu1 %v3416_v63  ;;  %v1183_v9 = vpop.f32.mrf.mxu1 }
 0x6f9   : > { %2487 = vmatpush.bf16.msrb.mxu0 %v3440_v0  ;;  %v1184_v11 = vadd.f32 %v1183_v9, %v883_v1  ;;  %v1222_v12 = vpop.f32.mrf.mxu0  ;;  %v3466_v0 = vld [vmem:[%s4519_s11 + $0x398] sm:$0xff]  ;;  %v888_v9 = vperm.slane %v4333_v59, 5 }
 0x6fa   : > { %v1223_v14 = vadd.f32 %v1222_v12, %v886_v3  ;;  %2460 = vmatpush.bf16.msra.mxu3 %v3425_v4  ;;  %v3472_v4 = vld [vmem:[%s4519_s11 + $0x3c8] sm:$0xff]  ;;  %v3447_v12 = vld [vmem:[%s4519_s11 + $0x300] sm:$0xff] }
 0x6fb   : > { %v1286_v17 = vmax.f32 %v1184_v11, 0.0  ;;  %2473 = vmatpush.bf16.msrb.mxu2 %v3433_v7  ;;  %v3457_v7 = vld [vmem:[%s4519_s11 + $0x350] sm:$0xff]  ;;  %v889_v11 = vperm.slane %v4333_v59, 6 }
 0x6fc   : > { %v1289_v20 = vmax.f32 %v1223_v14, 0.0  ;;  %2449 = vmatpush.bf16.msra.mxu1 %v3415_v10  ;;  %v3465_v10 = vld [vmem:[%s4519_s11 + $0x390] sm:$0xff]  ;;  %v3471_v14 = vld [vmem:[%s4519_s11 + $0x3c0] sm:$0xff] }
 0x6fd   : > { %v1302_v22 = vpack.c.bf16 %v1286_v17, %v1286_v17  ;;  %2488 = vmatpush.bf16.msrb.mxu0 %v3439_v6  ;;  %v3456_v17 = vld [vmem:[%s4519_s11 + $0x348] sm:$0xff] }
 0x6fe   : > { %v1305_v24 = vpack.c.bf16 %v1289_v20, %v1289_v20  ;;  %2461 = vmatpush.bf16.msra.mxu3 %v3424_v16  ;;  %v1196_v25 = vpop.f32.mrf.mxu3 }
 0x6ff   : > { %2474 = vmatpush.bf16.msrb.mxu2 %v3432_v18  ;;  %v1197_v28 = vadd.f32 %v1196_v25, %v884_v19  ;;  %v1209_v29 = vpop.f32.mrf.mxu2  ;;  %2450 = vmatmul.bf16.vlgmr.msra.gmra.mxu1 %v1302_v22  ;;  %v3464_v18 = vld [vmem:[%s4519_s11 + $0x388] sm:$0xff]  ;;  %v3455_v22 = vld [vmem:[%s4519_s11 + $0x340] sm:$0xff] }
 0x700   : > { %2494 = vmatpush.bf16.msrb.mxu1 %v3454_v13  ;;  %v1210_v32 = vadd.f32 %v1209_v29, %v885_v21  ;;  %2489 = vmatmul.bf16.vlgmr.msrb.gmra.mxu0 %v1305_v24  ;;  %v1185_v33 = vpop.f32.mrf.mxu1  ;;  %v3463_v24 = vld [vmem:[%s4519_s11 + $0x380] sm:$0xff] }
 0x701   : > { %2533 = vmatpush.bf16.msra.mxu0 %v3478_v15  ;;  %v1287_v35 = vmax.f32 %v1197_v28, 0.0  ;;  %v1224_v36 = vpop.f32.mrf.mxu0 }
 0x702   : > { %v1288_v38 = vmax.f32 %v1210_v32, 0.0  ;;  %2462 = vmatpush.bf16.msra.mxu3 %v3423_v27 }
 0x703   : > { %v1303_v40 = vpack.c.bf16 %v1287_v35, %v1287_v35  ;;  %2475 = vmatpush.bf16.msrb.mxu2 %v3431_v30 }
 0x704   : > { %2495 = vmatpush.bf16.msrb.mxu1 %v3453_v23  ;;  %v1304_v42 = vpack.c.bf16 %v1288_v38, %v1288_v38 }
 0x705   : > { %2534 = vmatpush.bf16.msra.mxu0 %v3477_v26  ;;  %2463 = vmatmul.bf16.vlgmr.msra.gmra.mxu3 %v1303_v40  ;;  %v3539_v40 = vld [vmem:[%s4520_s12] ss:$0 sm:$0xff] }
 0x706   : > { %2507 = vmatpush.bf16.msrb.mxu3 %v3462_v31  ;;  %2476 = vmatmul.bf16.vlgmr.msrb.gmra.mxu2 %v1304_v42  ;;  %v1198_v45 = vpop.f32.mrf.mxu3 }
 0x707   : > { %2520 = vmatpush.bf16.msra.mxu2 %v3470_v34  ;;  %v1211_v46 = vpop.f32.mrf.mxu2 }
 0x708   : > { %2496 = vmatpush.bf16.msrb.mxu1 %v3452_v37  ;;  %v1235_v48 = vpop.f32.mrf.mxu1 }
 0x709   : > { %2535 = vmatpush.bf16.msra.mxu0 %v3476_v39  ;;  %v1274_v50 = vpop.f32.mrf.mxu0  ;;  %v1236_v3 = vadd.f32 %v1235_v48, %v887_v56 }
 0x70a   : > { %2508 = vmatpush.bf16.msrb.mxu3 %v3461_v41  ;;  %v1275_v5 = vadd.f32 %v1274_v50, %v890_v60 }
 0x70b   : > { %2521 = vmatpush.bf16.msra.mxu2 %v3469_v43  ;;  %v1290_v6 = vmax.f32 %v1236_v3, 0.0 }
 0x70c   : > { %2497 = vmatpush.bf16.msrb.mxu1 %v3451_v44  ;;  %v1293_v15 = vmax.f32 %v1275_v5, 0.0 }
 0x70d   : > { %2536 = vmatpush.bf16.msra.mxu0 %v3475_v8  ;;  %v1306_v20 = vpack.c.bf16 %v1290_v6, %v1290_v6 }
 0x70e   : > { %2509 = vmatpush.bf16.msrb.mxu3 %v3460_v47  ;;  %v1248_v57 = vpop.f32.mrf.mxu3  ;;  %v1309_v21 = vpack.c.bf16 %v1293_v15, %v1293_v15 }
 0x70f   : > { %2522 = vmatpush.bf16.msra.mxu2 %v3468_v49  ;;  %v1261_v61 = vpop.f32.mrf.mxu2  ;;  %v1249_v59 = vadd.f32 %v1248_v57, %v888_v9 }
 0x710   : > { %2498 = vmatpush.bf16.msrb.mxu1 %v3450_v51  ;;  %v1237_v63 = vpop.f32.mrf.mxu1  ;;  %v1262_v19 = vadd.f32 %v1261_v61, %v889_v11 }
 0x711   : > { %2537 = vmatpush.bf16.msra.mxu0 %v3474_v52  ;;  %v1276_v1 = vpop.f32.mrf.mxu0  ;;  %v1291_v23 = vmax.f32 %v1249_v59, 0.0 }
 0x712   : > { %2510 = vmatpush.bf16.msrb.mxu3 %v3459_v53  ;;  %v1292_v25 = vmax.f32 %v1262_v19, 0.0 }
 0x713   : > { %2523 = vmatpush.bf16.msra.mxu2 %v3467_v54  ;;  %v1307_v26 = vpack.c.bf16 %v1291_v23, %v1291_v23 }
 0x714   : > { %2499 = vmatpush.bf16.msrb.mxu1 %v3449_v55  ;;  %v1308_v27 = vpack.c.bf16 %v1292_v25, %v1292_v25 }
 0x715   : > { %2538 = vmatpush.bf16.msra.mxu0 %v3473_v58 }
 0x716   : > { %2511 = vmatpush.bf16.msrb.mxu3 %v3458_v62  ;;  %v1250_v13 = vpop.f32.mrf.mxu3 }
 0x717   : > { %2524 = vmatpush.bf16.msra.mxu2 %v3466_v0  ;;  %v1263_v16 = vpop.f32.mrf.mxu2 }
 0x718   : > { %2500 = vmatpush.bf16.msrb.mxu1 %v3448_v2 }
 0x719   : > { %2539 = vmatpush.bf16.msra.mxu0 %v3472_v4 }
 0x71a   : > { %2512 = vmatpush.bf16.msrb.mxu3 %v3457_v7 }
 0x71b   : > { %2525 = vmatpush.bf16.msra.mxu2 %v3465_v10 }
 0x71c   : > { %2501 = vmatpush.bf16.msrb.mxu1 %v3447_v12 }
 0x71d   : > { %2540 = vmatpush.bf16.msra.mxu0 %v3471_v14 }
 0x71e   : > { %2513 = vmatpush.bf16.msrb.mxu3 %v3456_v17 }
 0x71f   : > { %2526 = vmatpush.bf16.msra.mxu2 %v3464_v18  ;;  %2502 = vmatmul.bf16.vlgmr.msrb.gmra.mxu1 %v1306_v20 }
 0x720   : > { %2541 = vmatmul.bf16.vlgmr.msra.gmra.mxu0 %v1309_v21 }
 0x722   : > { %2514 = vmatpush.bf16.msrb.mxu3 %v3455_v22 }
 0x723   : > { %2527 = vmatpush.bf16.msra.mxu2 %v3463_v24 }
 0x725   : > { %2515 = vmatmul.bf16.vlgmr.msrb.gmra.mxu3 %v1307_v26 }
 0x726   : > { %2528 = vmatmul.bf16.vlgmr.msra.gmra.mxu2 %v1308_v27 }
 0x75c   : > { %v2347_v28 = vpop.f32.mrf.mxu1 }
 0x75d   : > { %v2386_v29 = vpop.f32.mrf.mxu0  ;;  %v2348_v43 = vadd.f32 %v3539_v40, %v2347_v28 }
 0x764   : > { %v2349_v30 = vpop.f32.mrf.mxu1 }
 0x765   : > { %v2388_v31 = vpop.f32.mrf.mxu0 }
 0x768   : > { %v2360_v32 = vpop.f32.mrf.mxu3 }
 0x769   : > { %v2373_v33 = vpop.f32.mrf.mxu2  ;;  %v2361_v8 = vadd.f32 %v2360_v32, %v2348_v43 }
 0x76b   : > { %v2374_v48 = vadd.f32 %v2373_v33, %v2361_v8 }
 0x76c   : > { %v2399_v34 = vpop.f32.mrf.mxu1 }
 0x76d   : > { %v2438_v35 = vpop.f32.mrf.mxu0  ;;  %v2387_v51 = vadd.f32 %v2386_v29, %v2374_v48 }
 0x76f   : > { %v2400_v54 = vadd.f32 %v2399_v34, %v2387_v51 }
 0x770   : > { %v2362_v36 = vpop.f32.mrf.mxu3 }
 0x771   : > { %v2375_v37 = vpop.f32.mrf.mxu2 }
 0x774   : > { %v2401_v38 = vpop.f32.mrf.mxu1 }
 0x775   : > { %v2440_v39 = vpop.f32.mrf.mxu0 }
 0x778   : > { %v2412_v41 = vpop.f32.mrf.mxu3 }
 0x779   : > { %v2425_v42 = vpop.f32.mrf.mxu2  ;;  %v2413_v55 = vadd.f32 %v2412_v41, %v2400_v54 }
 0x77b   : > { %v2426_v56 = vadd.f32 %v2425_v42, %v2413_v55 }
 0x77c   : > { %v2451_v44 = vpop.f32.mrf.mxu1 }
 0x77d   : > { %v2490_v45 = vpop.f32.mrf.mxu0  ;;  %v2439_v60 = vadd.f32 %v2438_v35, %v2426_v56 }
 0x77f   : > { %v2452_v61 = vadd.f32 %v2451_v44, %v2439_v60 }
 0x780   : > { %v2414_v46 = vpop.f32.mrf.mxu3 }
 0x781   : > { %v2427_v47 = vpop.f32.mrf.mxu2 }
 0x784   : > { %v2453_v49 = vpop.f32.mrf.mxu1 }
 0x785   : > { %v2492_v50 = vpop.f32.mrf.mxu0 }
 0x788   : > { %v2464_v52 = vpop.f32.mrf.mxu3 }
 0x789   : > { %v2477_v53 = vpop.f32.mrf.mxu2  ;;  %v2465_v63 = vadd.f32 %v2464_v52, %v2452_v61 }
 0x78b   : > { %v2478_v1 = vadd.f32 %v2477_v53, %v2465_v63 }
 0x78d   : > { %v2491_v3 = vadd.f32 %v2490_v45, %v2478_v1 }
 0x790   : > { %v2466_v57 = vpop.f32.mrf.mxu3 }
 0x791   : > { %v2479_v58 = vpop.f32.mrf.mxu2 }
 0x79c   : > { %v2503_v62 = vpop.f32.mrf.mxu1 }
 0x79d   : > { %v2542_v0 = vpop.f32.mrf.mxu0  ;;  %v2504_v5 = vadd.f32 %v2503_v62, %v2491_v3 }
 0x7a4   : > { %v2505_v2 = vpop.f32.mrf.mxu1 }
 0x7a5   : > { %v2544_v4 = vpop.f32.mrf.mxu0 }
 0x7a8   : > { %v2516_v7 = vpop.f32.mrf.mxu3 }
 0x7a9   : > { %v2517_v9 = vadd.f32 %v2516_v7, %v2504_v5  ;;  %v2529_v10 = vpop.f32.mrf.mxu2 }
 0x7ab   : > { %v2530_v11 = vadd.f32 %v2529_v10, %v2517_v9 }
 0x7ad   : > { %v2543_v12 = vadd.f32 %v2542_v0, %v2530_v11 }
 0x7af   : > { %v2546_v6 = vadd.f32 %v2543_v12, %v2543_v12 }
 0x7b0   : > { %v2518_v13 = vpop.f32.mrf.mxu3 }
 0x7b1   : > { %v2531_v14 = vpop.f32.mrf.mxu2  ;;  %2547 = vst.msk [vmem:[%s431_s24] sm:$0xff] %vm440_vm0, %v2546_v6 }
 0x7b2   : > { %3589 = shalt.err (!%p3586_p3)
}
 0x7b3   : > { %3479 = dma.vmem_to_hbm [thread:$0]  (%p3749_p5), %s2562_s30, 128, %s2564_s15, %s2549_s29  }
 0x7b4 PF: > { %p3485_p4 = scmp.ge.s32.totalorder %s3624_s28, 2  ;;  %s2575_s2 = sand.u32 1, %s3612_s25  }
 0x7b5   : > { %s2576_s23 = scalar_lea.sflag [#allocation4], %s2575_s2 }
 0x7b6   : > { %p3482_p7 = pnand %p3485_p4, %p3753_p6 }
 0x7b8   : > { %p3483_p8 = pneg %p3482_p7 }
 0x7ba   : > { %3607 = dma.done.wait (%p3483_p8), %s2576_s23, 128  }
 0x7bb   : > { %3609 = vsyncadd (%p3483_p8), %s2576_s23, 4294967168  ;;  %p23_p9 = scmp.ge.s32.totalorder %s3736_s14, 4   ;;  %s4532_s25 = smov %s3616_s26 }
 0x7bc   : > { %s4533_s26 = smov %s3620_s27  ;;  %s4534_s27 = smov %s3747_s17 }
 0x7bd   : > { %s4535_s28 = smov %s3736_s14  ;;  %25 = sbr.rel (!%p23_p9) target bundleno = 8 (0x8), region = 107 }
 0x7c2   :  { %2582 = vsyncpa [#allocation4], 1 }
 0x7c3   :  { %2584 = vsyncpa [#allocation4 + $0x1], 1 }

// kernel: tpu_custom_call.1
= control target key start
LH: loop header
LB: loop body
LE: loop exit
PB: predicated region body
PF: predicated region fallthrough
CT: control target
= control target key end

     0   :  { %s4508_s0 = inlined_call_operand.vmem [shape: f32[16,32], index: 0, kind: input, shape index: {}]   ;;  %s4509_s1 = inlined_call_operand.vmem [shape: f32[1,32], index: 1, kind: input, shape index: {}]   ;;  %s4510_s2 = inlined_call_operand.vmem [shape: f32[1,32], index: 2, kind: input, shape index: {}]   ;;  %s4511_s3 = inlined_call_operand.vmem [shape: bf16[32,96], index: 3, kind: input, shape index: {}]   ;;  %s4512_s4 = inlined_call_operand.vmem [shape: f32[1,96], index: 4, kind: input, shape index: {}]   ;;  %s4513_s5 = inlined_call_operand.vmem [shape: bf16[32,32], index: 5, kind: input, shape index: {}]   ;;  %s4514_s6 = inlined_call_operand.vmem [shape: f32[1,32], index: 6, kind: input, shape index: {}]   ;;  %s4515_s7 = inlined_call_operand.vmem [shape: f32[1,32], index: 7, kind: input, shape index: {}]   ;;  %s4516_s8 = inlined_call_operand.vmem [shape: f32[1,32], index: 8, kind: input, shape index: {}]   ;;  %s4517_s9 = inlined_call_operand.vmem [shape: bf16[32,2048], index: 9, kind: input, shape index: {}]   ;;  %s4518_s10 = inlined_call_operand.vmem [shape: f32[1,2048], index: 10, kind: input, shape index: {}]   ;;  %s4519_s11 = inlined_call_operand.vmem [shape: bf16[2048,32], index: 11, kind: input, shape index: {}]   ;;  %s4520_s12 = inlined_call_operand.vmem [shape: f32[1,32], index: 12, kind: input, shape index: {}]   ;;  %s4521_s13 = inlined_call_operand.hbm [shape: f32[16,32], index: 13, kind: output, shape index: {}]  }
   0x1   :  { %4522 = sst [smem:[#allocation6_spill]] %s4508_s0 }
   0x2   :  { %4523 = sst [smem:[#allocation7_spill]] %s4509_s1 }
   0x3   :  { %4524 = sst [smem:[#allocation8_spill]] %s4510_s2 }
   0x4   :  { %4525 = sst [smem:[#allocation9_spill]] %s4511_s3 }
   0x5   :  { %18 = vsyncpa [#allocation4], 0 }
   0x6   :  { %20 = vsyncpa [#allocation4 + $0x1], 0  ;;  %s3711_s25 = smov 0   ;;  %s3713_s26 = smov 0  }
   0x7   :  { %s3715_s27 = smov 0   ;;  %s3717_s28 = smov 0  }
   0x8 LB: > { %s3732_s29 = sadd.s32 4294967295, %s3624_s28   ;;  %s2623_s30 = sadd.s32 4294967294, %s3624_s28   ;;  %s3624_s28 = sphi %s3717_s28, %s4535_s28   ;;  %s3620_s27 = sphi %s3715_s27, %s4534_s27   ;;  %s3616_s26 = sphi %s3713_s26, %s4533_s26   ;;  %s3612_s25 = sphi %s3711_s25, %s4532_s25  }
   0x9   : > { %s3736_s14 = sadd.s32 1, %s3624_s28   ;;  %s311_s15 = sadd.s32 1, %s3620_s27 }
   0xa   : > { %s308_s16 = ssub.s32 %s3624_s28, %s3736_s14  ;;  %p321_p0 = scmp.ne.s32.totalorder %s3620_s27, %s3616_s26 }
   0xb   : > { %p309_p1 = scmp.eq.s32.totalorder %s308_s16, 0  ;;  %p322_p2 = scmp.eq.s32.totalorder %s3732_s29, 1 }
   0xc   : > { %p327_p3 = scmp.ne.s32.totalorder %s3616_s26, %s3612_s25  ;;  %p328_p4 = scmp.eq.s32.totalorder %s2623_s30, 1 }
   0xd   : > { %s3747_s17 = scalar_select %p309_p1, %s3620_s27, %s311_s15  }
   0xe   : > { %p3749_p5 = por %p322_p2, %p321_p0  ;;  %p3753_p6 = por %p328_p4, %p327_p3 }
   0xf   : > { %p2626_p7 = scmp.ge.s32.totalorder %s3624_s28, 1  ;;  %p389_p8 = scmp.lt.s32.totalorder %s3624_s28, 3 }
  0x11   : > { %p390_p9 = pnand %p2626_p7, %p389_p8 }
  0x12   : > { %p432_p10 = scmp.lt.s32.totalorder (!%p390_p9), %s3732_s29, 1  ;;  %s4528_s0 = sld [smem:[#allocation6_spill]] (!%p390_p9) }
  0x13   : > { %393 = sbr.rel (%p390_p9) target bundleno = 1972 (0x7b4), region = 72  ;;  %s4529_s3 = sld [smem:[#allocation9_spill]] (!%p390_p9) }
  0x14   : > { %s4530_s1 = sld [smem:[#allocation7_spill]] (!%p390_p9)  ;;  %s3627_s16 = smov (!%p390_p9), 96  }
  0x15   : > { %s4531_s2 = sld [smem:[#allocation8_spill]] (!%p390_p9)  ;;  %s3630_s22 = smov (!%p390_p9), 88  }
  0x16   : > { %s3631_s23 = smov (!%p390_p9), 72   ;;  %s3633_s30 = smov (!%p390_p9), 112  }
  0x17   : > { %s3634_s15 = smov (!%p390_p9), 64  }
  0x18   : > { %s433_s20 = scalar_select %p432_p10, %s3732_s29, 1  ;;  %vm440_vm0 = vcmask 261120   ;;  %v3626_v2 = vmov 32.0   ;;  %v3535_v32 = vld [vmem:[%s4512_s4] ss:$0 sm:$0xff]  ;;  %vm523_vm5 = vcmask 64512  }
  0x19   : > { %3540 = vrcp.f32 %v3626_v2  ;;  %v3316_v14 = vld [vmem:[%s4529_s3 + $0x8] sm:$0xff]  ;;  %v3315_v15 = vld [vmem:[%s4529_s3] sm:$0xff]  ;;  %vm560_vm6 = vcmask 1043456   ;;  %vm641_vm7 = vcmask 130112   ;;  %vm703_vm8 = vcmask 195712   ;;  %s3312_s3 = sshll.u32 %s3732_s29, 3 }
  0x1a   : > { %s2628_s21 = sshll.u32 %s433_s20, 3  ;;  %508 = vmatpush.bf16.msra.mxu0 %v3316_v14  ;;  %v3533_v25 = vld [vmem:[%s4530_s1] ss:$0 sm:$0xff]  ;;  %s3628_s20 = smov 104   ;;  %vm765_vm9 = vcmask 261312  }
  0x1b   : > { %s435_s24 = scalar_lea.vmem %s4528_s0, %s2628_s21  ;;  %v3534_v28 = vld [vmem:[%s4531_s2] ss:$0 sm:$0xff]  ;;  %s3629_s21 = smov 120  }
  0x1c   : > { %v437_v0 = vld [vmem:[%s435_s24] sm:$0xff]  ;;  %s3632_s24 = smov 80   ;;  %s429_s2 = sand.u32 1, %s3616_s26  }
  0x1d   : > { %v441_v1 = vsel %vm440_vm0, %v437_v0, 0.0  ;;  %s2549_s29 = scalar_lea.sflag [#allocation4], %s429_s2 }
  0x1e   : > { %442 = vadd.xlane.f32.xlu0 %v441_v1  ;;  %509 = vmatpush.bf16.msra.mxu0 %v3315_v15 }
  0x1f   : > { %v3541_v3 = vpop.eup %3540 }
  0x20   : > { %v445_v4 = vmul.f32 32.0, %v3541_v3  ;;  %vm449_vm1 = vweird.f32 %v3541_v3 }
  0x22   : > { %v446_v5 = vsub.f32 1.0, %v445_v4 }
  0x24   : > { %v447_v6 = vmul.f32 %v3541_v3, %v446_v5 }
  0x26   : > { %v448_v7 = vadd.f32 %v3541_v3, %v447_v6 }
  0x28   : > { %v3765_v8 = vsel %vm449_vm1, %v3541_v3, %v448_v7 }
  0x91   : > { %v443_v9 = vpop.xlane.xlu0 %442 }
  0x92   : > { %v451_v10 = vmul.f32 %v3765_v8, %v443_v9 }
  0x94   : > { %v452_v11 = vsub.f32 %v437_v0, %v451_v10 }
  0x96   : > { %v453_v12 = vmul.f32 %v452_v11, %v452_v11 }
  0x98   : > { %v454_v13 = vsel %vm440_vm0, %v453_v12, 0.0 }
  0x99   : > { %455 = vadd.xlane.f32.xlu0 %v454_v13 }
 0x10c   : > { %v456_v16 = vpop.xlane.xlu0 %455 }
 0x10d   : > { %v457_v17 = vmul.f32 %v456_v16, %v3765_v8 }
 0x10f   : > { %v458_v18 = vadd.f32 1e-05, %v457_v17 }
 0x111   : > { %3542 = vrsqrt.f32 %v458_v18  ;;  %vm465_vm3 = vweird.f32 %v458_v18 }
 0x117   : > { %v3543_v19 = vpop.eup %3542 }
 0x118   : > { %v460_v20 = vmul.f32 %v3543_v19, %v458_v18  ;;  %vm466_vm2 = vweird.f32 %v3543_v19 }
 0x119   : > { %vm467_vm4 = vmor %vm465_vm3, %vm466_vm2 }
 0x11a   : > { %v461_v21 = vmul.f32 %v3543_v19, %v460_v20 }
 0x11c   : > { %v462_v22 = vmul.f32 0.5, %v461_v21 }
 0x11e   : > { %v463_v23 = vsub.f32 1.5, %v462_v22 }
 0x120   : > { %v464_v24 = vmul.f32 %v3543_v19, %v463_v23 }
 0x122   : > { %v468_v26 = vsel %vm467_vm4, %v3543_v19, %v464_v24 }
 0x123   : > { %v469_v27 = vmul.f32 %v468_v26, %v452_v11 }
 0x125   : > { %v473_v29 = vmul.f32 %v3533_v25, %v469_v27 }
 0x127   : > { %v477_v30 = vadd.f32 %v3534_v28, %v473_v29 }
 0x129   : > { %v478_v31 = vpack.c.bf16 %v477_v30, %v477_v30 }
 0x12b   : > { %2637 = vmatmul.msk.bf16.vlgmr.msra.gmra.mxu0 %vm440_vm0, %v478_v31 }
 0x1a8   : > { %v511_v33 = vpop.f32.mrf.mxu0 }
 0x1a9   : > { %v512_v34 = vadd.f32 %v3535_v32, %v511_v33 }
 0x1ab   : > { %v515_v35 = vmul.f32 0.35355338, %v512_v34  ;;  %v517_v36 = vpack.c.bf16 %v512_v34, %v512_v34 }
 0x1ad   : > { %v516_v37 = vpack.c.bf16 %v515_v35, %v515_v35  ;;  %v519_v38 = vunpack.c.l.b16 %v517_v36 }
 0x1af   : > { %v520_v39 = vpack.c.b16 %v519_v38, %v519_v38  ;;  %v579_v40 = vunpack.c.l.b16 %v516_v37 }
 0x1b0   : > { %v513_v41 = vpop.f32.mrf.mxu0 }
 0x1b1   : > { %521 = vrot.lane.b32.xlu1 %v520_v39, %s3627_s16  ;;  %v580_v42 = vpack.c.b16 %v579_v40, %v579_v40  ;;  %s3635_s16 = smov 56  }
 0x1b3   : > { %705 = vrot.lane.b32.xlu0 %v580_v42, %s3628_s20  ;;  %581 = vrot.lane.b32.xlu2 %v580_v42, %s3629_s21  ;;  %s3636_s20 = smov 40   ;;  %s3637_s21 = smov 48  }
 0x1b9   : > { %583 = vrot.lane.b32.xlu1 %v520_v39, %s3630_s22  ;;  %s3638_s22 = smov 8  }
 0x1bb   : > { %707 = vrot.lane.b32.xlu2 %v520_v39, %s3631_s23  ;;  %s3639_s23 = smov 24  }
 0x1c1   : > { %645 = vrot.lane.b32.xlu1 %v520_v39, %s3632_s24  ;;  %s3640_s24 = smov 16  }
 0x1c3   : > { %643 = vrot.lane.b32.xlu2 %v580_v42, %s3633_s30 }
 0x20d   : > { %v582_v43 = vpop.permute.xlu2 %581 }
 0x215   : > { %v708_v46 = vpop.permute.xlu2 %707 }
 0x216   : > { %v713_v49 = vsel %vm523_vm5, %v708_v46, 0 }
 0x21d   : > { %v644_v52 = vpop.permute.xlu2 %643 }
 0x223   : > { %v522_v44 = vpop.permute.xlu1 %521 }
 0x224   : > { %v528_v45 = vsel %vm523_vm5, %v522_v44, 0 }
 0x225   : > { %537 = vmatpush.bf16.xpose.msra.mxu1 %v528_v45  ;;  %v706_v53 = vpop.permute.xlu0 %705 }
 0x22b   : > { %v584_v47 = vpop.permute.xlu1 %583 }
 0x22c   : > { %2638 = vmatmul.msk.bf16.vlgmr.msra.gmra.mxu1 %vm523_vm5, %v516_v37  ;;  %v589_v48 = vsel %vm523_vm5, %v584_v47, 0 }
 0x22d   : > { %598 = vmatpush.bf16.xpose.msra.mxu3 %v589_v48 }
 0x233   : > { %v646_v50 = vpop.permute.xlu1 %645 }
 0x234   : > { %2640 = vmatmul.msk.bf16.vlgmr.msra.gmra.mxu3 %vm523_vm5, %v582_v43  ;;  %v651_v51 = vsel %vm523_vm5, %v646_v50, 0 }
 0x235   : > { %722 = vmatpush.bf16.xpose.msrb.mxu3 %v713_v49  ;;  %660 = vmatpush.bf16.xpose.msrb.mxu0 %v651_v51 }
 0x23c   : > { %2642 = vmatmul.msk.bf16.vlgmr.msrb.gmra.mxu0 %vm523_vm5, %v644_v52 }
 0x244   : > { %2644 = vmatmul.msk.bf16.vlgmr.msrb.gmra.mxu3 %vm523_vm5, %v706_v53 }
 0x2a9   : > { %v539_v54 = vpop.f32.mrf.mxu1 }
 0x2aa   : > { %v543_v55 = vsel %vm523_vm5, %v539_v54, -inf }
 0x2ab   : > { %544 = vmax.xlane.f32.xlu1 %v543_v55  ;;  %v3318_v55 = vld [vmem:[%s4513_s5 + $0x8] sm:$0xff] }
 0x2ac   : > { %798 = vmatpush.bf16.msra.mxu0 %v3318_v55 }
 0x2b1   : > { %v541_v56 = vpop.f32.mrf.mxu1 }
 0x2b2   : > { %v3317_v56 = vld [vmem:[%s4513_s5] sm:$0xff] }
 0x2b3   : > { %799 = vmatpush.bf16.msra.mxu0 %v3317_v56 }
 0x2b7   : > { %v600_v57 = vpop.f32.mrf.mxu3 }
 0x2b8   : > { %v604_v58 = vsel %vm523_vm5, %v600_v57, -inf }
 0x2b9   : > { %605 = vmax.xlane.f32.xlu2 %v604_v58  ;;  %v662_v59 = vpop.f32.mrf.mxu0 }
 0x2ba   : > { %v666_v61 = vsel %vm523_vm5, %v662_v59, -inf }
 0x2bf   : > { %v602_v60 = vpop.f32.mrf.mxu3 }
 0x2c1   : > { %667 = vmax.xlane.f32.xlu2 %v666_v61  ;;  %v664_v62 = vpop.f32.mrf.mxu0 }
 0x2c2   : > { %v3536_v62 = vld [vmem:[%s4514_s6] ss:$0 sm:$0xff] }
 0x2c7   : > { %v724_v63 = vpop.f32.mrf.mxu3 }
 0x2c8   : > { %v728_v0 = vsel %vm523_vm5, %v724_v63, -inf }
 0x2c9   : > { %729 = vmax.xlane.f32.xlu0 %v728_v0 }
 0x2cf   : > { %v726_v1 = vpop.f32.mrf.mxu3 }
 0x2d9   : > { %555 = vrot.lane.b32.xlu2 %v520_v39, %s3634_s15 }
 0x2dd   : > { %616 = vrot.lane.b32.xlu0 %v520_v39, %s3635_s16 }
 0x2e1   : > { %740 = vrot.lane.b32.xlu2 %v520_v39, %s3636_s20  ;;  %s2627_s20 = sshll.u32 %s429_s2, 3 }
 0x2e5   : > { %678 = vrot.lane.b32.xlu0 %v520_v39, %s3637_s21 }
 0x31e   : > { %v545_v2 = vpop.xlane.xlu1 %544 }
 0x31f   : > { %v546_v3 = vsub.f32 %v539_v54, %v545_v2 }
 0x321   : > { %v547_v4 = vmul.f32 1.442695, %v546_v3 }
 0x323   : > { %3544 = vpow2.f32 %v547_v4 }
 0x329   : > { %v3545_v5 = vpop.eup %3544 }
 0x32a   : > { %v549_v6 = vsel %vm523_vm5, %v3545_v5, 0.0 }
 0x32b   : > { %550 = vadd.xlane.f32.xlu1 %v549_v6 }
 0x32c   : > { %v606_v7 = vpop.xlane.xlu2 %605 }
 0x32d   : > { %v607_v9 = vsub.f32 %v600_v57, %v606_v7 }
 0x32f   : > { %v608_v10 = vmul.f32 1.442695, %v607_v9 }
 0x331   : > { %3546 = vpow2.f32 %v608_v10  ;;  %v2721_v10 = vld [vmem:[%s4517_s9 + $0x80] sm:$0xf] }
 0x334   : > { %v668_v11 = vpop.xlane.xlu2 %667 }
 0x335   : > { %v669_v18 = vsub.f32 %v662_v59, %v668_v11  ;;  %v3343_v11 = vld [vmem:[%s4517_s9 + $0xbc] sm:$0xf0] }
 0x337   : > { %v3547_v12 = vpop.eup %3546  ;;  %v670_v20 = vmul.f32 1.442695, %v669_v18 }
 0x338   : > { %v610_v13 = vsel %vm523_vm5, %v3547_v12, 0.0 }
 0x339   : > { %611 = vadd.xlane.f32.xlu1 %v610_v13  ;;  %v2722_v13 = vor.u32 %v3343_v11, %v2721_v10  ;;  %v3347_v10 = vld [vmem:[%s4517_s9 + $0xdc] sm:$0xf0]  ;;  %v3339_v11 = vld [vmem:[%s4517_s9 + $0xa4] sm:$0xf] }
 0x33c   : > { %v730_v14 = vpop.xlane.xlu0 %729  ;;  %v556_v15 = vpop.permute.xlu2 %555 }
 0x33d   : > { %v731_v16 = vsub.f32 %v724_v63, %v730_v14  ;;  %v562_v17 = vsel %vm560_vm6, %v556_v15, 0  ;;  %v2723_v14 = vld [vmem:[%s4517_s9 + $0xc0] sm:$0xf0]  ;;  %v2729_v15 = vld [vmem:[%s4517_s9 + $0x88] sm:$0xf] }
 0x33e   : > { %571 = vmatpush.bf16.msra.mxu2 %v562_v17 }
 0x33f   : > { %v732_v19 = vmul.f32 1.442695, %v731_v16  ;;  %v3344_v16 = vld [vmem:[%s4517_s9 + $0xc4] sm:$0xf0] }
 0x340   : > { %v2730_v18 = vor.u32 %v3344_v16, %v2729_v15  ;;  %v3340_v15 = vld [vmem:[%s4517_s9 + $0xac] sm:$0xf] }
 0x341   : > { %3548 = vpow2.f32 %v732_v19  ;;  %v3336_v19 = vld [vmem:[%s4517_s9 + $0x8c] sm:$0xf] }
 0x342   : > { %3550 = vpow2.f32 %v670_v20  ;;  %v2731_v20 = vld [vmem:[%s4517_s9 + $0xc8] sm:$0xf0] }
 0x343   : > { %v2763_v16 = vld [vmem:[%s4517_s9 + $0xe8] sm:$0xf0] }
 0x344   : > { %v741_v32 = vpop.permute.xlu2 %740 }
 0x345   : > { %v746_v34 = vsel %vm560_vm6, %v741_v32, 0  ;;  %v2667_v32 = vld [vmem:[%s4517_s9 + $0x48] sm:$0xf0] }
 0x347   : > { %v3549_v21 = vpop.eup %3548 }
 0x348   : > { %v734_v22 = vsel %vm523_vm5, %v3549_v21, 0.0  ;;  %v3551_v23 = vpop.eup %3550 }
 0x349   : > { %735 = vadd.xlane.f32.xlu1 %v734_v22  ;;  %v672_v26 = vsel %vm523_vm5, %v3551_v23, 0.0  ;;  %v2657_v22 = vld [vmem:[%s4517_s9] sm:$0xf] }
 0x34f   : > { %v617_v24 = vpop.permute.xlu0 %616 }
 0x350   : > { %v622_v25 = vsel %vm560_vm6, %v617_v24, 0  ;;  %v3319_v24 = vld [vmem:[%s4517_s9 + $0x4] sm:$0xf] }
 0x351   : > { %631 = vmatpush.bf16.msrb.mxu2 %v622_v25  ;;  %673 = vadd.xlane.f32.xlu1 %v672_v26  ;;  %v2659_v26 = vld [vmem:[%s4517_s9 + $0x40] sm:$0xf0] }
 0x357   : > { %v679_v27 = vpop.permute.xlu0 %678 }
 0x358   : > { %v684_v28 = vsel %vm560_vm6, %v679_v27, 0  ;;  %v2665_v27 = vld [vmem:[%s4517_s9 + $0x8] sm:$0xf] }
 0x359   : > { %693 = vmatpush.bf16.msrb.mxu1 %v684_v28  ;;  %v3328_v28 = vld [vmem:[%s4517_s9 + $0x44] sm:$0xf0] }
 0x35d   : > { %1076 = vmatpush.bf16.msra.mxu1 %v2722_v13 }
 0x39e   : > { %v551_v29 = vpop.xlane.xlu1 %550 }
 0x39f   : > { %3552 = vrcp.f32 %v551_v29  ;;  %v2662_v29 = vor.u32 %v3319_v24, %v2659_v26  ;;  %v3323_v24 = vld [vmem:[%s4517_s9 + $0x24] sm:$0xf]  ;;  %v2697_v26 = vld [vmem:[%s4517_s9 + $0x28] sm:$0xf] }
 0x3a5   : > { %v3553_v30 = vpop.eup %3552 }
 0x3a6   : > { %v553_v31 = vmul.f32 %v3553_v30, %v3545_v5  ;;  %v2666_v30 = vor.u32 %v3328_v28, %v2665_v27  ;;  %v3332_v27 = vld [vmem:[%s4517_s9 + $0x64] sm:$0xf0]  ;;  %v3324_v28 = vld [vmem:[%s4517_s9 + $0x2c] sm:$0xf] }
 0x3a8   : > { %v554_v33 = vpack.c.bf16 %v553_v31, %v553_v31  ;;  %v3320_v31 = vld [vmem:[%s4517_s9 + $0xc] sm:$0xf] }
 0x3aa   : > { %2639 = vmatmul.msk.bf16.vlgmr.msra.gmra.mxu2 %vm523_vm5, %v554_v33  ;;  %v2670_v33 = vor.u32 %v3320_v31, %v2667_v32  ;;  %v2698_v32 = vor.u32 %v3332_v27, %v2697_v26  ;;  %v3359_v26 = vld [vmem:[%s4519_s11 + $0x40] sm:$0xff] }
 0x3ab   : > { %755 = vmatpush.bf16.msra.mxu2 %v746_v34  ;;  %v3367_v27 = vld [vmem:[%s4519_s11 + $0x80] sm:$0xff] }
 0x3ac   : > { %v612_v35 = vpop.xlane.xlu1 %611 }
 0x3ad   : > { %3554 = vrcp.f32 %v612_v35  ;;  %v2737_v35 = vld [vmem:[%s4517_s9 + $0x90] sm:$0xf] }
 0x3b3   : > { %v3555_v36 = vpop.eup %3554 }
 0x3b4   : > { %v614_v37 = vmul.f32 %v3555_v36, %v3547_v12  ;;  %v3335_v12 = vld [vmem:[%s4517_s9 + $0x84] sm:$0xf]  ;;  %v3345_v36 = vld [vmem:[%s4517_s9 + $0xcc] sm:$0xf0] }
 0x3b5   : > { %v2726_v17 = vor.u32 %v3335_v12, %v2723_v14  ;;  %v2755_v12 = vld [vmem:[%s4517_s9 + $0xe0] sm:$0xf0]  ;;  %v3348_v14 = vld [vmem:[%s4517_s9 + $0xe4] sm:$0xf0] }
 0x3b6   : > { %v615_v38 = vpack.c.bf16 %v614_v37, %v614_v37  ;;  %v3337_v37 = vld [vmem:[%s4517_s9 + $0x94] sm:$0xf] }
 0x3b7   : > { %1089 = vmatpush.bf16.msra.mxu3 %v2726_v17 }
 0x3ba   : > { %2641 = vmatmul.msk.bf16.vlgmr.msrb.gmra.mxu2 %vm523_vm5, %v615_v38 }
 0x3bb   : > { %1102 = vmatpush.bf16.msrb.mxu2 %v2730_v18  ;;  %1090 = vmatpush.bf16.msra.mxu3 %v2662_v29  ;;  %v2699_v29 = vld [vmem:[%s4517_s9 + $0x68] sm:$0xf0] }
 0x3bc   : > { %v736_v39 = vpop.xlane.xlu1 %735 }
 0x3bd   : > { %3556 = vrcp.f32 %v736_v39  ;;  %v2738_v39 = vor.u32 %v3345_v36, %v2737_v35  ;;  %v3349_v35 = vld [vmem:[%s4517_s9 + $0xec] sm:$0xf0]  ;;  %v3341_v36 = vld [vmem:[%s4517_s9 + $0xb4] sm:$0xf] }
 0x3bf   : > { %1103 = vmatpush.bf16.msrb.mxu2 %v2666_v30 }
 0x3c3   : > { %v3557_v40 = vpop.eup %3556 }
 0x3c4   : > { %v738_v41 = vmul.f32 %v3557_v40, %v3549_v21  ;;  %v674_v42 = vpop.xlane.xlu1 %673  ;;  %v2734_v21 = vor.u32 %v3336_v19, %v2731_v20  ;;  %v2739_v40 = vld [vmem:[%s4517_s9 + $0xd0] sm:$0xf0]  ;;  %v2758_v19 = vor.u32 %v3339_v11, %v2755_v12  ;;  %v2689_v20 = vld [vmem:[%s4517_s9 + $0x20] sm:$0xf]  ;;  %v3354_v11 = vld [vmem:[%s4519_s11 + $0x18] sm:$0xff] }
 0x3c5   : > { %3558 = vrcp.f32 %v674_v42  ;;  %v3346_v42 = vld [vmem:[%s4517_s9 + $0xd4] sm:$0xf0] }
 0x3c6   : > { %v739_v43 = vpack.c.bf16 %v738_v41, %v738_v41  ;;  %1115 = vmatpush.bf16.msrb.mxu0 %v2734_v21  ;;  %v2745_v41 = vld [vmem:[%s4517_s9 + $0x98] sm:$0xf]  ;;  %v3331_v21 = vld [vmem:[%s4517_s9 + $0x5c] sm:$0xf0] }
 0x3c7   : > { %v2690_v30 = vor.u32 %v3331_v21, %v2689_v20  ;;  %v3378_v12 = vld [vmem:[%s4519_s11 + $0xd8] sm:$0xff]  ;;  %v3360_v20 = vld [vmem:[%s4519_s11 + $0x48] sm:$0xff] }
 0x3c8   : > { %v3368_v21 = vld [vmem:[%s4519_s11 + $0x88] sm:$0xff] }
 0x3ca   : > { %2645 = vmatmul.msk.bf16.vlgmr.msra.gmra.mxu2 %vm523_vm5, %v739_v43  ;;  %1116 = vmatpush.bf16.msrb.mxu0 %v2670_v33  ;;  %v2742_v43 = vor.u32 %v3337_v37, %v2739_v40  ;;  %v2702_v33 = vor.u32 %v3324_v28, %v2699_v29  ;;  %v2771_v37 = vld [vmem:[%s4517_s9 + $0xf0] sm:$0xf0]  ;;  %v3342_v40 = vld [vmem:[%s4517_s9 + $0xbc] sm:$0xf] }
 0x3cb   : > { %v3559_v44 = vpop.eup %3558  ;;  %v3398_v28 = vld [vmem:[%s4519_s11 + $0x178] sm:$0xff] }
 0x3cc   : > { %v676_v45 = vmul.f32 %v3559_v44, %v3551_v23  ;;  %v3327_v23 = vld [vmem:[%s4517_s9 + $0x3c] sm:$0xf0]  ;;  %v2746_v44 = vor.u32 %v3346_v42, %v2745_v41  ;;  %1141 = vmatpush.bf16.msrb.mxu3 %v2742_v43  ;;  %v2779_v41 = vld [vmem:[%s4517_s9 + $0xf8] sm:$0xf0]  ;;  %v2774_v43 = vor.u32 %v3341_v36, %v2771_v37  ;;  %v3396_v36 = vld [vmem:[%s4519_s11 + $0x168] sm:$0xff] }
 0x3cd   : > { %v2658_v25 = vor.u32 %v3327_v23, %v2657_v22  ;;  %v2766_v23 = vor.u32 %v3340_v15, %v2763_v16  ;;  %v3377_v15 = vld [vmem:[%s4519_s11 + $0xd0] sm:$0xff]  ;;  %v3406_v29 = vld [vmem:[%s4519_s11 + $0x1b8] sm:$0xff]  ;;  %v3404_v37 = vld [vmem:[%s4519_s11 + $0x1a8] sm:$0xff] }
 0x3ce   : > { %v677_v46 = vpack.c.bf16 %v676_v45, %v676_v45  ;;  %v3338_v45 = vld [vmem:[%s4517_s9 + $0x9c] sm:$0xf]  ;;  %1154 = vmatpush.bf16.msra.mxu2 %v2746_v44  ;;  %v2705_v44 = vld [vmem:[%s4517_s9 + $0x30] sm:$0xf] }
 0x3cf   : > { %1077 = vmatpush.bf16.msra.mxu1 %v2658_v25  ;;  %v2691_v25 = vld [vmem:[%s4517_s9 + $0x60] sm:$0xf0]  ;;  %v3361_v16 = vld [vmem:[%s4519_s11 + $0x50] sm:$0xff] }
 0x3d0   : > { %2643 = vmatmul.msk.bf16.vlgmr.msrb.gmra.mxu1 %vm523_vm5, %v677_v46  ;;  %v2673_v46 = vld [vmem:[%s4517_s9 + $0x10] sm:$0xf]  ;;  %v2694_v31 = vor.u32 %v3323_v24, %v2691_v25  ;;  %v3390_v24 = vld [vmem:[%s4519_s11 + $0x138] sm:$0xff] }
 0x3d1   : > { %v3414_v25 = vld [vmem:[%s4519_s11 + $0x1f8] sm:$0xff] }
 0x3d3   : > { %1128 = vmatpush.bf16.msrb.mxu1 %v2738_v39  ;;  %v3350_v39 = vld [vmem:[%s4517_s9 + $0xf4] sm:$0xf0] }
 0x42d   : > { %v573_v47 = vpop.f32.mrf.mxu2 }
 0x42e   : > { %577 = vst.msk [vmem:[#allocation2] sm:$0xff] %vm523_vm5, %v573_v47 }
 0x435   : > { %v575_v48 = vpop.f32.mrf.mxu2 }
 0x43d   : > { %v633_v49 = vpop.f32.mrf.mxu2 }
 0x43e   : > { %638 = vrot.lane.b32.xlu1 %v633_v49, %s3638_s22  ;;  %v3329_v49 = vld [vmem:[%s4517_s9 + $0x4c] sm:$0xf0] }
 0x445   : > { %v635_v50 = vpop.f32.mrf.mxu2 }
 0x446   : > { %v3321_v50 = vld [vmem:[%s4517_s9 + $0x14] sm:$0xf] }
 0x44d   : > { %v695_v51 = vpop.f32.mrf.mxu1  ;;  %v757_v52 = vpop.f32.mrf.mxu2 }
 0x44e   : > { %762 = vrot.lane.b32.xlu0 %v757_v52, %s3639_s23  ;;  %700 = vrot.lane.b32.xlu2 %v695_v51, %s3640_s24  ;;  %v2674_v51 = vor.u32 %v3329_v49, %v2673_v46  ;;  %v2675_v52 = vld [vmem:[%s4517_s9 + $0x50] sm:$0xf0]  ;;  %v2782_v46 = vor.u32 %v3342_v40, %v2779_v41  ;;  %v2713_v49 = vld [vmem:[%s4517_s9 + $0x38] sm:$0xf]  ;;  %s2559_s23 = scalar_lea.hbm %s4521_s13, %s3312_s3  ;;  %s431_s24 = scalar_lea.vmem [#allocation3], %s2627_s20 }
 0x44f   : > { %v2678_v55 = vor.u32 %v3321_v50, %v2675_v52  ;;  %v3334_v50 = vld [vmem:[%s4517_s9 + $0x74] sm:$0xf0]  ;;  %v2715_v52 = vld [vmem:[%s4517_s9 + $0x78] sm:$0xf0]  ;;  %v3395_v40 = vld [vmem:[%s4519_s11 + $0x160] sm:$0xff]  ;;  %s2561_s30 = sshll.u32 %s431_s24, 4  ;;  %s2562_s30 = int_to_ptr.vmem [resolvable:$true] %s2561_s30 }
 0x450   : > { %1129 = vmatpush.bf16.msrb.mxu1 %v2674_v51  ;;  %v3326_v51 = vld [vmem:[%s4517_s9 + $0x3c] sm:$0xf]  ;;  %v3403_v41 = vld [vmem:[%s4519_s11 + $0x1a0] sm:$0xff]  ;;  %s2563_s15 = sshll.u32 %s2559_s23, 4  ;;  %s3582_s3 = scalar_lea.hbm %s4521_s13, 16  ;;  %s2564_s15 = int_to_ptr.hbm [resolvable:$true] %s2563_s15 }
 0x451   : > { %1142 = vmatpush.bf16.msrb.mxu3 %v2678_v55  ;;  %v2714_v55 = vor.u32 %v3334_v50, %v2713_v49  ;;  %v3393_v49 = vld [vmem:[%s4519_s11 + $0x150] sm:$0xff]  ;;  %s3576_s16 = sshra.s32 %s2564_s15, 4  ;;  %s3577_s16 = int_to_ptr.hbm [resolvable:$true] %s3576_s16 }
 0x452   : > { %v3401_v50 = vld [vmem:[%s4519_s11 + $0x190] sm:$0xff]  ;;  %s3578_s0 = scalar_lea.hbm %s3577_s16, 8  ;;  %p3583_p0 = scmp.lt.s32.totalorder %s3577_s16, %s4521_s13 }
 0x453   : > { %p3579_p11 = scmp.ne.s32.totalorder %s3577_s16, %s3578_s0  ;;  %p3584_p1 = scmp.lt.s32.totalorder %s3582_s3, %s3578_s0 }
 0x455   : > { %v697_v53 = vpop.f32.mrf.mxu1  ;;  %v759_v54 = vpop.f32.mrf.mxu2  ;;  %p3580_p12 = pnand %p3579_p11, %p3749_p5  ;;  %p3585_p2 = por %p3584_p1, %p3583_p0 }
 0x456   : > { %v2681_v53 = vld [vmem:[%s4517_s9 + $0x18] sm:$0xf] }
 0x457   : > { %v3330_v54 = vld [vmem:[%s4517_s9 + $0x54] sm:$0xf0]  ;;  %p3581_p13 = pneg %p3580_p12 }
 0x458   : > { %v2682_v56 = vor.u32 %v3330_v54, %v2681_v53 }
 0x459   : > { %p3586_p3 = pnand %p3585_p2, %p3581_p13 }
 0x45a   : > { %1155 = vmatpush.bf16.msra.mxu2 %v2682_v56  ;;  %v2718_v56 = vor.u32 %v3326_v51, %v2715_v52  ;;  %v3383_v51 = vld [vmem:[%s4519_s11 + $0x100] sm:$0xff] }
 0x45b   : > { %v3407_v52 = vld [vmem:[%s4519_s11 + $0x1c0] sm:$0xff] }
 0x4a8   : > { %v701_v58 = vpop.permute.xlu2 %700 }
 0x4b0   : > { %v639_v57 = vpop.permute.xlu1 %638 }
 0x4b1   : > { %642 = vst.msk [vmem:[#allocation2] sm:$0xff] %vm641_vm7, %v639_v57  ;;  %v3322_v57 = vld [vmem:[%s4517_s9 + $0x1c] sm:$0xf] }
 0x4b2   : > { %704 = vst.msk [vmem:[#allocation2] sm:$0xff] %vm703_vm8, %v701_v58  ;;  %v2683_v58 = vld [vmem:[%s4517_s9 + $0x58] sm:$0xf0] }
 0x4c0   : > { %v763_v59 = vpop.permute.xlu0 %762 }
 0x4c1   : > { %766 = vst.msk [vmem:[#allocation2] sm:$0xff] %vm765_vm9, %v763_v59  ;;  %v2686_v59 = vor.u32 %v3322_v57, %v2683_v58  ;;  %v3358_v57 = vld [vmem:[%s4519_s11 + $0x38] sm:$0xff] }
 0x4c2   : > { %v3382_v58 = vld [vmem:[%s4519_s11 + $0xf8] sm:$0xff] }
 0x4c8   : > { %v767_v60 = vld [vmem:[#allocation2] sm:$0xff] }
 0x4c9   : > { %v768_v61 = vpack.c.bf16 %v767_v60, %v767_v60 }
 0x4cb   : > { %2654 = vmatmul.msk.bf16.vlgmr.msra.gmra.mxu0 %vm440_vm0, %v768_v61 }
 0x548   : > { %v801_v63 = vpop.f32.mrf.mxu0 }
 0x549   : > { %v802_v0 = vadd.f32 %v3536_v62, %v801_v63 }
 0x54b   : > { %v805_v1 = vadd.f32 %v802_v0, %v802_v0 }
 0x54d   : > { %v808_v2 = vsel %vm440_vm0, %v805_v1, 0.0 }
 0x54e   : > { %809 = vadd.xlane.f32.xlu2 %v808_v2  ;;  %v3537_v2 = vld [vmem:[%s4515_s7] ss:$0 sm:$0xff] }
 0x550   : > { %v803_v3 = vpop.f32.mrf.mxu0 }
 0x5c1   : > { %v810_v4 = vpop.xlane.xlu2 %809 }
 0x5c2   : > { %v811_v5 = vmul.f32 %v810_v4, %v3765_v8  ;;  %v3538_v4 = vld [vmem:[%s4516_s8] ss:$0 sm:$0xff] }
 0x5c4   : > { %v3823_v6 = vsub.f32 %v805_v1, %v811_v5 }
 0x5c6   : > { %v813_v7 = vmul.f32 %v3823_v6, %v3823_v6 }
 0x5c8   : > { %v814_v9 = vsel %vm440_vm0, %v813_v7, 0.0 }
 0x5c9   : > { %815 = vadd.xlane.f32.xlu0 %v814_v9  ;;  %v2753_v9 = vld [vmem:[%s4517_s9 + $0xa0] sm:$0xf] }
 0x5ca   : > { %v2754_v18 = vor.u32 %v3347_v10, %v2753_v9  ;;  %v3363_v9 = vld [vmem:[%s4519_s11 + $0x60] sm:$0xff] }
 0x5cb   : > { %v3371_v10 = vld [vmem:[%s4519_s11 + $0xa0] sm:$0xff] }
 0x63c   : > { %v816_v34 = vpop.xlane.xlu0 %815 }
 0x63d   : > { %v817_v38 = vmul.f32 %v816_v34, %v3765_v8  ;;  %v2747_v8 = vld [vmem:[%s4517_s9 + $0xd8] sm:$0xf0]  ;;  %v2769_v34 = vld [vmem:[%s4517_s9 + $0xb0] sm:$0xf] }
 0x63e   : > { %v2750_v48 = vor.u32 %v3338_v45, %v2747_v8  ;;  %v2770_v42 = vor.u32 %v3349_v35, %v2769_v34  ;;  %v3333_v45 = vld [vmem:[%s4517_s9 + $0x6c] sm:$0xf0]  ;;  %v3388_v34 = vld [vmem:[%s4519_s11 + $0x128] sm:$0xff] }
 0x63f   : > { %v818_v47 = vadd.f32 1e-05, %v817_v38  ;;  %v2777_v38 = vld [vmem:[%s4517_s9 + $0xb8] sm:$0xf]  ;;  %v2706_v53 = vor.u32 %v3333_v45, %v2705_v44  ;;  %v3412_v35 = vld [vmem:[%s4519_s11 + $0x1e8] sm:$0xff]  ;;  %v3385_v44 = vld [vmem:[%s4519_s11 + $0x110] sm:$0xff] }
 0x640   : > { %1167 = vmatpush.bf16.msra.mxu0 %v2750_v48  ;;  %v2778_v8 = vor.u32 %v3350_v39, %v2777_v38  ;;  %v2707_v48 = vld [vmem:[%s4517_s9 + $0x70] sm:$0xf0]  ;;  %v3387_v38 = vld [vmem:[%s4519_s11 + $0x120] sm:$0xff] }
 0x641   : > { %3560 = vrsqrt.f32 %v818_v47  ;;  %vm825_vm11 = vweird.f32 %v818_v47  ;;  %v3411_v39 = vld [vmem:[%s4519_s11 + $0x1e0] sm:$0xff]  ;;  %v3409_v45 = vld [vmem:[%s4519_s11 + $0x1d0] sm:$0xff] }
 0x644   : > { %1168 = vmatpush.bf16.msra.mxu0 %v2686_v59  ;;  %v3366_v59 = vld [vmem:[%s4519_s11 + $0x78] sm:$0xff] }
 0x647   : > { %v3561_v60 = vpop.eup %3560 }
 0x648   : > { %v820_v61 = vmul.f32 %v3561_v60, %v818_v47  ;;  %vm826_vm10 = vweird.f32 %v3561_v60  ;;  %v3325_v47 = vld [vmem:[%s4517_s9 + $0x34] sm:$0xf] }
 0x649   : > { %vm827_vm12 = vmor %vm825_vm11, %vm826_vm10  ;;  %v2710_v54 = vor.u32 %v3325_v47, %v2707_v48  ;;  %v3384_v47 = vld [vmem:[%s4519_s11 + $0x108] sm:$0xff] }
 0x64a   : > { %v821_v62 = vmul.f32 %v3561_v60, %v820_v61  ;;  %v3357_v61 = vld [vmem:[%s4519_s11 + $0x30] sm:$0xff]  ;;  %v3408_v48 = vld [vmem:[%s4519_s11 + $0x1c8] sm:$0xff] }
 0x64c   : > { %v822_v63 = vmul.f32 0.5, %v821_v62  ;;  %v3381_v62 = vld [vmem:[%s4519_s11 + $0xf0] sm:$0xff] }
 0x64e   : > { %v823_v0 = vsub.f32 1.5, %v822_v63  ;;  %v3365_v63 = vld [vmem:[%s4519_s11 + $0x70] sm:$0xff] }
 0x650   : > { %v824_v1 = vmul.f32 %v3561_v60, %v823_v0  ;;  %v3373_v0 = vld [vmem:[%s4519_s11 + $0xb0] sm:$0xff] }
 0x652   : > { %v828_v3 = vsel %vm827_vm12, %v3561_v60, %v824_v1  ;;  %v3374_v60 = vld [vmem:[%s4519_s11 + $0xb8] sm:$0xff]  ;;  %v3356_v1 = vld [vmem:[%s4519_s11 + $0x28] sm:$0xff] }
 0x653   : > { %v829_v5 = vmul.f32 %v828_v3, %v3823_v6  ;;  %v2761_v6 = vld [vmem:[%s4517_s9 + $0xa8] sm:$0xf] }
 0x654   : > { %v2762_v22 = vor.u32 %v3348_v14, %v2761_v6  ;;  %v3364_v3 = vld [vmem:[%s4519_s11 + $0x68] sm:$0xff]  ;;  %v3362_v6 = vld [vmem:[%s4519_s11 + $0x58] sm:$0xff]  ;;  %v3353_v14 = vld [vmem:[%s4519_s11 + $0x10] sm:$0xff] }
 0x655   : > { %v833_v7 = vmul.f32 %v3537_v2, %v829_v5  ;;  %v3380_v2 = vld [vmem:[%s4519_s11 + $0xe8] sm:$0xff]  ;;  %v3355_v5 = vld [vmem:[%s4519_s11 + $0x20] sm:$0xff] }
 0x657   : > { %v837_v13 = vadd.f32 %v3538_v4, %v833_v7  ;;  %v3372_v4 = vld [vmem:[%s4519_s11 + $0xa8] sm:$0xff]  ;;  %v3379_v7 = vld [vmem:[%s4519_s11 + $0xe0] sm:$0xff] }
 0x659   : > { %v3956_v17 = vpack.c.bf16 %v837_v13, %v837_v13  ;;  %v3370_v13 = vld [vmem:[%s4519_s11 + $0x98] sm:$0xff] }
 0x65b   : > { %2783 = vmatmul.msk.bf16.vlgmr.msra.gmra.mxu1 %vm440_vm0, %v3956_v17  ;;  %2784 = vmatmul.msk.bf16.vlgmr.msra.gmra.mxu3 %vm440_vm0, %v3956_v17 }
 0x65c   : > { %2785 = vmatmul.msk.bf16.vlgmr.msrb.gmra.mxu2 %vm440_vm0, %v3956_v17  ;;  %2786 = vmatmul.msk.bf16.vlgmr.msrb.gmra.mxu0 %vm440_vm0, %v3956_v17 }
 0x65d   : > { %1180 = vmatpush.bf16.msra.mxu1 %v2754_v18  ;;  %1193 = vmatpush.bf16.msra.mxu3 %v2758_v19  ;;  %v3352_v18 = vld [vmem:[%s4519_s11 + $0x8] sm:$0xff] }
 0x65e   : > { %1206 = vmatpush.bf16.msrb.mxu2 %v2762_v22  ;;  %1219 = vmatpush.bf16.msrb.mxu0 %v2766_v23  ;;  %v3376_v19 = vld [vmem:[%s4519_s11 + $0xc8] sm:$0xff]  ;;  %v3351_v22 = vld [vmem:[%s4519_s11] sm:$0xff] }
 0x65f   : > { %v3375_v23 = vld [vmem:[%s4519_s11 + $0xc0] sm:$0xff] }
 0x661   : > { %1181 = vmatpush.bf16.msra.mxu1 %v2690_v30  ;;  %1194 = vmatpush.bf16.msra.mxu3 %v2694_v31  ;;  %v3389_v30 = vld [vmem:[%s4519_s11 + $0x130] sm:$0xff] }
 0x662   : > { %1207 = vmatpush.bf16.msrb.mxu2 %v2698_v32  ;;  %1220 = vmatpush.bf16.msrb.mxu0 %v2702_v33  ;;  %v3413_v31 = vld [vmem:[%s4519_s11 + $0x1f0] sm:$0xff] }
 0x663   : > { %v3397_v32 = vld [vmem:[%s4519_s11 + $0x170] sm:$0xff] }
 0x664   : > { %v3405_v33 = vld [vmem:[%s4519_s11 + $0x1b0] sm:$0xff] }
 0x66b   : > { %2787 = vmatmul.msk.bf16.vlgmr.msrb.gmra.mxu1 %vm440_vm0, %v3956_v17  ;;  %2788 = vmatmul.msk.bf16.vlgmr.msrb.gmra.mxu3 %vm440_vm0, %v3956_v17 }
 0x66c   : > { %2789 = vmatmul.msk.bf16.vlgmr.msra.gmra.mxu2 %vm440_vm0, %v3956_v17  ;;  %2790 = vmatmul.msk.bf16.vlgmr.msra.gmra.mxu0 %vm440_vm0, %v3956_v17 }
 0x66d   : > { %1232 = vmatpush.bf16.msrb.mxu1 %v2770_v42  ;;  %1245 = vmatpush.bf16.msrb.mxu3 %v2774_v43  ;;  %v3386_v42 = vld [vmem:[%s4519_s11 + $0x118] sm:$0xff] }
 0x66e   : > { %1258 = vmatpush.bf16.msra.mxu2 %v2778_v8  ;;  %1271 = vmatpush.bf16.msra.mxu0 %v2782_v46  ;;  %v3410_v43 = vld [vmem:[%s4519_s11 + $0x1d8] sm:$0xff] }
 0x66f   : > { %v3394_v8 = vld [vmem:[%s4519_s11 + $0x158] sm:$0xff] }
 0x670   : > { %v3402_v46 = vld [vmem:[%s4519_s11 + $0x198] sm:$0xff] }
 0x671   : > { %1233 = vmatpush.bf16.msrb.mxu1 %v2706_v53  ;;  %1246 = vmatpush.bf16.msrb.mxu3 %v2710_v54  ;;  %v3392_v53 = vld [vmem:[%s4519_s11 + $0x148] sm:$0xff] }
 0x672   : > { %1259 = vmatpush.bf16.msra.mxu2 %v2714_v55  ;;  %1272 = vmatpush.bf16.msra.mxu0 %v2718_v56  ;;  %v3400_v54 = vld [vmem:[%s4519_s11 + $0x188] sm:$0xff]  ;;  %v3391_v55 = vld [vmem:[%s4519_s11 + $0x140] sm:$0xff] }
 0x673   : > { %v3399_v56 = vld [vmem:[%s4519_s11 + $0x180] sm:$0xff] }
 0x67b   : > { %2791 = vmatmul.msk.bf16.vlgmr.msra.gmra.mxu1 %vm440_vm0, %v3956_v17  ;;  %2792 = vmatmul.msk.bf16.vlgmr.msra.gmra.mxu3 %vm440_vm0, %v3956_v17 }
 0x67c   : > { %2793 = vmatmul.msk.bf16.vlgmr.msrb.gmra.mxu2 %vm440_vm0, %v3956_v17  ;;  %2794 = vmatmul.msk.bf16.vlgmr.msrb.gmra.mxu0 %vm440_vm0, %v3956_v17 }
 0x67d   : > { %2338 = vmatpush.bf16.msra.mxu1 %v3358_v57  ;;  %2377 = vmatpush.bf16.msrb.mxu0 %v3382_v58  ;;  %v4257_v57 = vld [vmem:[%s4518_s10] sm:$0xff] }
 0x67e   : > { %2351 = vmatpush.bf16.msra.mxu3 %v3366_v59  ;;  %2364 = vmatpush.bf16.msrb.mxu2 %v3374_v60  ;;  %v875_v58 = vperm.slane %v4257_v57, 0  ;;  %v878_v59 = vperm.slane %v4257_v57, 3 }
 0x681   : > { %2339 = vmatpush.bf16.msra.mxu1 %v3357_v61  ;;  %2378 = vmatpush.bf16.msrb.mxu0 %v3381_v62 }
 0x682   : > { %2352 = vmatpush.bf16.msra.mxu3 %v3365_v63  ;;  %2365 = vmatpush.bf16.msrb.mxu2 %v3373_v0 }
 0x685   : > { %2340 = vmatpush.bf16.msra.mxu1 %v3356_v1  ;;  %2379 = vmatpush.bf16.msrb.mxu0 %v3380_v2  ;;  %v876_v1 = vperm.slane %v4257_v57, 1 }
 0x686   : > { %2353 = vmatpush.bf16.msra.mxu3 %v3364_v3  ;;  %2366 = vmatpush.bf16.msrb.mxu2 %v3372_v4  ;;  %v877_v3 = vperm.slane %v4257_v57, 2  ;;  %v3422_v4 = vld [vmem:[%s4519_s11 + $0x238] sm:$0xff] }
 0x689   : > { %2341 = vmatpush.bf16.msra.mxu1 %v3355_v5  ;;  %2380 = vmatpush.bf16.msrb.mxu0 %v3379_v7  ;;  %v3446_v7 = vld [vmem:[%s4519_s11 + $0x2f8] sm:$0xff] }
 0x68a   : > { %2354 = vmatpush.bf16.msra.mxu3 %v3363_v9  ;;  %2367 = vmatpush.bf16.msrb.mxu2 %v3371_v10 }
 0x68b   : > { %2795 = vmatmul.msk.bf16.vlgmr.msrb.gmra.mxu1 %vm440_vm0, %v3956_v17  ;;  %2796 = vmatmul.msk.bf16.vlgmr.msrb.gmra.mxu3 %vm440_vm0, %v3956_v17 }
 0x68c   : > { %2797 = vmatmul.msk.bf16.vlgmr.msra.gmra.mxu2 %vm440_vm0, %v3956_v17  ;;  %2798 = vmatmul.msk.bf16.vlgmr.msra.gmra.mxu0 %vm440_vm0, %v3956_v17  ;;  %v3369_v17 = vld [vmem:[%s4519_s11 + $0x90] sm:$0xff] }
 0x68d   : > { %2342 = vmatpush.bf16.msra.mxu1 %v3354_v11  ;;  %2381 = vmatpush.bf16.msrb.mxu0 %v3378_v12 }
 0x68e   : > { %2355 = vmatpush.bf16.msra.mxu3 %v3362_v6  ;;  %2368 = vmatpush.bf16.msrb.mxu2 %v3370_v13 }
 0x691   : > { %2343 = vmatpush.bf16.msra.mxu1 %v3353_v14  ;;  %2382 = vmatpush.bf16.msrb.mxu0 %v3377_v15  ;;  %v3421_v14 = vld [vmem:[%s4519_s11 + $0x230] sm:$0xff] }
 0x692   : > { %2356 = vmatpush.bf16.msra.mxu3 %v3361_v16  ;;  %2369 = vmatpush.bf16.msrb.mxu2 %v3369_v17  ;;  %v3445_v17 = vld [vmem:[%s4519_s11 + $0x2f0] sm:$0xff] }
 0x695   : > { %2344 = vmatpush.bf16.msra.mxu1 %v3352_v18  ;;  %2383 = vmatpush.bf16.msrb.mxu0 %v3376_v19  ;;  %v3430_v19 = vld [vmem:[%s4519_s11 + $0x278] sm:$0xff] }
 0x696   : > { %2357 = vmatpush.bf16.msra.mxu3 %v3360_v20  ;;  %2370 = vmatpush.bf16.msrb.mxu2 %v3368_v21  ;;  %v3438_v21 = vld [vmem:[%s4519_s11 + $0x2b8] sm:$0xff] }
 0x699   : > { %2345 = vmatpush.bf16.msra.mxu1 %v3351_v22  ;;  %2384 = vmatpush.bf16.msrb.mxu0 %v3375_v23  ;;  %v3420_v23 = vld [vmem:[%s4519_s11 + $0x228] sm:$0xff] }
 0x69a   : > { %2358 = vmatpush.bf16.msra.mxu3 %v3359_v26  ;;  %2371 = vmatpush.bf16.msrb.mxu2 %v3367_v27  ;;  %v882_v27 = vperm.slane %v4257_v57, 7 }
 0x69d   : > { %2390 = vmatpush.bf16.msrb.mxu1 %v3390_v24  ;;  %2429 = vmatpush.bf16.msra.mxu0 %v3414_v25  ;;  %v3444_v24 = vld [vmem:[%s4519_s11 + $0x2e8] sm:$0xff]  ;;  %v879_v25 = vperm.slane %v4257_v57, 4 }
 0x69e   : > { %2403 = vmatpush.bf16.msrb.mxu3 %v3398_v28  ;;  %2416 = vmatpush.bf16.msra.mxu2 %v3406_v29  ;;  %v3429_v28 = vld [vmem:[%s4519_s11 + $0x270] sm:$0xff] }
 0x6a1   : > { %2391 = vmatpush.bf16.msrb.mxu1 %v3389_v30  ;;  %2430 = vmatpush.bf16.msra.mxu0 %v3413_v31  ;;  %v3437_v30 = vld [vmem:[%s4519_s11 + $0x2b0] sm:$0xff] }
 0x6a2   : > { %2404 = vmatpush.bf16.msrb.mxu3 %v3397_v32  ;;  %2417 = vmatpush.bf16.msra.mxu2 %v3405_v33  ;;  %v3419_v32 = vld [vmem:[%s4519_s11 + $0x220] sm:$0xff] }
 0x6a5   : > { %2392 = vmatpush.bf16.msrb.mxu1 %v3388_v34  ;;  %2431 = vmatpush.bf16.msra.mxu0 %v3412_v35  ;;  %v3443_v35 = vld [vmem:[%s4519_s11 + $0x2e0] sm:$0xff] }
 0x6a6   : > { %2405 = vmatpush.bf16.msrb.mxu3 %v3396_v36  ;;  %2418 = vmatpush.bf16.msra.mxu2 %v3404_v37  ;;  %v3428_v37 = vld [vmem:[%s4519_s11 + $0x268] sm:$0xff] }
 0x6a9   : > { %2393 = vmatpush.bf16.msrb.mxu1 %v3387_v38  ;;  %2432 = vmatpush.bf16.msra.mxu0 %v3411_v39  ;;  %v3436_v39 = vld [vmem:[%s4519_s11 + $0x2a8] sm:$0xff] }
 0x6aa   : > { %2406 = vmatpush.bf16.msrb.mxu3 %v3395_v40  ;;  %2419 = vmatpush.bf16.msra.mxu2 %v3403_v41  ;;  %v880_v40 = vperm.slane %v4257_v57, 5 }
 0x6ad   : > { %2394 = vmatpush.bf16.msrb.mxu1 %v3386_v42  ;;  %2433 = vmatpush.bf16.msra.mxu0 %v3410_v43  ;;  %v881_v42 = vperm.slane %v4257_v57, 6  ;;  %v3418_v43 = vld [vmem:[%s4519_s11 + $0x218] sm:$0xff] }
 0x6ae   : > { %2407 = vmatpush.bf16.msrb.mxu3 %v3394_v8  ;;  %2420 = vmatpush.bf16.msra.mxu2 %v3402_v46 }
 0x6b1   : > { %2395 = vmatpush.bf16.msrb.mxu1 %v3385_v44  ;;  %2434 = vmatpush.bf16.msra.mxu0 %v3409_v45  ;;  %v3442_v45 = vld [vmem:[%s4519_s11 + $0x2d8] sm:$0xff] }
 0x6b2   : > { %2408 = vmatpush.bf16.msrb.mxu3 %v3393_v49  ;;  %2421 = vmatpush.bf16.msra.mxu2 %v3401_v50  ;;  %v3435_v50 = vld [vmem:[%s4519_s11 + $0x2a0] sm:$0xff] }
 0x6b5   : > { %2396 = vmatpush.bf16.msrb.mxu1 %v3384_v47  ;;  %2435 = vmatpush.bf16.msra.mxu0 %v3408_v48  ;;  %v3427_v47 = vld [vmem:[%s4519_s11 + $0x260] sm:$0xff] }
 0x6b6   : > { %2409 = vmatpush.bf16.msrb.mxu3 %v3392_v53  ;;  %2422 = vmatpush.bf16.msra.mxu2 %v3400_v54  ;;  %v3417_v53 = vld [vmem:[%s4519_s11 + $0x210] sm:$0xff] }
 0x6b9   : > { %2397 = vmatpush.bf16.msrb.mxu1 %v3383_v51  ;;  %2436 = vmatpush.bf16.msra.mxu0 %v3407_v52 }
 0x6ba   : > { %2410 = vmatpush.bf16.msrb.mxu3 %v3391_v55  ;;  %2423 = vmatpush.bf16.msra.mxu2 %v3399_v56  ;;  %v3441_v56 = vld [vmem:[%s4519_s11 + $0x2d0] sm:$0xff] }
 0x6d8   : > { %v1079_v60 = vpop.f32.mrf.mxu1 }
 0x6d9   : > { %v1080_v61 = vadd.f32 %v1079_v60, %v875_v58  ;;  %v1118_v62 = vpop.f32.mrf.mxu0  ;;  %v3426_v58 = vld [vmem:[%s4519_s11 + $0x258] sm:$0xff] }
 0x6da   : > { %v1119_v63 = vadd.f32 %v1118_v62, %v878_v59  ;;  %v4333_v59 = vld [vmem:[%s4518_s10 + $0x8] sm:$0xff] }
 0x6db   : > { %v1278_v0 = vmax.f32 %v1080_v61, 0.0  ;;  %v3434_v61 = vld [vmem:[%s4519_s11 + $0x298] sm:$0xff] }
 0x6dc   : > { %v1281_v2 = vmax.f32 %v1119_v63, 0.0  ;;  %v3416_v63 = vld [vmem:[%s4519_s11 + $0x208] sm:$0xff] }
 0x6dd   : > { %v1294_v5 = vpack.c.bf16 %v1278_v0, %v1278_v0  ;;  %v3440_v0 = vld [vmem:[%s4519_s11 + $0x2c8] sm:$0xff] }
 0x6de   : > { %v1297_v9 = vpack.c.bf16 %v1281_v2, %v1281_v2  ;;  %v1092_v10 = vpop.f32.mrf.mxu3 }
 0x6df   : > { %v1093_v11 = vadd.f32 %v1092_v10, %v876_v1  ;;  %v1105_v12 = vpop.f32.mrf.mxu2  ;;  %2346 = vmatmul.bf16.vlgmr.msra.gmra.mxu1 %v1294_v5  ;;  %v883_v1 = vperm.slane %v4333_v59, 0  ;;  %v3415_v10 = vld [vmem:[%s4519_s11 + $0x200] sm:$0xff] }
 0x6e0   : > { %v1106_v6 = vadd.f32 %v1105_v12, %v877_v3  ;;  %2385 = vmatmul.bf16.vlgmr.msrb.gmra.mxu0 %v1297_v9  ;;  %2442 = vmatpush.bf16.msra.mxu1 %v3422_v4  ;;  %v1081_v13 = vpop.f32.mrf.mxu1  ;;  %v886_v3 = vperm.slane %v4333_v59, 3  ;;  %v3425_v4 = vld [vmem:[%s4519_s11 + $0x250] sm:$0xff] }
 0x6e1   : > { %v1279_v15 = vmax.f32 %v1093_v11, 0.0  ;;  %2481 = vmatpush.bf16.msrb.mxu0 %v3446_v7  ;;  %v1120_v16 = vpop.f32.mrf.mxu0  ;;  %v3433_v7 = vld [vmem:[%s4519_s11 + $0x290] sm:$0xff]  ;;  %v3454_v13 = vld [vmem:[%s4519_s11 + $0x338] sm:$0xff] }
 0x6e2   : > { %v1280_v18 = vmax.f32 %v1106_v6, 0.0  ;;  %v3439_v6 = vld [vmem:[%s4519_s11 + $0x2c0] sm:$0xff]  ;;  %v3424_v16 = vld [vmem:[%s4519_s11 + $0x248] sm:$0xff] }
 0x6e3   : > { %v1295_v20 = vpack.c.bf16 %v1279_v15, %v1279_v15  ;;  %v3478_v15 = vld [vmem:[%s4519_s11 + $0x3f8] sm:$0xff] }
 0x6e4   : > { %v1296_v22 = vpack.c.bf16 %v1280_v18, %v1280_v18  ;;  %2443 = vmatpush.bf16.msra.mxu1 %v3421_v14  ;;  %v3432_v18 = vld [vmem:[%s4519_s11 + $0x288] sm:$0xff] }
 0x6e5   : > { %2482 = vmatpush.bf16.msrb.mxu0 %v3445_v17  ;;  %2359 = vmatmul.bf16.vlgmr.msra.gmra.mxu3 %v1295_v20 }
 0x6e6   : > { %2372 = vmatmul.bf16.vlgmr.msrb.gmra.mxu2 %v1296_v22  ;;  %2455 = vmatpush.bf16.msra.mxu3 %v3430_v19  ;;  %v1094_v26 = vpop.f32.mrf.mxu3  ;;  %v884_v19 = vperm.slane %v4333_v59, 1 }
 0x6e7   : > { %2468 = vmatpush.bf16.msrb.mxu2 %v3438_v21  ;;  %v1107_v29 = vpop.f32.mrf.mxu2  ;;  %v885_v21 = vperm.slane %v4333_v59, 2  ;;  %v3477_v26 = vld [vmem:[%s4519_s11 + $0x3f0] sm:$0xff] }
 0x6e8   : > { %2444 = vmatpush.bf16.msra.mxu1 %v3420_v23  ;;  %v1131_v31 = vpop.f32.mrf.mxu1  ;;  %v3453_v23 = vld [vmem:[%s4519_s11 + $0x330] sm:$0xff] }
 0x6e9   : > { %2483 = vmatpush.bf16.msrb.mxu0 %v3444_v24  ;;  %v1132_v33 = vadd.f32 %v1131_v31, %v879_v25  ;;  %v1170_v34 = vpop.f32.mrf.mxu0  ;;  %v3462_v31 = vld [vmem:[%s4519_s11 + $0x378] sm:$0xff] }
 0x6ea   : > { %v1171_v36 = vadd.f32 %v1170_v34, %v882_v27  ;;  %2456 = vmatpush.bf16.msra.mxu3 %v3429_v28  ;;  %v3423_v27 = vld [vmem:[%s4519_s11 + $0x240] sm:$0xff]  ;;  %v3470_v34 = vld [vmem:[%s4519_s11 + $0x3b8] sm:$0xff] }
 0x6eb   : > { %v1282_v38 = vmax.f32 %v1132_v33, 0.0  ;;  %2469 = vmatpush.bf16.msrb.mxu2 %v3437_v30  ;;  %v3431_v30 = vld [vmem:[%s4519_s11 + $0x280] sm:$0xff] }
 0x6ec   : > { %v1285_v41 = vmax.f32 %v1171_v36, 0.0  ;;  %2445 = vmatpush.bf16.msra.mxu1 %v3419_v32 }
 0x6ed   : > { %v1298_v44 = vpack.c.bf16 %v1282_v38, %v1282_v38  ;;  %2484 = vmatpush.bf16.msrb.mxu0 %v3443_v35 }
 0x6ee   : > { %v1301_v8 = vpack.c.bf16 %v1285_v41, %v1285_v41  ;;  %2457 = vmatpush.bf16.msra.mxu3 %v3428_v37  ;;  %v1144_v46 = vpop.f32.mrf.mxu3  ;;  %v3452_v37 = vld [vmem:[%s4519_s11 + $0x328] sm:$0xff]  ;;  %v3461_v41 = vld [vmem:[%s4519_s11 + $0x370] sm:$0xff] }
 0x6ef   : > { %2470 = vmatpush.bf16.msrb.mxu2 %v3436_v39  ;;  %v1145_v48 = vadd.f32 %v1144_v46, %v880_v40  ;;  %v1157_v49 = vpop.f32.mrf.mxu2  ;;  %2398 = vmatmul.bf16.vlgmr.msrb.gmra.mxu1 %v1298_v44  ;;  %v3476_v39 = vld [vmem:[%s4519_s11 + $0x3e8] sm:$0xff]  ;;  %v3451_v44 = vld [vmem:[%s4519_s11 + $0x320] sm:$0xff] }
 0x6f0   : > { %v1158_v51 = vadd.f32 %v1157_v49, %v881_v42  ;;  %2437 = vmatmul.bf16.vlgmr.msra.gmra.mxu0 %v1301_v8  ;;  %2446 = vmatpush.bf16.msra.mxu1 %v3418_v43  ;;  %v1133_v52 = vpop.f32.mrf.mxu1  ;;  %v3469_v43 = vld [vmem:[%s4519_s11 + $0x3b0] sm:$0xff]  ;;  %v3475_v8 = vld [vmem:[%s4519_s11 + $0x3e0] sm:$0xff]  ;;  %v3468_v49 = vld [vmem:[%s4519_s11 + $0x3a8] sm:$0xff] }
 0x6f1   : > { %v1283_v54 = vmax.f32 %v1145_v48, 0.0  ;;  %2485 = vmatpush.bf16.msrb.mxu0 %v3442_v45  ;;  %v1172_v55 = vpop.f32.mrf.mxu0  ;;  %v3474_v52 = vld [vmem:[%s4519_s11 + $0x3d8] sm:$0xff] }
 0x6f2   : > { %v1284_v57 = vmax.f32 %v1158_v51, 0.0  ;;  %2458 = vmatpush.bf16.msra.mxu3 %v3427_v47  ;;  %v3460_v47 = vld [vmem:[%s4519_s11 + $0x368] sm:$0xff]  ;;  %v3450_v51 = vld [vmem:[%s4519_s11 + $0x318] sm:$0xff]  ;;  %v3449_v55 = vld [vmem:[%s4519_s11 + $0x310] sm:$0xff] }
 0x6f3   : > { %v1299_v60 = vpack.c.bf16 %v1283_v54, %v1283_v54  ;;  %2471 = vmatpush.bf16.msrb.mxu2 %v3435_v50  ;;  %v3467_v54 = vld [vmem:[%s4519_s11 + $0x3a0] sm:$0xff] }
 0x6f4   : > { %v1300_v62 = vpack.c.bf16 %v1284_v57, %v1284_v57  ;;  %2447 = vmatpush.bf16.msra.mxu1 %v3417_v53  ;;  %v3459_v53 = vld [vmem:[%s4519_s11 + $0x360] sm:$0xff] }
 0x6f5   : > { %2486 = vmatpush.bf16.msrb.mxu0 %v3441_v56  ;;  %2411 = vmatmul.bf16.vlgmr.msrb.gmra.mxu3 %v1299_v60  ;;  %v887_v56 = vperm.slane %v4333_v59, 4  ;;  %v890_v60 = vperm.slane %v4333_v59, 7 }
 0x6f6   : > { %2424 = vmatmul.bf16.vlgmr.msra.gmra.mxu2 %v1300_v62  ;;  %2459 = vmatpush.bf16.msra.mxu3 %v3426_v58  ;;  %v1146_v2 = vpop.f32.mrf.mxu3  ;;  %v3473_v58 = vld [vmem:[%s4519_s11 + $0x3d0] sm:$0xff]  ;;  %v3458_v62 = vld [vmem:[%s4519_s11 + $0x358] sm:$0xff] }
 0x6f7   : > { %2472 = vmatpush.bf16.msrb.mxu2 %v3434_v61  ;;  %v1159_v5 = vpop.f32.mrf.mxu2  ;;  %v3448_v2 = vld [vmem:[%s4519_s11 + $0x308] sm:$0xff] }
 0x6f8   : > { %2448 = vmatpush.bf16.msra.mxu1 %v3416_v63  ;;  %v1183_v9 = vpop.f32.mrf.mxu1 }
 0x6f9   : > { %2487 = vmatpush.bf16.msrb.mxu0 %v3440_v0  ;;  %v1184_v11 = vadd.f32 %v1183_v9, %v883_v1  ;;  %v1222_v12 = vpop.f32.mrf.mxu0  ;;  %v3466_v0 = vld [vmem:[%s4519_s11 + $0x398] sm:$0xff]  ;;  %v888_v9 = vperm.slane %v4333_v59, 5 }
 0x6fa   : > { %v1223_v14 = vadd.f32 %v1222_v12, %v886_v3  ;;  %2460 = vmatpush.bf16.msra.mxu3 %v3425_v4  ;;  %v3472_v4 = vld [vmem:[%s4519_s11 + $0x3c8] sm:$0xff]  ;;  %v3447_v12 = vld [vmem:[%s4519_s11 + $0x300] sm:$0xff] }
 0x6fb   : > { %v1286_v17 = vmax.f32 %v1184_v11, 0.0  ;;  %2473 = vmatpush.bf16.msrb.mxu2 %v3433_v7  ;;  %v3457_v7 = vld [vmem:[%s4519_s11 + $0x350] sm:$0xff]  ;;  %v889_v11 = vperm.slane %v4333_v59, 6 }
 0x6fc   : > { %v1289_v20 = vmax.f32 %v1223_v14, 0.0  ;;  %2449 = vmatpush.bf16.msra.mxu1 %v3415_v10  ;;  %v3465_v10 = vld [vmem:[%s4519_s11 + $0x390] sm:$0xff]  ;;  %v3471_v14 = vld [vmem:[%s4519_s11 + $0x3c0] sm:$0xff] }
 0x6fd   : > { %v1302_v22 = vpack.c.bf16 %v1286_v17, %v1286_v17  ;;  %2488 = vmatpush.bf16.msrb.mxu0 %v3439_v6  ;;  %v3456_v17 = vld [vmem:[%s4519_s11 + $0x348] sm:$0xff] }
 0x6fe   : > { %v1305_v24 = vpack.c.bf16 %v1289_v20, %v1289_v20  ;;  %2461 = vmatpush.bf16.msra.mxu3 %v3424_v16  ;;  %v1196_v25 = vpop.f32.mrf.mxu3 }
 0x6ff   : > { %2474 = vmatpush.bf16.msrb.mxu2 %v3432_v18  ;;  %v1197_v28 = vadd.f32 %v1196_v25, %v884_v19  ;;  %v1209_v29 = vpop.f32.mrf.mxu2  ;;  %2450 = vmatmul.bf16.vlgmr.msra.gmra.mxu1 %v1302_v22  ;;  %v3464_v18 = vld [vmem:[%s4519_s11 + $0x388] sm:$0xff]  ;;  %v3455_v22 = vld [vmem:[%s4519_s11 + $0x340] sm:$0xff] }
 0x700   : > { %2494 = vmatpush.bf16.msrb.mxu1 %v3454_v13  ;;  %v1210_v32 = vadd.f32 %v1209_v29, %v885_v21  ;;  %2489 = vmatmul.bf16.vlgmr.msrb.gmra.mxu0 %v1305_v24  ;;  %v1185_v33 = vpop.f32.mrf.mxu1  ;;  %v3463_v24 = vld [vmem:[%s4519_s11 + $0x380] sm:$0xff] }
 0x701   : > { %2533 = vmatpush.bf16.msra.mxu0 %v3478_v15  ;;  %v1287_v35 = vmax.f32 %v1197_v28, 0.0  ;;  %v1224_v36 = vpop.f32.mrf.mxu0 }
 0x702   : > { %v1288_v38 = vmax.f32 %v1210_v32, 0.0  ;;  %2462 = vmatpush.bf16.msra.mxu3 %v3423_v27 }
 0x703   : > { %v1303_v40 = vpack.c.bf16 %v1287_v35, %v1287_v35  ;;  %2475 = vmatpush.bf16.msrb.mxu2 %v3431_v30 }
 0x704   : > { %2495 = vmatpush.bf16.msrb.mxu1 %v3453_v23  ;;  %v1304_v42 = vpack.c.bf16 %v1288_v38, %v1288_v38 }
 0x705   : > { %2534 = vmatpush.bf16.msra.mxu0 %v3477_v26  ;;  %2463 = vmatmul.bf16.vlgmr.msra.gmra.mxu3 %v1303_v40  ;;  %v3539_v40 = vld [vmem:[%s4520_s12] ss:$0 sm:$0xff] }
 0x706   : > { %2507 = vmatpush.bf16.msrb.mxu3 %v3462_v31  ;;  %2476 = vmatmul.bf16.vlgmr.msrb.gmra.mxu2 %v1304_v42  ;;  %v1198_v45 = vpop.f32.mrf.mxu3 }
 0x707   : > { %2520 = vmatpush.bf16.msra.mxu2 %v3470_v34  ;;  %v1211_v46 = vpop.f32.mrf.mxu2 }
 0x708   : > { %2496 = vmatpush.bf16.msrb.mxu1 %v3452_v37  ;;  %v1235_v48 = vpop.f32.mrf.mxu1 }
 0x709   : > { %2535 = vmatpush.bf16.msra.mxu0 %v3476_v39  ;;  %v1274_v50 = vpop.f32.mrf.mxu0  ;;  %v1236_v3 = vadd.f32 %v1235_v48, %v887_v56 }
 0x70a   : > { %2508 = vmatpush.bf16.msrb.mxu3 %v3461_v41  ;;  %v1275_v5 = vadd.f32 %v1274_v50, %v890_v60 }
 0x70b   : > { %2521 = vmatpush.bf16.msra.mxu2 %v3469_v43  ;;  %v1290_v6 = vmax.f32 %v1236_v3, 0.0 }
 0x70c   : > { %2497 = vmatpush.bf16.msrb.mxu1 %v3451_v44  ;;  %v1293_v15 = vmax.f32 %v1275_v5, 0.0 }
 0x70d   : > { %2536 = vmatpush.bf16.msra.mxu0 %v3475_v8  ;;  %v1306_v20 = vpack.c.bf16 %v1290_v6, %v1290_v6 }
 0x70e   : > { %2509 = vmatpush.bf16.msrb.mxu3 %v3460_v47  ;;  %v1248_v57 = vpop.f32.mrf.mxu3  ;;  %v1309_v21 = vpack.c.bf16 %v1293_v15, %v1293_v15 }
 0x70f   : > { %2522 = vmatpush.bf16.msra.mxu2 %v3468_v49  ;;  %v1261_v61 = vpop.f32.mrf.mxu2  ;;  %v1249_v59 = vadd.f32 %v1248_v57, %v888_v9 }
 0x710   : > { %2498 = vmatpush.bf16.msrb.mxu1 %v3450_v51  ;;  %v1237_v63 = vpop.f32.mrf.mxu1  ;;  %v1262_v19 = vadd.f32 %v1261_v61, %v889_v11 }
 0x711   : > { %2537 = vmatpush.bf16.msra.mxu0 %v3474_v52  ;;  %v1276_v1 = vpop.f32.mrf.mxu0  ;;  %v1291_v23 = vmax.f32 %v1249_v59, 0.0 }
 0x712   : > { %2510 = vmatpush.bf16.msrb.mxu3 %v3459_v53  ;;  %v1292_v25 = vmax.f32 %v1262_v19, 0.0 }
 0x713   : > { %2523 = vmatpush.bf16.msra.mxu2 %v3467_v54  ;;  %v1307_v26 = vpack.c.bf16 %v1291_v23, %v1291_v23 }
 0x714   : > { %2499 = vmatpush.bf16.msrb.mxu1 %v3449_v55  ;;  %v1308_v27 = vpack.c.bf16 %v1292_v25, %v1292_v25 }
 0x715   : > { %2538 = vmatpush.bf16.msra.mxu0 %v3473_v58 }
 0x716   : > { %2511 = vmatpush.bf16.msrb.mxu3 %v3458_v62  ;;  %v1250_v13 = vpop.f32.mrf.mxu3 }
 0x717   : > { %2524 = vmatpush.bf16.msra.mxu2 %v3466_v0  ;;  %v1263_v16 = vpop.f32.mrf.mxu2 }
 0x718   : > { %2500 = vmatpush.bf16.msrb.mxu1 %v3448_v2 }
 0x719   : > { %2539 = vmatpush.bf16.msra.mxu0 %v3472_v4 }
 0x71a   : > { %2512 = vmatpush.bf16.msrb.mxu3 %v3457_v7 }
 0x71b   : > { %2525 = vmatpush.bf16.msra.mxu2 %v3465_v10 }
 0x71c   : > { %2501 = vmatpush.bf16.msrb.mxu1 %v3447_v12 }
 0x71d   : > { %2540 = vmatpush.bf16.msra.mxu0 %v3471_v14 }
 0x71e   : > { %2513 = vmatpush.bf16.msrb.mxu3 %v3456_v17 }
 0x71f   : > { %2526 = vmatpush.bf16.msra.mxu2 %v3464_v18  ;;  %2502 = vmatmul.bf16.vlgmr.msrb.gmra.mxu1 %v1306_v20 }
 0x720   : > { %2541 = vmatmul.bf16.vlgmr.msra.gmra.mxu0 %v1309_v21 }
 0x722   : > { %2514 = vmatpush.bf16.msrb.mxu3 %v3455_v22 }
 0x723   : > { %2527 = vmatpush.bf16.msra.mxu2 %v3463_v24 }
 0x725   : > { %2515 = vmatmul.bf16.vlgmr.msrb.gmra.mxu3 %v1307_v26 }
 0x726   : > { %2528 = vmatmul.bf16.vlgmr.msra.gmra.mxu2 %v1308_v27 }
 0x75c   : > { %v2347_v28 = vpop.f32.mrf.mxu1 }
 0x75d   : > { %v2386_v29 = vpop.f32.mrf.mxu0  ;;  %v2348_v43 = vadd.f32 %v3539_v40, %v2347_v28 }
 0x764   : > { %v2349_v30 = vpop.f32.mrf.mxu1 }
 0x765   : > { %v2388_v31 = vpop.f32.mrf.mxu0 }
 0x768   : > { %v2360_v32 = vpop.f32.mrf.mxu3 }
 0x769   : > { %v2373_v33 = vpop.f32.mrf.mxu2  ;;  %v2361_v8 = vadd.f32 %v2360_v32, %v2348_v43 }
 0x76b   : > { %v2374_v48 = vadd.f32 %v2373_v33, %v2361_v8 }
 0x76c   : > { %v2399_v34 = vpop.f32.mrf.mxu1 }
 0x76d   : > { %v2438_v35 = vpop.f32.mrf.mxu0  ;;  %v2387_v51 = vadd.f32 %v2386_v29, %v2374_v48 }
 0x76f   : > { %v2400_v54 = vadd.f32 %v2399_v34, %v2387_v51 }
 0x770   : > { %v2362_v36 = vpop.f32.mrf.mxu3 }
 0x771   : > { %v2375_v37 = vpop.f32.mrf.mxu2 }
 0x774   : > { %v2401_v38 = vpop.f32.mrf.mxu1 }
 0x775   : > { %v2440_v39 = vpop.f32.mrf.mxu0 }
 0x778   : > { %v2412_v41 = vpop.f32.mrf.mxu3 }
 0x779   : > { %v2425_v42 = vpop.f32.mrf.mxu2  ;;  %v2413_v55 = vadd.f32 %v2412_v41, %v2400_v54 }
 0x77b   : > { %v2426_v56 = vadd.f32 %v2425_v42, %v2413_v55 }
 0x77c   : > { %v2451_v44 = vpop.f32.mrf.mxu1 }
 0x77d   : > { %v2490_v45 = vpop.f32.mrf.mxu0  ;;  %v2439_v60 = vadd.f32 %v2438_v35, %v2426_v56 }
 0x77f   : > { %v2452_v61 = vadd.f32 %v2451_v44, %v2439_v60 }
 0x780   : > { %v2414_v46 = vpop.f32.mrf.mxu3 }
 0x781   : > { %v2427_v47 = vpop.f32.mrf.mxu2 }
 0x784   : > { %v2453_v49 = vpop.f32.mrf.mxu1 }
 0x785   : > { %v2492_v50 = vpop.f32.mrf.mxu0 }
 0x788   : > { %v2464_v52 = vpop.f32.mrf.mxu3 }
 0x789   : > { %v2477_v53 = vpop.f32.mrf.mxu2  ;;  %v2465_v63 = vadd.f32 %v2464_v52, %v2452_v61 }
 0x78b   : > { %v2478_v1 = vadd.f32 %v2477_v53, %v2465_v63 }
 0x78d   : > { %v2491_v3 = vadd.f32 %v2490_v45, %v2478_v1 }
 0x790   : > { %v2466_v57 = vpop.f32.mrf.mxu3 }
 0x791   : > { %v2479_v58 = vpop.f32.mrf.mxu2 }
 0x79c   : > { %v2503_v62 = vpop.f32.mrf.mxu1 }
 0x79d   : > { %v2542_v0 = vpop.f32.mrf.mxu0  ;;  %v2504_v5 = vadd.f32 %v2503_v62, %v2491_v3 }
 0x7a4   : > { %v2505_v2 = vpop.f32.mrf.mxu1 }
 0x7a5   : > { %v2544_v4 = vpop.f32.mrf.mxu0 }
 0x7a8   : > { %v2516_v7 = vpop.f32.mrf.mxu3 }
 0x7a9   : > { %v2517_v9 = vadd.f32 %v2516_v7, %v2504_v5  ;;  %v2529_v10 = vpop.f32.mrf.mxu2 }
 0x7ab   : > { %v2530_v11 = vadd.f32 %v2529_v10, %v2517_v9 }
 0x7ad   : > { %v2543_v12 = vadd.f32 %v2542_v0, %v2530_v11 }
 0x7af   : > { %v2546_v6 = vadd.f32 %v2543_v12, %v2543_v12 }
 0x7b0   : > { %v2518_v13 = vpop.f32.mrf.mxu3 }
 0x7b1   : > { %v2531_v14 = vpop.f32.mrf.mxu2  ;;  %2547 = vst.msk [vmem:[%s431_s24] sm:$0xff] %vm440_vm0, %v2546_v6 }
 0x7b2   : > { %3589 = shalt.err (!%p3586_p3)
}
 0x7b3   : > { %3479 = dma.vmem_to_hbm [thread:$0]  (%p3749_p5), %s2562_s30, 128, %s2564_s15, %s2549_s29  }
 0x7b4 PF: > { %p3485_p4 = scmp.ge.s32.totalorder %s3624_s28, 2  ;;  %s2575_s2 = sand.u32 1, %s3612_s25  }
 0x7b5   : > { %s2576_s23 = scalar_lea.sflag [#allocation4], %s2575_s2 }
 0x7b6   : > { %p3482_p7 = pnand %p3485_p4, %p3753_p6 }
 0x7b8   : > { %p3483_p8 = pneg %p3482_p7 }
 0x7ba   : > { %3607 = dma.done.wait (%p3483_p8), %s2576_s23, 128  }
 0x7bb   : > { %3609 = vsyncadd (%p3483_p8), %s2576_s23, 4294967168  ;;  %p23_p9 = scmp.ge.s32.totalorder %s3736_s14, 4   ;;  %s4532_s25 = smov %s3616_s26 }
 0x7bc   : > { %s4533_s26 = smov %s3620_s27  ;;  %s4534_s27 = smov %s3747_s17 }
 0x7bd   : > { %s4535_s28 = smov %s3736_s14  ;;  %25 = sbr.rel (!%p23_p9) target bundleno = 8 (0x8), region = 107 }
 0x7c2   :  { %2582 = vsyncpa [#allocation4], 1 }
 0x7c3   :  { %2584 = vsyncpa [#allocation4 + $0x1], 1 }

</bundles_post_ra>
